<compile_context>
chip_gen: v5e
topology: v5e:2x2
jax: 0.10.0
libtpu: 0.0.40
codegen_flags: <defaults>
</compile_context>

<pallas_src>
import jax
import jax.numpy as jnp
from jax.experimental import pallas as pl
from jax.experimental.pallas import tpu as pltpu

EPS = 1e-5
LANE = 128


def _round_up(x, m):
    return (x + m - 1) // m * m


def _im2col_matmul(get_tap, cols_ref, w_ref, c):
    """Stage 9 taps (each (h, w, c)) into a lane-dense slab, one MXU matmul.

    Taps are packed contiguously along K (offset t*c), so only 9*c of the Kp
    columns carry real data.  For c >= 128 (deep UNet stages) production code
    would switch to 9 accumulating K=c matmuls to keep the slab 9x smaller
    (important inside v7x's 64 MiB VMEM); and for Cout >= 256 the output tile
    would be 256 wide to fill the 2x256 MXU on v6e/v7x.
    """
    h, w, kp = cols_ref.shape
    if kp > 9 * c:
        # Re-zeroed every grid step: cheap, and safe under megacore
        # ("parallel") partitioning where step 0 may not run on this core.
        cols_ref[:, :, 9 * c:] = jnp.zeros((h, w, kp - 9 * c), cols_ref.dtype)
    for t in range(9):
        dy, dx = divmod(t, 3)
        cols_ref[:, :, t * c:(t + 1) * c] = get_tap(dy, dx)
    # TODO(synk): if v5e bundle dumps show the 9 sublane-misaligned tap copies
    # saturating the single vst slot, stage 3 aligned dy-row slabs and handle
    # the dx shift with lane-offset reads instead.
    return jnp.dot(cols_ref[...].reshape(h * w, kp), w_ref[...],
                   preferred_element_type=jnp.float32)


def _write_stats(st_ref, y):
    # Per-image partial BN statistics (reduced over N in the wrapper).
    # One-pass sum / sum-of-squares (clamped in the wrapper); production-size
    # M would use Welford.  If VALU ever binds here, these column sums can be
    # moved onto the MXU as ones(1, M) @ y.
    rows, cols = st_ref.shape[1], st_ref.shape[2]
    st_ref[0, 0:1, :] = jnp.sum(y, axis=0, keepdims=True)
    st_ref[0, 1:2, :] = jnp.sum(y * y, axis=0, keepdims=True)
    st_ref[0, 2:, :] = jnp.zeros((rows - 2, cols), jnp.float32)


def conv1_stats_kernel(x_ref, w1_ref, y1_ref, st1_ref, cols_ref):
    # x_ref:   (1, H+2, W+2, Cin)  bf16, spatially zero-padded
    # w1_ref:  (K1p, Cpo) bf16, rows = (dy*3+dx)*Cin + cin (compact im2col)
    # y1_ref:  (1, H+2, W+2, Cout) bf16: raw conv1, zero 1-px border
    # st1_ref: (1, 8, Cpo) f32: row0 = per-image channel sum, row1 = sumsq
    _, hp, wp, cin = x_ref.shape
    h, w = hp - 2, wp - 2
    cout = y1_ref.shape[-1]

    y = _im2col_matmul(lambda dy, dx: x_ref[0, dy:dy + h, dx:dx + w, :],
                       cols_ref, w1_ref, cin)              # (h*w, Cpo) f32

    # Store y1 already spatially padded (zero border) so the conv2 pass needs
    # no re-pad round trip; write back only the real Cout channels.
    zr = jnp.zeros((1, 1, wp, cout), y1_ref.dtype)
    zc = jnp.zeros((1, hp, 1, cout), y1_ref.dtype)
    y1_ref[:, 0:1, :, :] = zr
    y1_ref[:, h + 1:h + 2, :, :] = zr
    y1_ref[:, :, 0:1, :] = zc
    y1_ref[:, :, w + 1:w + 2, :] = zc
    y1_ref[0, 1:h + 1, 1:w + 1, :] = (
        y.reshape(h, w, -1)[:, :, :cout].astype(y1_ref.dtype))

    _write_stats(st1_ref, y)


def bn1_conv2_stats_kernel(y1_ref, s1_ref, b1_ref, w2_ref,
                           y2_ref, st2_ref, act_ref, cols_ref):
    # y1_ref:  (1, H+2, W+2, Cout) bf16 raw conv1 (zero border)
    # s1/b1:   (1, Cout) f32 BN1 scale / shift (from global batch stats)
    # w2_ref:  (K2p, Cpo) bf16
    # y2_ref:  (1, H, W, Cout) bf16 raw conv2 output
    # st2_ref: (1, 8, Cpo) f32 partial stats of conv2 output
    # act_ref: (H+2, W+2, Cout) bf16 scratch: relu(BN1(y1)), zero border
    _, hp, wp, cout = y1_ref.shape
    h, w = hp - 2, wp - 2

    # BN1 + ReLU applied ONCE to the interior (f32 math); 1-px border kept
    # zero (border strips re-zeroed per step: tiny, megacore-safe).
    zr = jnp.zeros((1, wp, cout), act_ref.dtype)
    zc = jnp.zeros((hp, 1, cout), act_ref.dtype)
    act_ref[0:1, :, :] = zr
    act_ref[h + 1:h + 2, :, :] = zr
    act_ref[:, 0:1, :] = zc
    act_ref[:, w + 1:w + 2, :] = zc
    a = y1_ref[0, 1:h + 1, 1:w + 1, :].astype(jnp.float32)
    act_ref[1:h + 1, 1:w + 1, :] = jnp.maximum(
        a * s1_ref[0] + b1_ref[0], 0.0).astype(act_ref.dtype)

    y = _im2col_matmul(lambda dy, dx: act_ref[dy:dy + h, dx:dx + w, :],
                       cols_ref, w2_ref, cout)             # (h*w, Cpo) f32

    y2_ref[0] = y.reshape(h, w, -1)[:, :, :cout].astype(y2_ref.dtype)
    _write_stats(st2_ref, y)


def bn2_relu_kernel(y2_ref, s2_ref, b2_ref, out_ref):
    y = y2_ref[0].astype(jnp.float32)
    out_ref[0] = jnp.maximum(y * s2_ref[0] + b2_ref[0],
                             0.0).astype(out_ref.dtype)


def _finish_bn(stats, gamma, beta, m):
    """Reduce per-image (sum, sumsq) over N; build BN scale/shift (f32)."""
    c = gamma.shape[0]
    s = jnp.sum(stats[:, 0, :c], axis=0)
    ss = jnp.sum(stats[:, 1, :c], axis=0)
    mean = s / m
    var = jnp.maximum(ss / m - mean * mean, 0.0)   # one-pass; clamp guards
    scale = gamma * jax.lax.rsqrt(var + EPS)
    shift = beta - mean * scale
    return (scale.reshape(1, c).astype(jnp.float32),
            shift.reshape(1, c).astype(jnp.float32))


def unet_block_pallas(x_nchw, params):
    """x_nchw: (N, Cin, H, W) float32 -> (N, Cout, H, W) float32."""
    N, Cin, H, W = x_nchw.shape
    Cout = params["w1"].shape[0]
    K1p = _round_up(9 * Cin, LANE)
    K2p = _round_up(9 * Cout, LANE)
    Cpo = _round_up(Cout, LANE)   # MXU output-column width (>=128 lanes)
    M = N * H * W

    # NCHW -> NHWC, spatial zero-pad (3x3, pad=1), bf16 cast.  Kept wrapper-
    # side for PyTorch-layout parity; an NHWC-native pipeline would skip
    # these full-tensor passes entirely.
    x = jnp.transpose(x_nchw, (0, 2, 3, 1))
    x = jnp.pad(x, ((0, 0), (1, 1), (1, 1), (0, 0))).astype(jnp.bfloat16)

    def pack_w(wt, cin, kp):
        # (Cout, Cin, 3, 3) -> rows = (dy*3+dx)*Cin + cin, cols = Cout;
        # pad K -> kp and cols -> Cpo (padded cols are zero => padded output
        # channels are exactly zero and are never written back).
        co = wt.shape[0]
        w_ = jnp.transpose(wt, (2, 3, 1, 0)).reshape(9 * cin, co)
        w_ = jnp.pad(w_, ((0, kp - 9 * cin), (0, Cpo - co)))
        return w_.astype(jnp.bfloat16)

    w1 = pack_w(params["w1"], Cin, K1p)
    w2 = pack_w(params["w2"], Cout, K2p)
    # params["b1"] / params["b2"] intentionally unused: per-channel constants
    # cancel exactly under training-mode BatchNorm.

    parallel = pltpu.CompilerParams(dimension_semantics=("parallel",))

    # ---- pass 1: conv1 + per-image BN1 stats --------------------------------
    y1, st1 = pl.pallas_call(
        conv1_stats_kernel,
        grid=(N,),
        out_shape=(jax.ShapeDtypeStruct((N, H + 2, W + 2, Cout), jnp.bfloat16),
                   jax.ShapeDtypeStruct((N, 8, Cpo), jnp.float32)),
        in_specs=[pl.BlockSpec((1, H + 2, W + 2, Cin), lambda n: (n, 0, 0, 0)),
                  pl.BlockSpec((K1p, Cpo), lambda n: (0, 0))],
        out_specs=(pl.BlockSpec((1, H + 2, W + 2, Cout),
                                lambda n: (n, 0, 0, 0)),
                   pl.BlockSpec((1, 8, Cpo), lambda n: (n, 0, 0))),
        scratch_shapes=[pltpu.VMEM((H, W, K1p), jnp.bfloat16)],
        compiler_params=parallel,
    )(x, w1)

    scale1, shift1 = _finish_bn(st1, params["g1"], params["be1"], M)

    # ---- pass 2: BN1*ReLU + conv2 + per-image BN2 stats ---------------------
    y2, st2 = pl.pallas_call(
        bn1_conv2_stats_kernel,
        grid=(N,),
        out_shape=(jax.ShapeDtypeStruct((N, H, W, Cout), jnp.bfloat16),
                   jax.ShapeDtypeStruct((N, 8, Cpo), jnp.float32)),
        in_specs=[pl.BlockSpec((1, H + 2, W + 2, Cout),
                               lambda n: (n, 0, 0, 0)),
                  pl.BlockSpec((1, Cout), lambda n: (0, 0)),
                  pl.BlockSpec((1, Cout), lambda n: (0, 0)),
                  pl.BlockSpec((K2p, Cpo), lambda n: (0, 0))],
        out_specs=(pl.BlockSpec((1, H, W, Cout), lambda n: (n, 0, 0, 0)),
                   pl.BlockSpec((1, 8, Cpo), lambda n: (n, 0, 0))),
        scratch_shapes=[pltpu.VMEM((H + 2, W + 2, Cout), jnp.bfloat16),
                        pltpu.VMEM((H, W, K2p), jnp.bfloat16)],
        compiler_params=parallel,
    )(y1, scale1, shift1, w2)

    scale2, shift2 = _finish_bn(st2, params["g2"], params["be2"], M)

    # ---- pass 3: BN2*ReLU apply ---------------------------------------------
    out_nhwc = pl.pallas_call(
        bn2_relu_kernel,
        grid=(N,),
        out_shape=jax.ShapeDtypeStruct((N, H, W, Cout), jnp.float32),
        in_specs=[pl.BlockSpec((1, H, W, Cout), lambda n: (n, 0, 0, 0)),
                  pl.BlockSpec((1, Cout), lambda n: (0, 0)),
                  pl.BlockSpec((1, Cout), lambda n: (0, 0))],
        out_specs=pl.BlockSpec((1, H, W, Cout), lambda n: (n, 0, 0, 0)),
        compiler_params=parallel,
    )(y2, scale2, shift2)

    return jnp.transpose(out_nhwc, (0, 3, 1, 2))   # NHWC -> NCHW (PyTorch)


def unet_block_ref(x_nchw, params):
    """Pure-JAX f32 reference (NCHW, PyTorch training-mode forward)."""
    def conv(x, w, b):
        dn = jax.lax.conv_dimension_numbers(x.shape, w.shape,
                                            ("NCHW", "OIHW", "NCHW"))
        y = jax.lax.conv_general_dilated(x, w, (1, 1), ((1, 1), (1, 1)),
                                         dimension_numbers=dn)
        return y + b[None, :, None, None]

    def bn_relu(y, g, be):
        mean = jnp.mean(y, axis=(0, 2, 3), keepdims=True)
        var = jnp.mean((y - mean) ** 2, axis=(0, 2, 3), keepdims=True)
        yh = (y - mean) / jnp.sqrt(var + EPS)
        return jnp.maximum(yh * g[None, :, None, None]
                           + be[None, :, None, None], 0.0)

    h = bn_relu(conv(x_nchw, params["w1"], params["b1"]),
                params["g1"], params["be1"])
    return bn_relu(conv(h, params["w2"], params["b2"]),
                   params["g2"], params["be2"])


def init_params(key, in_channels, out_channels):
    ks = jax.random.split(key, 8)
    return {
        "w1": jax.random.normal(ks[0], (out_channels, in_channels, 3, 3),
                                jnp.float32) * 0.2,
        "b1": jax.random.normal(ks[1], (out_channels,), jnp.float32) * 0.1,
        "g1": 1.0 + jax.random.normal(ks[2], (out_channels,), jnp.float32) * 0.1,
        "be1": jax.random.normal(ks[3], (out_channels,), jnp.float32) * 0.1,
        "w2": jax.random.normal(ks[4], (out_channels, out_channels, 3, 3),
                                jnp.float32) * 0.2,
        "b2": jax.random.normal(ks[5], (out_channels,), jnp.float32) * 0.1,
        "g2": 1.0 + jax.random.normal(ks[6], (out_channels,), jnp.float32) * 0.1,
        "be2": jax.random.normal(ks[7], (out_channels,), jnp.float32) * 0.1,
    }


if __name__ == "__main__":
    key = jax.random.PRNGKey(0)
    kx, kp = jax.random.split(key)

    N, Cin, Cout, H, W = 2, 4, 8, 16, 16
    x = jax.random.normal(kx, (N, Cin, H, W), jnp.float32)
    params = init_params(kp, Cin, Cout)

    out = jax.block_until_ready(unet_block_pallas(x, params))
    ref = jax.block_until_ready(unet_block_ref(x, params))

    assert out.shape == (N, Cout, H, W)
    err = float(jnp.max(jnp.abs(out - ref)))
    # bf16 MXU operands / bf16 intermediates (f32 accumulation & BN math)
    # through two conv+BN stages give ~1e-2-level absolute error on these
    # O(1), BN-normalized activations; 1.5e-1 leaves comfortable margin.
    assert err < 1.5e-1, err

    print("KERNEL_OK")
</pallas_src>

<mosaic_0001>
module attributes {stable_mosaic.version = 11 : i64} {
  func.func @conv1_stats_kernel(%arg0: i32, %arg1: memref<1x18x18x4xbf16, #tpu.memory_space<vmem>>, %arg2: memref<128x128xbf16, #tpu.memory_space<vmem>>, %arg3: memref<1x18x18x8xbf16, #tpu.memory_space<vmem>>, %arg4: memref<1x8x128xf32, #tpu.memory_space<vmem>>, %arg5: memref<16x16x128xbf16, #tpu.memory_space<vmem>>) attributes {dimension_semantics = [#tpu.dimension_semantics<parallel>], iteration_bounds = array<i64: 2>, scalar_prefetch = 0 : i64, scratch_operands = 1 : i64, tpu.core_type = #tpu.core_type<tc>, window_params = [{transform_indices = @transform_0, window_bounds = array<i64: 1, 18, 18, 4>}, {pipeline_mode = #tpu.pipeline_mode<synchronous>, transform_indices = @transform_1, window_bounds = array<i64: 128, 128>}, {transform_indices = @transform_2, window_bounds = array<i64: 1, 18, 18, 8>}, {transform_indices = @transform_3, window_bounds = array<i64: 1, 8, 128>}]} {
    %cst = arith.constant 0.000000e+00 : bf16
    %0 = vector.broadcast %cst : bf16 to vector<16x16x92xbf16>
    %c0 = arith.constant 0 : index
    %c0_0 = arith.constant 0 : index
    %c36 = arith.constant 36 : index
    %1 = vector.load %arg5[%c0, %c0_0, %c36] : memref<16x16x128xbf16, #tpu.memory_space<vmem>>, vector<16x16x92xbf16>
    tpu.vector_store %arg5[%c0, %c0_0, %c36], %0 {strides = array<i32>} : memref<16x16x128xbf16, #tpu.memory_space<vmem>>, vector<16x16x92xbf16>,
    %c0_1 = arith.constant 0 : index
    %c0_2 = arith.constant 0 : index
    %c0_3 = arith.constant 0 : index
    %c0_4 = arith.constant 0 : index
    %2 = vector.load %arg1[%c0_1, %c0_2, %c0_3, %c0_4] : memref<1x18x18x4xbf16, #tpu.memory_space<vmem>>, vector<1x16x16x4xbf16>
    %3 = vector.shape_cast %2 : vector<1x16x16x4xbf16> to vector<16x16x4xbf16>
    %c0_5 = arith.constant 0 : index
    %c0_6 = arith.constant 0 : index
    %c0_7 = arith.constant 0 : index
    %4 = vector.load %arg5[%c0_5, %c0_6, %c0_7] : memref<16x16x128xbf16, #tpu.memory_space<vmem>>, vector<16x16x4xbf16>
    tpu.vector_store %arg5[%c0_5, %c0_6, %c0_7], %3 {strides = array<i32>} : memref<16x16x128xbf16, #tpu.memory_space<vmem>>, vector<16x16x4xbf16>,
    %c0_8 = arith.constant 0 : index
    %c0_9 = arith.constant 0 : index
    %c1 = arith.constant 1 : index
    %c0_10 = arith.constant 0 : index
    %5 = vector.load %arg1[%c0_8, %c0_9, %c1, %c0_10] : memref<1x18x18x4xbf16, #tpu.memory_space<vmem>>, vector<1x16x16x4xbf16>
    %6 = vector.shape_cast %5 : vector<1x16x16x4xbf16> to vector<16x16x4xbf16>
    %c0_11 = arith.constant 0 : index
    %c0_12 = arith.constant 0 : index
    %c4 = arith.constant 4 : index
    %7 = vector.load %arg5[%c0_11, %c0_12, %c4] : memref<16x16x128xbf16, #tpu.memory_space<vmem>>, vector<16x16x4xbf16>
    tpu.vector_store %arg5[%c0_11, %c0_12, %c4], %6 {strides = array<i32>} : memref<16x16x128xbf16, #tpu.memory_space<vmem>>, vector<16x16x4xbf16>,
    %c0_13 = arith.constant 0 : index
    %c0_14 = arith.constant 0 : index
    %c2 = arith.constant 2 : index
    %c0_15 = arith.constant 0 : index
    %8 = vector.load %arg1[%c0_13, %c0_14, %c2, %c0_15] : memref<1x18x18x4xbf16, #tpu.memory_space<vmem>>, vector<1x16x16x4xbf16>
    %9 = vector.shape_cast %8 : vector<1x16x16x4xbf16> to vector<16x16x4xbf16>
    %c0_16 = arith.constant 0 : index
    %c0_17 = arith.constant 0 : index
    %c8 = arith.constant 8 : index
    %10 = vector.load %arg5[%c0_16, %c0_17, %c8] : memref<16x16x128xbf16, #tpu.memory_space<vmem>>, vector<16x16x4xbf16>
    tpu.vector_store %arg5[%c0_16, %c0_17, %c8], %9 {strides = array<i32>} : memref<16x16x128xbf16, #tpu.memory_space<vmem>>, vector<16x16x4xbf16>,
    %c0_18 = arith.constant 0 : index
    %c1_19 = arith.constant 1 : index
    %c0_20 = arith.constant 0 : index
    %c0_21 = arith.constant 0 : index
    %11 = vector.load %arg1[%c0_18, %c1_19, %c0_20, %c0_21] : memref<1x18x18x4xbf16, #tpu.memory_space<vmem>>, vector<1x16x16x4xbf16>
    %12 = vector.shape_cast %11 : vector<1x16x16x4xbf16> to vector<16x16x4xbf16>
    %c0_22 = arith.constant 0 : index
    %c0_23 = arith.constant 0 : index
    %c12 = arith.constant 12 : index
    %13 = vector.load %arg5[%c0_22, %c0_23, %c12] : memref<16x16x128xbf16, #tpu.memory_space<vmem>>, vector<16x16x4xbf16>
    tpu.vector_store %arg5[%c0_22, %c0_23, %c12], %12 {strides = array<i32>} : memref<16x16x128xbf16, #tpu.memory_space<vmem>>, vector<16x16x4xbf16>,
    %c0_24 = arith.constant 0 : index
    %c1_25 = arith.constant 1 : index
    %c1_26 = arith.constant 1 : index
    %c0_27 = arith.constant 0 : index
    %14 = vector.load %arg1[%c0_24, %c1_25, %c1_26, %c0_27] : memref<1x18x18x4xbf16, #tpu.memory_space<vmem>>, vector<1x16x16x4xbf16>
    %15 = vector.shape_cast %14 : vector<1x16x16x4xbf16> to vector<16x16x4xbf16>
    %c0_28 = arith.constant 0 : index
    %c0_29 = arith.constant 0 : index
    %c16 = arith.constant 16 : index
    %16 = vector.load %arg5[%c0_28, %c0_29, %c16] : memref<16x16x128xbf16, #tpu.memory_space<vmem>>, vector<16x16x4xbf16>
    tpu.vector_store %arg5[%c0_28, %c0_29, %c16], %15 {strides = array<i32>} : memref<16x16x128xbf16, #tpu.memory_space<vmem>>, vector<16x16x4xbf16>,
    %c0_30 = arith.constant 0 : index
    %c1_31 = arith.constant 1 : index
    %c2_32 = arith.constant 2 : index
    %c0_33 = arith.constant 0 : index
    %17 = vector.load %arg1[%c0_30, %c1_31, %c2_32, %c0_33] : memref<1x18x18x4xbf16, #tpu.memory_space<vmem>>, vector<1x16x16x4xbf16>
    %18 = vector.shape_cast %17 : vector<1x16x16x4xbf16> to vector<16x16x4xbf16>
    %c0_34 = arith.constant 0 : index
    %c0_35 = arith.constant 0 : index
    %c20 = arith.constant 20 : index
    %19 = vector.load %arg5[%c0_34, %c0_35, %c20] : memref<16x16x128xbf16, #tpu.memory_space<vmem>>, vector<16x16x4xbf16>
    tpu.vector_store %arg5[%c0_34, %c0_35, %c20], %18 {strides = array<i32>} : memref<16x16x128xbf16, #tpu.memory_space<vmem>>, vector<16x16x4xbf16>,
    %c0_36 = arith.constant 0 : index
    %c2_37 = arith.constant 2 : index
    %c0_38 = arith.constant 0 : index
    %c0_39 = arith.constant 0 : index
    %20 = vector.load %arg1[%c0_36, %c2_37, %c0_38, %c0_39] : memref<1x18x18x4xbf16, #tpu.memory_space<vmem>>, vector<1x16x16x4xbf16>
    %21 = vector.shape_cast %20 : vector<1x16x16x4xbf16> to vector<16x16x4xbf16>
    %c0_40 = arith.constant 0 : index
    %c0_41 = arith.constant 0 : index
    %c24 = arith.constant 24 : index
    %22 = vector.load %arg5[%c0_40, %c0_41, %c24] : memref<16x16x128xbf16, #tpu.memory_space<vmem>>, vector<16x16x4xbf16>
    tpu.vector_store %arg5[%c0_40, %c0_41, %c24], %21 {strides = array<i32>} : memref<16x16x128xbf16, #tpu.memory_space<vmem>>, vector<16x16x4xbf16>,
    %c0_42 = arith.constant 0 : index
    %c2_43 = arith.constant 2 : index
    %c1_44 = arith.constant 1 : index
    %c0_45 = arith.constant 0 : index
    %23 = vector.load %arg1[%c0_42, %c2_43, %c1_44, %c0_45] : memref<1x18x18x4xbf16, #tpu.memory_space<vmem>>, vector<1x16x16x4xbf16>
    %24 = vector.shape_cast %23 : vector<1x16x16x4xbf16> to vector<16x16x4xbf16>
    %c0_46 = arith.constant 0 : index
    %c0_47 = arith.constant 0 : index
    %c28 = arith.constant 28 : index
    %25 = vector.load %arg5[%c0_46, %c0_47, %c28] : memref<16x16x128xbf16, #tpu.memory_space<vmem>>, vector<16x16x4xbf16>
    tpu.vector_store %arg5[%c0_46, %c0_47, %c28], %24 {strides = array<i32>} : memref<16x16x128xbf16, #tpu.memory_space<vmem>>, vector<16x16x4xbf16>,
    %c0_48 = arith.constant 0 : index
    %c2_49 = arith.constant 2 : index
    %c2_50 = arith.constant 2 : index
    %c0_51 = arith.constant 0 : index
    %26 = vector.load %arg1[%c0_48, %c2_49, %c2_50, %c0_51] : memref<1x18x18x4xbf16, #tpu.memory_space<vmem>>, vector<1x16x16x4xbf16>
    %27 = vector.shape_cast %26 : vector<1x16x16x4xbf16> to vector<16x16x4xbf16>
    %c0_52 = arith.constant 0 : index
    %c0_53 = arith.constant 0 : index
    %c32 = arith.constant 32 : index
    %28 = vector.load %arg5[%c0_52, %c0_53, %c32] : memref<16x16x128xbf16, #tpu.memory_space<vmem>>, vector<16x16x4xbf16>
    tpu.vector_store %arg5[%c0_52, %c0_53, %c32], %27 {strides = array<i32>} : memref<16x16x128xbf16, #tpu.memory_space<vmem>>, vector<16x16x4xbf16>,
    %c0_54 = arith.constant 0 : index
    %c0_55 = arith.constant 0 : index
    %c0_56 = arith.constant 0 : index
    %29 = vector.load %arg5[%c0_54, %c0_55, %c0_56] : memref<16x16x128xbf16, #tpu.memory_space<vmem>>, vector<16x16x128xbf16>
    %30 = vector.shape_cast %29 : vector<16x16x128xbf16> to vector<256x128xbf16>
    %c0_57 = arith.constant 0 : index
    %c0_58 = arith.constant 0 : index
    %31 = vector.load %arg2[%c0_57, %c0_58] : memref<128x128xbf16, #tpu.memory_space<vmem>>, vector<128x128xbf16>
    %cst_59 = arith.constant dense<0.000000e+00> : vector<256x128xf32>
    %32 = tpu.matmul %30, %31, %cst_59 {dimension_numbers = #tpu.dot_dimension_numbers<[1], [0], [0], [1], [0, 0, 1, 1], [], []>} : vector<256x128xbf16>, vector<128x128xbf16>, vector<256x128xf32> -> vector<256x128xf32>
    %cst_60 = arith.constant 0.000000e+00 : bf16
    %33 = vector.broadcast %cst_60 : bf16 to vector<1x1x18x8xbf16>
    %cst_61 = arith.constant 0.000000e+00 : bf16
    %34 = vector.broadcast %cst_61 : bf16 to vector<1x18x1x8xbf16>
    %c0_62 = arith.constant 0 : index
    %c0_63 = arith.constant 0 : index
    %c0_64 = arith.constant 0 : index
    %c0_65 = arith.constant 0 : index
    %35 = vector.load %arg3[%c0_62, %c0_63, %c0_64, %c0_65] : memref<1x18x18x8xbf16, #tpu.memory_space<vmem>>, vector<1x1x18x8xbf16>
    tpu.vector_store %arg3[%c0_62, %c0_63, %c0_64, %c0_65], %33 {strides = array<i32>} : memref<1x18x18x8xbf16, #tpu.memory_space<vmem>>, vector<1x1x18x8xbf16>,
    %c0_66 = arith.constant 0 : index
    %c17 = arith.constant 17 : index
    %c0_67 = arith.constant 0 : index
    %c0_68 = arith.constant 0 : index
    %36 = vector.load %arg3[%c0_66, %c17, %c0_67, %c0_68] : memref<1x18x18x8xbf16, #tpu.memory_space<vmem>>, vector<1x1x18x8xbf16>
    tpu.vector_store %arg3[%c0_66, %c17, %c0_67, %c0_68], %33 {strides = array<i32>} : memref<1x18x18x8xbf16, #tpu.memory_space<vmem>>, vector<1x1x18x8xbf16>,
    %c0_69 = arith.constant 0 : index
    %c0_70 = arith.constant 0 : index
    %c0_71 = arith.constant 0 : index
    %c0_72 = arith.constant 0 : index
    %37 = vector.load %arg3[%c0_69, %c0_70, %c0_71, %c0_72] : memref<1x18x18x8xbf16, #tpu.memory_space<vmem>>, vector<1x18x1x8xbf16>
    tpu.vector_store %arg3[%c0_69, %c0_70, %c0_71, %c0_72], %34 {strides = array<i32>} : memref<1x18x18x8xbf16, #tpu.memory_space<vmem>>, vector<1x18x1x8xbf16>,
    %c0_73 = arith.constant 0 : index
    %c0_74 = arith.constant 0 : index
    %c17_75 = arith.constant 17 : index
    %c0_76 = arith.constant 0 : index
    %38 = vector.load %arg3[%c0_73, %c0_74, %c17_75, %c0_76] : memref<1x18x18x8xbf16, #tpu.memory_space<vmem>>, vector<1x18x1x8xbf16>
    tpu.vector_store %arg3[%c0_73, %c0_74, %c17_75, %c0_76], %34 {strides = array<i32>} : memref<1x18x18x8xbf16, #tpu.memory_space<vmem>>, vector<1x18x1x8xbf16>,
    %39 = vector.shape_cast %32 : vector<256x128xf32> to vector<16x16x128xf32>
    %40 = vector.extract_strided_slice %39 {offsets = [0, 0, 0], sizes = [16, 16, 8], strides = [1, 1, 1]} : vector<16x16x128xf32> to vector<16x16x8xf32>
    %41 = arith.truncf %40 : vector<16x16x8xf32> to vector<16x16x8xbf16>
    %c0_77 = arith.constant 0 : index
    %c1_78 = arith.constant 1 : index
    %c1_79 = arith.constant 1 : index
    %c0_80 = arith.constant 0 : index
    %42 = vector.load %arg3[%c0_77, %c1_78, %c1_79, %c0_80] : memref<1x18x18x8xbf16, #tpu.memory_space<vmem>>, vector<1x16x16x8xbf16>
    %43 = vector.shape_cast %42 : vector<1x16x16x8xbf16> to vector<16x16x8xbf16>
    %44 = vector.shape_cast %41 : vector<16x16x8xbf16> to vector<1x16x16x8xbf16>
    tpu.vector_store %arg3[%c0_77, %c1_78, %c1_79, %c0_80], %44 {strides = array<i32>} : memref<1x18x18x8xbf16, #tpu.memory_space<vmem>>, vector<1x16x16x8xbf16>,
    %cst_81 = arith.constant dense<0.000000e+00> : vector<128xf32>
    %45 = vector.multi_reduction <add>, %32, %cst_81 [0] : vector<256x128xf32> to vector<128xf32>
    %46 = vector.shape_cast %45 : vector<128xf32> to vector<1x128xf32>
    %c0_82 = arith.constant 0 : index
    %c0_83 = arith.constant 0 : index
    %c0_84 = arith.constant 0 : index
    %47 = vector.load %arg4[%c0_82, %c0_83, %c0_84] : memref<1x8x128xf32, #tpu.memory_space<vmem>>, vector<1x1x128xf32>
    %48 = vector.shape_cast %47 : vector<1x1x128xf32> to vector<1x128xf32>
    %49 = vector.shape_cast %46 : vector<1x128xf32> to vector<1x1x128xf32>
    tpu.vector_store %arg4[%c0_82, %c0_83, %c0_84], %49 {strides = array<i32>} : memref<1x8x128xf32, #tpu.memory_space<vmem>>, vector<1x1x128xf32>,
    %50 = arith.mulf %32, %32 : vector<256x128xf32>
    %cst_85 = arith.constant dense<0.000000e+00> : vector<128xf32>
    %51 = vector.multi_reduction <add>, %50, %cst_85 [0] : vector<256x128xf32> to vector<128xf32>
    %52 = vector.shape_cast %51 : vector<128xf32> to vector<1x128xf32>
    %c0_86 = arith.constant 0 : index
    %c1_87 = arith.constant 1 : index
    %c0_88 = arith.constant 0 : index
    %53 = vector.load %arg4[%c0_86, %c1_87, %c0_88] : memref<1x8x128xf32, #tpu.memory_space<vmem>>, vector<1x1x128xf32>
    %54 = vector.shape_cast %53 : vector<1x1x128xf32> to vector<1x128xf32>
    %55 = vector.shape_cast %52 : vector<1x128xf32> to vector<1x1x128xf32>
    tpu.vector_store %arg4[%c0_86, %c1_87, %c0_88], %55 {strides = array<i32>} : memref<1x8x128xf32, #tpu.memory_space<vmem>>, vector<1x1x128xf32>,
    %cst_89 = arith.constant 0.000000e+00 : f32
    %56 = vector.broadcast %cst_89 : f32 to vector<6x128xf32>
    %c0_90 = arith.constant 0 : index
    %c2_91 = arith.constant 2 : index
    %c0_92 = arith.constant 0 : index
    %57 = vector.load %arg4[%c0_90, %c2_91, %c0_92] : memref<1x8x128xf32, #tpu.memory_space<vmem>>, vector<1x6x128xf32>
    %58 = vector.shape_cast %57 : vector<1x6x128xf32> to vector<6x128xf32>
    %59 = vector.shape_cast %56 : vector<6x128xf32> to vector<1x6x128xf32>
    tpu.vector_store %arg4[%c0_90, %c2_91, %c0_92], %59 {strides = array<i32>} : memref<1x8x128xf32, #tpu.memory_space<vmem>>, vector<1x6x128xf32>,
    return
  }
  func.func @transform_0(%arg0: i32) -> (i32, i32, i32, i32) {
    %c0_i32 = arith.constant 0 : i32
    %c0_i32_0 = arith.constant 0 : i32
    %c0_i32_1 = arith.constant 0 : i32
    %c0_i32_2 = arith.constant 0 : i32
    return %arg0, %c0_i32, %c0_i32_0, %c0_i32_1 : i32, i32, i32, i32
  }
  func.func @transform_1(%arg0: i32) -> (i32, i32) {
    %c0_i32 = arith.constant 0 : i32
    %c0_i32_0 = arith.constant 0 : i32
    %c0_i32_1 = arith.constant 0 : i32
    return %c0_i32, %c0_i32_0 : i32, i32
  }
  func.func @transform_2(%arg0: i32) -> (i32, i32, i32, i32) {
    %c0_i32 = arith.constant 0 : i32
    %c0_i32_0 = arith.constant 0 : i32
    %c0_i32_1 = arith.constant 0 : i32
    %c0_i32_2 = arith.constant 0 : i32
    return %arg0, %c0_i32, %c0_i32_0, %c0_i32_1 : i32, i32, i32, i32
  }
  func.func @transform_3(%arg0: i32) -> (i32, i32, i32) {
    %c0_i32 = arith.constant 0 : i32
    %c0_i32_0 = arith.constant 0 : i32
    %c0_i32_1 = arith.constant 0 : i32
    return %arg0, %c0_i32, %c0_i32_0 : i32, i32, i32
  }
}

</mosaic_0001>

<bundles_post_ra>
// kernel: tpu_custom_call.1
= control target key start
LH: loop header
LB: loop body
LE: loop exit
PB: predicated region body
PF: predicated region fallthrough
CT: control target
= control target key end

     0   :  { %9 = vsyncpa [#allocation4], 0  ;;  %s7234_s0 = inlined_call_operand.vmem [shape: bf16[2,18,18,4], index: 0, kind: input, shape index: {}]   ;;  %s7235_s1 = inlined_call_operand.vmem [shape: bf16[128,128], index: 1, kind: input, shape index: {}]   ;;  %s7236_s2 = inlined_call_operand.vmem [shape: bf16[2,18,18,8], index: 2, kind: output, shape index: {0}]   ;;  %s7237_s3 = inlined_call_operand.hbm [shape: f32[2,8,128], index: 3, kind: output, shape index: {1}]  }
   0x1   :  { %11 = vsyncpa [#allocation4 + $0x1], 0  ;;  %s5144_s12 = smov 0   ;;  %s5146_s13 = smov 0  }
   0x2   :  { %s5148_s14 = smov 0   ;;  %s5150_s15 = smov 0  }
   0x3 LB: > { %s5165_s16 = sadd.s32 4294967295, %s5112_s15   ;;  %s4458_s17 = sadd.s32 4294967294, %s5112_s15   ;;  %s5112_s15 = sphi %s5150_s15, %s7255_s15   ;;  %s5108_s14 = sphi %s5148_s14, %s7254_s14   ;;  %s5104_s13 = sphi %s5146_s13, %s7253_s13   ;;  %s5100_s12 = sphi %s5144_s12, %s7252_s12  }
   0x4   : > { %s5169_s18 = sadd.s32 1, %s5112_s15   ;;  %s97_s19 = sadd.s32 1, %s5108_s14 }
   0x5   : > { %s94_s20 = ssub.s32 %s5112_s15, %s5169_s18  ;;  %p107_p0 = scmp.ne.s32.totalorder %s5108_s14, %s5104_s13 }
   0x6   : > { %p95_p1 = scmp.eq.s32.totalorder %s94_s20, 0  ;;  %p108_p2 = scmp.eq.s32.totalorder %s5165_s16, 1 }
   0x7   : > { %p113_p3 = scmp.ne.s32.totalorder %s5104_s13, %s5100_s12  ;;  %p114_p4 = scmp.eq.s32.totalorder %s4458_s17, 1 }
   0x8   : > { %s5180_s21 = scalar_select %p95_p1, %s5108_s14, %s97_s19  }
   0x9   : > { %p5182_p5 = por %p108_p2, %p107_p0  ;;  %p5186_p6 = por %p114_p4, %p113_p3 }
   0xa   : > { %p4461_p7 = scmp.ge.s32.totalorder %s5112_s15, 1  ;;  %p143_p8 = scmp.lt.s32.totalorder %s5112_s15, 3 }
   0xc   : > { %p144_p9 = pnand %p4461_p7, %p143_p8 }
   0xd   : > { %p172_p10 = scmp.lt.s32.totalorder (!%p144_p9), %s5165_s16, 1  ;;  %s5114_s29 = smov (!%p144_p9), 4  }
   0xe   : > { %147 = sbr.rel (%p144_p9) target bundleno = 997 (0x3e5), region = 28  ;;  %s5116_s30 = smov (!%p144_p9), 8  }
   0xf   : > { %s5117_s4 = smov (!%p144_p9), 12   ;;  %s5118_s5 = smov (!%p144_p9), 16  }
  0x10   : > { %s5119_s6 = smov (!%p144_p9), 20   ;;  %s5120_s7 = smov (!%p144_p9), 24  }
  0x11   : > { %s5121_s8 = smov (!%p144_p9), 28   ;;  %s5122_s9 = smov (!%p144_p9), 32  }
  0x12   : > { %s5070_s19 = scalar_lea.hbm (!%p144_p9), %s7237_s3, 16 }
  0x13   : > { %s5194_s24 = scalar_select %p172_p10, %s5165_s16, 1  ;;  %vm329_vm0 = vsmask.f32 3328  ;;  %vm330_vm1 = vsmask.f32 7440  ;;  %vm941_vm3 = vcmask 1042432  }
  0x14   : > { %vm5213_vm2 = vmor %vm329_vm0, %vm330_vm1  ;;  %vm942_vm4 = vcmask 1046532   ;;  %vm183_vm5 = vcmask 1043744   ;;  %vm248_vm7 = vcmask 27648   ;;  %vm812_vm8 = vcmask 60448  }
  0x15   : > { %s5000_s25 = smul.u32 216, %s5194_s24  ;;  %vm5387_vm6 = vmor %vm941_vm3, %vm942_vm4  ;;  %vm1152_vm9 = vcmask 93248   ;;  %vm1346_vm10 = vcmask 126048   ;;  %vm1907_vm11 = vcmask 158848   ;;  %vm2244_vm12 = vcmask 191648   ;;  %s169_s24 = sand.u32 1, %s5104_s13  }
  0x16   : > { %vm2438_vm13 = vcmask 224448   ;;  %vm2999_vm14 = vcmask 257248   ;;  %vm3336_vm15 = vcmask 290048   ;;  %vm3650_vm0 = vcmask 60416  }
  0x17   : > { %s5202_s28 = scalar_lea.vmem %s7234_s0, %s5000_s25  ;;  %vm3653_vm1 = vcmask 57344   ;;  %vm3660_vm3 = vsmask.f32 256 }
  0x18   : > { %v284_v0 = vld [vmem:[%s5202_s28 + $0xc] sm:$0xf]  ;;  %v285_v1 = vld [vmem:[%s5202_s28 + $0x10] sm:$0xf]  ;;  %v281_v2 = vld [vmem:[%s5202_s28] sm:$0xf] }
  0x19   : > { %v357_v3 = vshrl.u32 %v284_v0, 16  ;;  %v360_v4 = vshll.u32 %v284_v0, 16  ;;  %v366_v5 = vshll.u32 %v285_v1, 16  ;;  %v370_v6 = vshrl.u32 %v285_v1, 16  ;;  %v282_v7 = vld [vmem:[%s5202_s28 + $0x4] sm:$0xf]  ;;  %vm6633_vm4 = vmand %vm3653_vm1, %vm3660_vm3 }
  0x1a   : > { %v333_v8 = vshrl.u32 %v281_v2, 16  ;;  %v336_v9 = vshll.u32 %v281_v2, 16  ;;  %v342_v10 = vshll.u32 %v282_v7, 16  ;;  %v346_v11 = vshrl.u32 %v282_v7, 16  ;;  %v286_v12 = vld [vmem:[%s5202_s28 + $0x14] sm:$0x1] }
  0x1b   : > { %v359_v13 = vrot.slane %v357_v3, 4  ;;  %v362_v14 = vrot.slane %v360_v4, 5  ;;  %v368_v15 = vrot.slane %v366_v5, 5  ;;  %v372_v16 = vrot.slane %v370_v6, 4  ;;  %v283_v17 = vld [vmem:[%s5202_s28 + $0x8] sm:$0x1] }
  0x1c   : > { %v335_v18 = vrot.slane %v333_v8, 4  ;;  %v338_v19 = vrot.slane %v336_v9, 5  ;;  %v348_v20 = vrot.slane %v346_v11, 4  ;;  %v291_v21 = vld [vmem:[%s5202_s28 + $0x28] sm:$0xf]  ;;  %v376_v24 = vshll.u32 %v286_v12, 16 }
  0x1d   : > { %v363_v22 = vor.u32 %v362_v14, %v359_v13  ;;  %v373_v23 = vor.u32 %v372_v16, %v368_v15  ;;  %v344_v27 = vrot.slane %v342_v10, 5  ;;  %v414_v28 = vshll.u32 %v291_v21, 16  ;;  %v290_v30 = vld [vmem:[%s5202_s28 + $0x24] sm:$0xf]  ;;  %v287_v35 = vld [vmem:[%s5202_s28 + $0x18] sm:$0xf] }
  0x1e   : > { %v339_v26 = vor.u32 %v338_v19, %v335_v18  ;;  %v418_v29 = vshrl.u32 %v291_v21, 16  ;;  %v352_v32 = vshll.u32 %v283_v17, 16  ;;  %v378_v38 = vrot.slane %v376_v24, 5  ;;  %v288_v40 = vld [vmem:[%s5202_s28 + $0x1c] sm:$0xf] }
  0x1f   : > { %v364_v31 = vrot.slane %v363_v22, 4  ;;  %v349_v34 = vor.u32 %v348_v20, %v344_v27  ;;  %v374_v37 = vrot.slane %v373_v23, 4  ;;  %v405_v39 = vshrl.u32 %v290_v30, 16  ;;  %v292_v42 = vld [vmem:[%s5202_s28 + $0x2c] sm:$0x1] }
  0x20   : > { %v340_v33 = vrot.slane %v339_v26, 4  ;;  %v5226_v43 = vrot.slane %v414_v28, 5  ;;  %v420_v44 = vrot.slane %v418_v29, 4  ;;  %v408_v45 = vshll.u32 %v290_v30, 16  ;;  %v296_v50 = vld [vmem:[%s5202_s28 + $0x3c] sm:$0xf] }
  0x21   : > { %v369_v36 = vsel %vm5213_vm2, %v364_v31, %v368_v15  ;;  %v354_v46 = vrot.slane %v352_v32, 5  ;;  %v407_v47 = vrot.slane %v405_v39, 4  ;;  %v381_v48 = vshrl.u32 %v287_v35, 16  ;;  %v294_v58 = vld [vmem:[%s5202_s28 + $0x34] sm:$0xf] }
  0x22   : > { %720 = vrot.lane.b32.xlu1 %v369_v36, %s5114_s29  ;;  %v345_v41 = vsel %vm5213_vm2, %v340_v33, %v344_v27  ;;  %v384_v49 = vshll.u32 %v287_v35, 16  ;;  %v350_v51 = vrot.slane %v349_v34, 4  ;;  %v410_v52 = vrot.slane %v408_v45, 5  ;;  %v289_v6 = vld [vmem:[%s5202_s28 + $0x20] sm:$0x1] }
  0x23   : > { %716 = vrot.lane.b32.xlu0 %v345_v41, %s5114_s29  ;;  %v390_v53 = vshll.u32 %v288_v40, 16  ;;  %v394_v54 = vshrl.u32 %v288_v40, 16  ;;  %v424_v55 = vshll.u32 %v292_v42, 16  ;;  %v383_v56 = vrot.slane %v381_v48, 4  ;;  %v297_v15 = vld [vmem:[%s5202_s28 + $0x40] sm:$0xf] }
  0x24   : > { %v386_v57 = vrot.slane %v384_v49, 5  ;;  %v421_v59 = vor.u32 %v420_v44, %v5226_v43  ;;  %v453_v61 = vshrl.u32 %v296_v50, 16  ;;  %v456_v62 = vshll.u32 %v296_v50, 16  ;;  %v295_v16 = vld [vmem:[%s5202_s28 + $0x38] sm:$0x1] }
  0x25   : > { %v396_v60 = vrot.slane %v394_v54, 4  ;;  %v379_v63 = vsel %vm5213_vm2, %v374_v37, %v378_v38  ;;  %v411_v0 = vor.u32 %v410_v52, %v407_v47  ;;  %v392_v2 = vrot.slane %v390_v53, 5  ;;  %v300_v20 = vld [vmem:[%s5202_s28 + $0x4c] sm:$0xf]  ;;  %v293_v21 = vld [vmem:[%s5202_s28 + $0x30] sm:$0xf] }
  0x26   : > { %v387_v1 = vor.u32 %v386_v57, %v383_v56  ;;  %v355_v3 = vsel %vm5213_vm2, %v350_v51, %v354_v46  ;;  %v438_v4 = vshll.u32 %v294_v58, 16  ;;  %v442_v5 = vshrl.u32 %v294_v58, 16  ;;  %v299_v24 = vld [vmem:[%s5202_s28 + $0x48] sm:$0xf]  ;;  %v305_v47 = vld [vmem:[%s5202_s28 + $0x60] sm:$0xf] }
  0x27   : > { %v426_v7 = vrot.slane %v424_v55, 5  ;;  %v422_v9 = vrot.slane %v421_v59, 4  ;;  %v455_v10 = vrot.slane %v453_v61, 4  ;;  %v458_v11 = vrot.slane %v456_v62, 5  ;;  %v301_v49 = vld [vmem:[%s5202_s28 + $0x50] sm:$0x1] }
  0x28   : > { %v388_v8 = vrot.slane %v387_v1, 4  ;;  %v397_v12 = vor.u32 %v396_v60, %v392_v2  ;;  %v412_v13 = vrot.slane %v411_v0, 4  ;;  %v400_v17 = vshll.u32 %v289_v6, 16  ;;  %v303_v53 = vld [vmem:[%s5202_s28 + $0x58] sm:$0xf] }
  0x29   : > { %v5244_v18 = vrot.slane %v438_v4, 5  ;;  %v444_v19 = vrot.slane %v442_v5, 4  ;;  %v427_v26 = vsel %vm5213_vm2, %v422_v9, %v426_v7  ;;  %v459_v27 = vor.u32 %v458_v11, %v455_v10  ;;  %v298_v58 = vld [vmem:[%s5202_s28 + $0x44] sm:$0x1]  ;;  %v309_v11 = vld [vmem:[%s5202_s28 + $0x70] sm:$0xf] }
  0x2a   : > { %722 = vrot.lane.b32.xlu1 %v379_v63, %s5114_s29  ;;  %v393_v14 = vsel %vm5213_vm2, %v388_v8, %v392_v2  ;;  %v398_v22 = vrot.slane %v397_v12, 4  ;;  %v402_v23 = vrot.slane %v400_v17, 5  ;;  %v462_v28 = vshll.u32 %v297_v15, 16  ;;  %v302_v2 = vld [vmem:[%s5202_s28 + $0x54] sm:$0xf] }
  0x2b   : > { %718 = vrot.lane.b32.xlu0 %v355_v3, %s5114_s29  ;;  %724 = vrot.lane.b32.xlu2 %v393_v14, %s5114_s29  ;;  %v448_v29 = vshll.u32 %v295_v16, 16  ;;  %v417_v30 = vsel %vm5213_vm2, %v412_v13, %v5226_v43  ;;  %v486_v31 = vshll.u32 %v300_v20, 16  ;;  %v490_v32 = vshrl.u32 %v300_v20, 16  ;;  %v306_v6 = vld [vmem:[%s5202_s28 + $0x64] sm:$0xf] }
  0x2c   : > { %v429_v33 = vshrl.u32 %v293_v21, 16  ;;  %v445_v34 = vor.u32 %v444_v19, %v5244_v18  ;;  %v477_v35 = vshrl.u32 %v299_v24, 16  ;;  %v480_v36 = vshll.u32 %v299_v24, 16  ;;  %v308_v20 = vld [vmem:[%s5202_s28 + $0x6c] sm:$0xf] }
  0x2d   : > { %v432_v37 = vshll.u32 %v293_v21, 16  ;;  %v466_v38 = vshrl.u32 %v297_v15, 16  ;;  %v403_v39 = vsel %vm5213_vm2, %v398_v22, %v402_v23  ;;  %v464_v41 = vrot.slane %v462_v28, 5  ;;  %v304_v15 = vld [vmem:[%s5202_s28 + $0x5c] sm:$0x1] }
  0x2e   : > { %v431_v40 = vrot.slane %v429_v33, 4  ;;  %v460_v43 = vrot.slane %v459_v27, 4  ;;  %v450_v44 = vrot.slane %v448_v29, 5  ;;  %v5259_v45 = vrot.slane %v486_v31, 5 }
  0x2f   : > { %v434_v42 = vrot.slane %v432_v37, 5  ;;  %v492_v46 = vrot.slane %v490_v32, 4  ;;  %v446_v48 = vrot.slane %v445_v34, 4  ;;  %v479_v50 = vrot.slane %v477_v35, 4 }
  0x30   : > { %v482_v51 = vrot.slane %v480_v36, 5  ;;  %v468_v54 = vrot.slane %v466_v38, 4  ;;  %v525_v56 = vshrl.u32 %v305_v47, 16  ;;  %v528_v57 = vshll.u32 %v305_v47, 16  ;;  %v312_v47 = vld [vmem:[%s5202_s28 + $0x7c] sm:$0xf] }
  0x31   : > { %v435_v52 = vor.u32 %v434_v42, %v431_v40  ;;  %v465_v59 = vsel %vm5213_vm2, %v460_v43, %v464_v41  ;;  %v493_v60 = vor.u32 %v492_v46, %v5259_v45  ;;  %v496_v61 = vshll.u32 %v301_v49, 16  ;;  %v314_v42 = vld [vmem:[%s5202_s28 + $0x84] sm:$0xf]  ;;  %v307_v49 = vld [vmem:[%s5202_s28 + $0x68] sm:$0x1] }
  0x32   : > { %730 = vrot.lane.b32.xlu1 %v427_v26, %s5114_s29  ;;  %v451_v62 = vsel %vm5213_vm2, %v446_v48, %v450_v44  ;;  %v483_v63 = vor.u32 %v482_v51, %v479_v50  ;;  %v510_v0 = vshll.u32 %v303_v53, 16  ;;  %v514_v1 = vshrl.u32 %v303_v53, 16 }
  0x33   : > { %728 = vrot.lane.b32.xlu0 %v417_v30, %s5114_s29  ;;  %726 = vrot.lane.b32.xlu2 %v403_v39, %s5114_s29  ;;  %v436_v55 = vrot.slane %v435_v52, 4  ;;  %v469_v4 = vor.u32 %v468_v54, %v464_v41  ;;  %v472_v5 = vshll.u32 %v298_v58, 16  ;;  %v527_v7 = vrot.slane %v525_v56, 4  ;;  %v310_v41 = vld [vmem:[%s5202_s28 + $0x74] sm:$0x1] }
  0x34   : > { %v530_v8 = vrot.slane %v528_v57, 5  ;;  %v494_v9 = vrot.slane %v493_v60, 4  ;;  %v498_v10 = vrot.slane %v496_v61, 5  ;;  %v501_v12 = vshrl.u32 %v302_v2, 16  ;;  %v311_v54 = vld [vmem:[%s5202_s28 + $0x78] sm:$0xf] }
  0x35   : > { %v441_v3 = vsel %vm5213_vm2, %v436_v55, %v5244_v18  ;;  %v504_v13 = vshll.u32 %v302_v2, 16  ;;  %v484_v14 = vrot.slane %v483_v63, 4  ;;  %v5281_v16 = vrot.slane %v510_v0, 5 }
  0x36   : > { %v516_v17 = vrot.slane %v514_v1, 4  ;;  %v470_v18 = vrot.slane %v469_v4, 4  ;;  %v474_v19 = vrot.slane %v472_v5, 5  ;;  %v503_v21 = vrot.slane %v501_v12, 4  ;;  %v315_v4 = vld [vmem:[%s5202_s28 + $0x88] sm:$0xf] }
  0x37   : > { %v506_v22 = vrot.slane %v504_v13, 5  ;;  %v531_v23 = vor.u32 %v530_v8, %v527_v7  ;;  %v534_v24 = vshll.u32 %v306_v6, 16  ;;  %v558_v26 = vshll.u32 %v309_v11, 16 }
  0x38   : > { %v562_v27 = vshrl.u32 %v309_v11, 16  ;;  %v499_v28 = vsel %vm5213_vm2, %v494_v9, %v498_v10  ;;  %v520_v29 = vshll.u32 %v304_v15, 16  ;;  %v489_v30 = vsel %vm5213_vm2, %v484_v14, %v5259_v45  ;;  %v318_v9 = vld [vmem:[%s5202_s28 + $0x94] sm:$0xf]  ;;  %v313_v11 = vld [vmem:[%s5202_s28 + $0x80] sm:$0x1] }
  0x39   : > { %v517_v31 = vor.u32 %v516_v17, %v5281_v16  ;;  %v549_v32 = vshrl.u32 %v308_v20, 16  ;;  %v552_v33 = vshll.u32 %v308_v20, 16  ;;  %v538_v34 = vshrl.u32 %v306_v6, 16  ;;  %v317_v14 = vld [vmem:[%s5202_s28 + $0x90] sm:$0xf] }
  0x3a   : > { %736 = vrot.lane.b32.xlu1 %v465_v59, %s5114_s29  ;;  %v475_v35 = vsel %vm5213_vm2, %v470_v18, %v474_v19  ;;  %v507_v36 = vor.u32 %v506_v22, %v503_v21  ;;  %v532_v37 = vrot.slane %v531_v23, 4  ;;  %v536_v38 = vrot.slane %v534_v24, 5 }
  0x3b   : > { %734 = vrot.lane.b32.xlu0 %v451_v62, %s5114_s29  ;;  %732 = vrot.lane.b32.xlu2 %v441_v3, %s5114_s29  ;;  %v5293_v39 = vrot.slane %v558_v26, 5  ;;  %v564_v40 = vrot.slane %v562_v27, 4  ;;  %v518_v43 = vrot.slane %v517_v31, 4  ;;  %v522_v44 = vrot.slane %v520_v29, 5 }
  0x3c   : > { %v551_v45 = vrot.slane %v549_v32, 4  ;;  %v554_v46 = vrot.slane %v552_v33, 5  ;;  %v508_v48 = vrot.slane %v507_v36, 4  ;;  %v540_v50 = vrot.slane %v538_v34, 4 }
  0x3d   : > { %v537_v51 = vsel %vm5213_vm2, %v532_v37, %v536_v38  ;;  %v565_v52 = vor.u32 %v564_v40, %v5293_v39  ;;  %v568_v53 = vshll.u32 %v310_v41, 16  ;;  %v597_v55 = vshrl.u32 %v314_v42, 16  ;;  %v319_v37 = vld [vmem:[%s5202_s28 + $0x98] sm:$0x1]  ;;  %v323_v40 = vld [vmem:[%s5202_s28 + $0xa8] sm:$0xf] }
  0x3e   : > { %v600_v56 = vshll.u32 %v314_v42, 16  ;;  %v582_v57 = vshll.u32 %v312_v47, 16  ;;  %v586_v58 = vshrl.u32 %v312_v47, 16  ;;  %v523_v59 = vsel %vm5213_vm2, %v518_v43, %v522_v44  ;;  %v321_v42 = vld [vmem:[%s5202_s28 + $0xa0] sm:$0xf] }
  0x3f   : > { %v555_v60 = vor.u32 %v554_v46, %v551_v45  ;;  %v544_v61 = vshll.u32 %v307_v49, 16  ;;  %v513_v62 = vsel %vm5213_vm2, %v508_v48, %v5281_v16  ;;  %v541_v63 = vor.u32 %v540_v50, %v536_v38  ;;  %v316_v43 = vld [vmem:[%s5202_s28 + $0x8c] sm:$0x1]  ;;  %v320_v47 = vld [vmem:[%s5202_s28 + $0x9c] sm:$0xf] }
  0x40   : > { %v573_v0 = vshrl.u32 %v311_v54, 16  ;;  %v576_v1 = vshll.u32 %v311_v54, 16  ;;  %v566_v2 = vrot.slane %v565_v52, 4  ;;  %v570_v3 = vrot.slane %v568_v53, 5 }
  0x41   : > { %v599_v5 = vrot.slane %v597_v55, 4  ;;  %v602_v6 = vrot.slane %v600_v56, 5  ;;  %v5313_v7 = vrot.slane %v582_v57, 5  ;;  %v588_v8 = vrot.slane %v586_v58, 4 }
  0x42   : > { %742 = vrot.lane.b32.xlu1 %v499_v28, %s5114_s29  ;;  %v556_v10 = vrot.slane %v555_v60, 4  ;;  %v542_v12 = vrot.slane %v541_v63, 4  ;;  %v546_v13 = vrot.slane %v544_v61, 5  ;;  %v575_v15 = vrot.slane %v573_v0, 4 }
  0x43   : > { %740 = vrot.lane.b32.xlu0 %v489_v30, %s5114_s29  ;;  %738 = vrot.lane.b32.xlu2 %v475_v35, %s5114_s29  ;;  %v578_v16 = vrot.slane %v576_v1, 5  ;;  %v606_v17 = vshll.u32 %v315_v4, 16  ;;  %v630_v18 = vshll.u32 %v318_v9, 16  ;;  %v634_v19 = vshrl.u32 %v318_v9, 16  ;;  %v322_v1 = vld [vmem:[%s5202_s28 + $0xa4] sm:$0x1] }
  0x44   : > { %v571_v20 = vsel %vm5213_vm2, %v566_v2, %v570_v3  ;;  %v603_v21 = vor.u32 %v602_v6, %v599_v5  ;;  %v589_v22 = vor.u32 %v588_v8, %v5313_v7  ;;  %v592_v23 = vshll.u32 %v313_v11, 16  ;;  %v327_v5 = vld [vmem:[%s5202_s28 + $0xb8] sm:$0xf]  ;;  %v326_v8 = vld [vmem:[%s5202_s28 + $0xb4] sm:$0xf] }
  0x45   : > { %v561_v24 = vsel %vm5213_vm2, %v556_v10, %v5293_v39  ;;  %v621_v26 = vshrl.u32 %v317_v14, 16  ;;  %v624_v27 = vshll.u32 %v317_v14, 16  ;;  %v610_v28 = vshrl.u32 %v315_v4, 16 }
  0x46   : > { %v547_v29 = vsel %vm5213_vm2, %v542_v12, %v546_v13  ;;  %v579_v30 = vor.u32 %v578_v16, %v575_v15  ;;  %v5328_v31 = vrot.slane %v630_v18, 5  ;;  %v636_v32 = vrot.slane %v634_v19, 4 }
  0x47   : > { %v604_v33 = vrot.slane %v603_v21, 4  ;;  %v608_v34 = vrot.slane %v606_v17, 5  ;;  %v590_v35 = vrot.slane %v589_v22, 4  ;;  %v594_v36 = vrot.slane %v592_v23, 5 }
  0x48   : > { %v623_v38 = vrot.slane %v621_v26, 4  ;;  %v626_v39 = vrot.slane %v624_v27, 5  ;;  %v580_v41 = vrot.slane %v579_v30, 4  ;;  %v612_v44 = vrot.slane %v610_v28, 4 }
  0x49   : > { %v637_v45 = vor.u32 %v636_v32, %v5328_v31  ;;  %v640_v46 = vshll.u32 %v319_v37, 16  ;;  %v609_v48 = vsel %vm5213_vm2, %v604_v33, %v608_v34  ;;  %v595_v49 = vsel %vm5213_vm2, %v590_v35, %v594_v36  ;;  %v325_v36 = vld [vmem:[%s5202_s28 + $0xb0] sm:$0x1] }
  0x4a   : > { %748 = vrot.lane.b32.xlu1 %v537_v51, %s5114_s29  ;;  %v669_v50 = vshrl.u32 %v323_v40, 16  ;;  %v672_v51 = vshll.u32 %v323_v40, 16  ;;  %v627_v52 = vor.u32 %v626_v39, %v623_v38  ;;  %v654_v53 = vshll.u32 %v321_v42, 16 }
  0x4b   : > { %746 = vrot.lane.b32.xlu0 %v523_v59, %s5114_s29  ;;  %744 = vrot.lane.b32.xlu2 %v513_v62, %s5114_s29  ;;  %v658_v54 = vshrl.u32 %v321_v42, 16  ;;  %v616_v55 = vshll.u32 %v316_v43, 16  ;;  %v585_v56 = vsel %vm5213_vm2, %v580_v41, %v5313_v7  ;;  %v613_v57 = vor.u32 %v612_v44, %v608_v34  ;;  %v324_v62 = vld [vmem:[%s5202_s28 + $0xac] sm:$0xf] }
  0x4c   : > { %v645_v58 = vshrl.u32 %v320_v47, 16  ;;  %v648_v59 = vshll.u32 %v320_v47, 16  ;;  %v638_v60 = vrot.slane %v637_v45, 4  ;;  %v642_v61 = vrot.slane %v640_v46, 5 }
  0x4d   : > { %v671_v63 = vrot.slane %v669_v50, 4  ;;  %v674_v0 = vrot.slane %v672_v51, 5  ;;  %v628_v2 = vrot.slane %v627_v52, 4  ;;  %v656_v3 = vrot.slane %v654_v53, 5  ;;  %v848_v52 = vld [vmem:[%s5202_s28 + $0xc] sm:$0xe] }
  0x4e   : > { %v660_v4 = vrot.slane %v658_v54, 4  ;;  %v614_v6 = vrot.slane %v613_v57, 4  ;;  %v618_v7 = vrot.slane %v616_v55, 5  ;;  %v647_v9 = vrot.slane %v645_v58, 4  ;;  %v849_v54 = vld [vmem:[%s5202_s28 + $0x10] sm:$0xf] }
  0x4f   : > { %v650_v10 = vrot.slane %v648_v59, 5  ;;  %v643_v11 = vsel %vm5213_vm2, %v638_v60, %v642_v61  ;;  %v678_v12 = vshll.u32 %v324_v62, 16  ;;  %v675_v13 = vor.u32 %v674_v0, %v671_v63  ;;  %v847_v55 = vld [vmem:[%s5202_s28 + $0x8] sm:$0x1]  ;;  %v845_v59 = vld [vmem:[%s5202_s28] sm:$0xe] }
  0x50   : > { %v664_v14 = vshll.u32 %v322_v1, 16  ;;  %v702_v15 = vshll.u32 %v327_v5, 16  ;;  %v706_v16 = vshrl.u32 %v327_v5, 16  ;;  %v633_v17 = vsel %vm5213_vm2, %v628_v2, %v5328_v31  ;;  %v328_v31 = vld [vmem:[%s5202_s28 + $0xbc] sm:$0x1] }
  0x51   : > { %v661_v18 = vor.u32 %v660_v4, %v656_v3  ;;  %v693_v19 = vshrl.u32 %v326_v8, 16  ;;  %v682_v21 = vshrl.u32 %v324_v62, 16  ;;  %v619_v22 = vsel %vm5213_vm2, %v614_v6, %v618_v7  ;;  %v220_v62 = vld [vmem:[%s5202_s28 + $0x18] sm:$0xf]  ;;  %v852_v1 = vld [vmem:[%s5202_s28 + $0x1c] sm:$0xf] }
  0x52   : > { %754 = vrot.lane.b32.xlu1 %v571_v20, %s5114_s29  ;;  %v696_v20 = vshll.u32 %v326_v8, 16  ;;  %v651_v23 = vor.u32 %v650_v10, %v647_v9  ;;  %v680_v26 = vrot.slane %v678_v12, 5  ;;  %v704_v27 = vrot.slane %v702_v15, 5  ;;  %v853_v7 = vld [vmem:[%s5202_s28 + $0x20] sm:$0x1] }
  0x53   : > { %752 = vrot.lane.b32.xlu0 %v561_v24, %s5114_s29  ;;  %750 = vrot.lane.b32.xlu2 %v547_v29, %s5114_s29  ;;  %v676_v24 = vrot.slane %v675_v13, 4  ;;  %v708_v28 = vrot.slane %v706_v16, 4  ;;  %v662_v29 = vrot.slane %v661_v18, 4  ;;  %v666_v30 = vrot.slane %v664_v14, 5  ;;  %v851_v8 = vld [vmem:[%s5202_s28 + $0x18] sm:$0xe] }
  0x54   : > { %v695_v32 = vrot.slane %v693_v19, 4  ;;  %v698_v33 = vrot.slane %v696_v20, 5  ;;  %v652_v34 = vrot.slane %v651_v23, 4  ;;  %v684_v35 = vrot.slane %v682_v21, 4  ;;  %v850_v10 = vld [vmem:[%s5202_s28 + $0x14] sm:$0x1] }
  0x55   : > { %v681_v37 = vsel %vm5213_vm2, %v676_v24, %v680_v26  ;;  %v709_v38 = vor.u32 %v708_v28, %v704_v27  ;;  %v712_v39 = vshll.u32 %v328_v31, 16  ;;  %v667_v40 = vsel %vm5213_vm2, %v662_v29, %v666_v30  ;;  %v855_v14 = vld [vmem:[%s5202_s28 + $0x28] sm:$0xf]  ;;  %v857_v18 = vld [vmem:[%s5202_s28 + $0x30] sm:$0xe] }
  0x56   : > { %v699_v41 = vor.u32 %v698_v33, %v695_v32  ;;  %v657_v42 = vsel %vm5213_vm2, %v652_v34, %v656_v3  ;;  %v685_v43 = vor.u32 %v684_v35, %v680_v26  ;;  %v688_v44 = vshll.u32 %v325_v36, 16  ;;  %v858_v20 = vld [vmem:[%s5202_s28 + $0x34] sm:$0xf]  ;;  %v854_v24 = vld [vmem:[%s5202_s28 + $0x24] sm:$0xe] }
  0x57   : > { %v710_v45 = vrot.slane %v709_v38, 4  ;;  %v714_v46 = vrot.slane %v712_v39, 5  ;;  %v4466_v58 = vrot.slane %v848_v52, 9  ;;  %v953_v60 = vrot.slane %v849_v54, 5  ;;  %v861_v30 = vld [vmem:[%s5202_s28 + $0x40] sm:$0xf] }
  0x58   : > { %v700_v47 = vrot.slane %v699_v41, 4  ;;  %v690_v50 = vrot.slane %v688_v44, 5  ;;  %v949_v61 = vrot.slane %v847_v55, 5  ;;  %v5115_v2 = vmov 0   ;;  %v862_v36 = vld [vmem:[%s5202_s28 + $0x44] sm:$0x1] }
  0x59   : > { %v715_v51 = vsel %vm5213_vm2, %v710_v45, %v714_v46  ;;  %188 = vst.msk [vmem:[#allocation2 + $0x10] sm:$0xf] %vm183_vm5, %v5115_v2  ;;  %v4465_v3 = vrot.slane %v845_v59, 9  ;;  %v954_v4 = vsel %vm5387_vm6, %v4466_v58, %v953_v60  ;;  %v960_v5 = vrot.slane %v852_v1, 5  ;;  %v859_v39 = vld [vmem:[%s5202_s28 + $0x38] sm:$0x1] }
  0x5a   : > { %760 = vrot.lane.b32.xlu1 %v609_v48, %s5114_s29  ;;  %v846_v48 = vld [vmem:[%s5202_s28 + $0x4] sm:$0xf]  ;;  %v705_v53 = vsel %vm5213_vm2, %v700_v47, %v704_v27  ;;  %253 = vst.msk [vmem:[#allocation2 + $0x10] sm:$0xf] %vm248_vm7, %v220_v62  ;;  %v963_v12 = vrot.slane %v853_v7, 5  ;;  %v4467_v13 = vrot.slane %v851_v8, 9 }
  0x5b   : > { %758 = vrot.lane.b32.xlu0 %v595_v49, %s5114_s29  ;;  %756 = vrot.lane.b32.xlu2 %v585_v56, %s5114_s29  ;;  %v686_v49 = vrot.slane %v685_v43, 4  ;;  %v946_v56 = vrot.slane %v846_v48, 5  ;;  %184 = vst.msk [vmem:[#allocation2] sm:$0xf] %vm183_vm5, %v5115_v2  ;;  %v955_v15 = vrot.slane %v953_v60, 4  ;;  %v956_v16 = vrot.slane %v850_v10, 5 }
  0x5c   : > { %185 = vst.msk [vmem:[#allocation2 + $0x4] sm:$0xf] %vm183_vm5, %v5115_v2  ;;  %v961_v19 = vsel %vm5387_vm6, %v4467_v13, %v960_v5  ;;  %v967_v21 = vrot.slane %v855_v14, 5  ;;  %v4469_v26 = vrot.slane %v857_v18, 9  ;;  %v974_v27 = vrot.slane %v858_v20, 5 }
  0x5d   : > { %v691_v57 = vsel %vm5213_vm2, %v686_v49, %v690_v50  ;;  %v948_v0 = vrot.slane %v946_v56, 4  ;;  %186 = vst.msk [vmem:[#allocation2 + $0x8] sm:$0xf] %vm183_vm5, %v5115_v2  ;;  %v947_v9 = vsel %vm5387_vm6, %v4465_v3, %v946_v56  ;;  %v957_v23 = vsel %vm5387_vm6, %v955_v15, %v956_v16  ;;  %v864_v43 = vld [vmem:[%s5202_s28 + $0x4c] sm:$0xf] }
  0x5e   : > { %187 = vst.msk [vmem:[#allocation2 + $0xc] sm:$0xf] %vm183_vm5, %v5115_v2  ;;  %v969_v28 = vrot.slane %v967_v21, 4  ;;  %v4468_v31 = vrot.slane %v854_v24, 9  ;;  %v975_v33 = vsel %vm5387_vm6, %v4469_v26, %v974_v27  ;;  %v981_v34 = vrot.slane %v861_v30, 5 }
  0x5f   : > { %v950_v6 = vsel %vm5387_vm6, %v948_v0, %v949_v61  ;;  %189 = vst.msk [vmem:[#allocation2 + $0x14] sm:$0xf] %vm183_vm5, %v5115_v2  ;;  %v984_v41 = vrot.slane %v862_v36, 5  ;;  %v976_v44 = vrot.slane %v974_v27, 4  ;;  %v977_v45 = vrot.slane %v859_v39, 5 }
  0x60   : > { %190 = vst.msk [vmem:[#allocation2 + $0x18] sm:$0xf] %vm183_vm5, %v5115_v2  ;;  %v968_v38 = vsel %vm5387_vm6, %v4468_v31, %v967_v21  ;;  %v866_v48 = vld [vmem:[%s5202_s28 + $0x54] sm:$0xe]  ;;  %v867_v50 = vld [vmem:[%s5202_s28 + $0x58] sm:$0xf] }
  0x61   : > { %191 = vst.msk [vmem:[#allocation2 + $0x1c] sm:$0xf] %vm183_vm5, %v5115_v2  ;;  %v865_v52 = vld [vmem:[%s5202_s28 + $0x50] sm:$0x1]  ;;  %v863_v54 = vld [vmem:[%s5202_s28 + $0x48] sm:$0xe] }
  0x62   : > { %766 = vrot.lane.b32.xlu1 %v643_v11, %s5114_s29  ;;  %v962_v11 = vrot.slane %v960_v5, 4  ;;  %192 = vst.msk [vmem:[#allocation2 + $0x20] sm:$0xf] %vm183_vm5, %v5115_v2  ;;  %v218_v55 = vld [vmem:[%s5202_s28 + $0xc] sm:$0xf]  ;;  %v4472_v56 = vrot.slane %v866_v48, 9 }
  0x63   : > { %764 = vrot.lane.b32.xlu0 %v633_v17, %s5114_s29  ;;  %762 = vrot.lane.b32.xlu2 %v619_v22, %s5114_s29  ;;  %193 = vst.msk [vmem:[#allocation2 + $0x24] sm:$0xf] %vm183_vm5, %v5115_v2  ;;  %v856_v22 = vld [vmem:[%s5202_s28 + $0x2c] sm:$0x1]  ;;  %v991_v60 = vrot.slane %v865_v52, 5  ;;  %v4471_v1 = vrot.slane %v863_v54, 9 }
  0x64   : > { %v964_v17 = vsel %vm5387_vm6, %v962_v11, %v963_v12  ;;  %194 = vst.msk [vmem:[#allocation2 + $0x28] sm:$0xf] %vm183_vm5, %v5115_v2  ;;  %v970_v29 = vrot.slane %v856_v22, 5  ;;  %v870_v61 = vld [vmem:[%s5202_s28 + $0x64] sm:$0xf] }
  0x65   : > { %195 = vst.msk [vmem:[#allocation2 + $0x2c] sm:$0xf] %vm183_vm5, %v5115_v2  ;;  %v216_v0 = vld [vmem:[%s5202_s28] sm:$0xf]  ;;  %v221_v5 = vld [vmem:[%s5202_s28 + $0x1c] sm:$0xf] }
  0x66   : > { %196 = vst.msk [vmem:[#allocation2 + $0x30] sm:$0xf] %vm183_vm5, %v5115_v2  ;;  %v971_v35 = vsel %vm5387_vm6, %v969_v28, %v970_v29  ;;  %v871_v8 = vld [vmem:[%s5202_s28 + $0x68] sm:$0x1]  ;;  %v869_v10 = vld [vmem:[%s5202_s28 + $0x60] sm:$0xe] }
  0x67   : > { %197 = vst.msk [vmem:[#allocation2 + $0x34] sm:$0xf] %vm183_vm5, %v5115_v2  ;;  %v868_v12 = vld [vmem:[%s5202_s28 + $0x5c] sm:$0x1]  ;;  %v217_v13 = vld [vmem:[%s5202_s28 + $0x4] sm:$0xf] }
  0x68   : > { %198 = vst.msk [vmem:[#allocation2 + $0x38] sm:$0xf] %vm183_vm5, %v5115_v2  ;;  %v1005_v15 = vrot.slane %v871_v8, 5  ;;  %v224_v18 = vld [vmem:[%s5202_s28 + $0x30] sm:$0xf]  ;;  %v998_v22 = vrot.slane %v868_v12, 5 }
  0x69   : > { %199 = vst.msk [vmem:[#allocation2 + $0x3c] sm:$0xf] %vm183_vm5, %v5115_v2  ;;  %v873_v20 = vld [vmem:[%s5202_s28 + $0x70] sm:$0xf]  ;;  %v222_v27 = vld [vmem:[%s5202_s28 + $0x24] sm:$0xf] }
  0x6a   : > { %772 = vrot.lane.b32.xlu1 %v681_v37, %s5114_s29  ;;  %200 = vst.msk [vmem:[#allocation2 + $0x40] sm:$0xf] %vm183_vm5, %v5115_v2  ;;  %v860_v37 = vld [vmem:[%s5202_s28 + $0x3c] sm:$0xe]  ;;  %v875_v28 = vld [vmem:[%s5202_s28 + $0x78] sm:$0xe] }
  0x6b   : > { %770 = vrot.lane.b32.xlu0 %v667_v40, %s5114_s29  ;;  %768 = vrot.lane.b32.xlu2 %v657_v42, %s5114_s29  ;;  %201 = vst.msk [vmem:[#allocation2 + $0x44] sm:$0xf] %vm183_vm5, %v5115_v2  ;;  %v983_v40 = vrot.slane %v981_v34, 4  ;;  %v4470_v42 = vrot.slane %v860_v37, 9  ;;  %v876_v30 = vld [vmem:[%s5202_s28 + $0x7c] sm:$0xf] }
  0x6c   : > { %202 = vst.msk [vmem:[#allocation2 + $0x48] sm:$0xf] %vm183_vm5, %v5115_v2  ;;  %v1009_v31 = vrot.slane %v873_v20, 5  ;;  %v4475_v36 = vrot.slane %v875_v28, 9  ;;  %v1016_v37 = vrot.slane %v876_v30, 5 }
  0x6d   : > { %203 = vst.msk [vmem:[#allocation2 + $0x4c] sm:$0xf] %vm183_vm5, %v5115_v2  ;;  %v985_v47 = vsel %vm5387_vm6, %v983_v40, %v984_v41  ;;  %v982_v49 = vsel %vm5387_vm6, %v4470_v42, %v981_v34  ;;  %v879_v41 = vld [vmem:[%s5202_s28 + $0x88] sm:$0xf]  ;;  %v878_v52 = vld [vmem:[%s5202_s28 + $0x84] sm:$0xe] }
  0x6e   : > { %204 = vst.msk [vmem:[#allocation2 + $0x50] sm:$0xf] %vm183_vm5, %v5115_v2  ;;  %v1011_v39 = vrot.slane %v1009_v31, 4  ;;  %v1023_v48 = vrot.slane %v879_v41, 5  ;;  %v232_v8 = vld [vmem:[%s5202_s28 + $0x60] sm:$0xf] }
  0x6f   : > { %205 = vst.msk [vmem:[#allocation2 + $0x54] sm:$0xf] %vm183_vm5, %v5115_v2  ;;  %v883_v12 = vld [vmem:[%s5202_s28 + $0x98] sm:$0x1]  ;;  %v239_v30 = vld [vmem:[%s5202_s28 + $0x88] sm:$0xf] }
  0x70   : > { %206 = vst.msk [vmem:[#allocation2 + $0x58] sm:$0xf] %vm183_vm5, %v5115_v2  ;;  %v1033_v20 = vrot.slane %v883_v12, 5  ;;  %v4483_v12 = vld [vmem:[%s5202_s28 + $0x18] sm:$0xf] }
  0x71   : > { %207 = vst.msk [vmem:[#allocation2 + $0x5c] sm:$0xf] %vm183_vm5, %v5115_v2 }
  0x72   : > { %778 = vrot.lane.b32.xlu1 %v715_v51, %s5114_s29  ;;  %208 = vst.msk [vmem:[#allocation2 + $0x60] sm:$0xf] %vm183_vm5, %v5115_v2  ;;  %v988_v51 = vrot.slane %v864_v43, 5  ;;  %v226_v43 = vld [vmem:[%s5202_s28 + $0x3c] sm:$0xf] }
  0x73   : > { %776 = vrot.lane.b32.xlu0 %v705_v53, %s5114_s29  ;;  %774 = vrot.lane.b32.xlu2 %v691_v57, %s5114_s29  ;;  %209 = vst.msk [vmem:[#allocation2 + $0x64] sm:$0xf] %vm183_vm5, %v5115_v2  ;;  %v978_v53 = vsel %vm5387_vm6, %v976_v44, %v977_v45  ;;  %v995_v57 = vrot.slane %v867_v50, 5  ;;  %v225_v45 = vld [vmem:[%s5202_s28 + $0x34] sm:$0xf]  ;;  %s6610_s29 = scalar_lea.vmem %s7236_s2, %s5000_s25  ;;  %s4462_s25 = sshll.u32 %s169_s24, 3 }
  0x74   : > { %210 = vst.msk [vmem:[#allocation2 + $0x68] sm:$0xf] %vm183_vm5, %v5115_v2  ;;  %v990_v59 = vrot.slane %v988_v51, 4  ;;  %v989_v11 = vsel %vm5387_vm6, %v4471_v1, %v988_v51  ;;  %v880_v51 = vld [vmem:[%s5202_s28 + $0x8c] sm:$0x1]  ;;  %v1018_v1 = vrot.slane %v1016_v37, 4 }
  0x75   : > { %211 = vst.msk [vmem:[#allocation2 + $0x6c] sm:$0xf] %vm183_vm5, %v5115_v2  ;;  %v997_v21 = vrot.slane %v995_v57, 4  ;;  %v3677_v63 = vld [vmem:[%s6610_s29 + $0x3c] sm:$0x1] }
  0x76   : > { %212 = vst.msk [vmem:[#allocation2 + $0x70] sm:$0xf] %vm183_vm5, %v5115_v2  ;;  %v992_v7 = vsel %vm5387_vm6, %v990_v59, %v991_v60  ;;  %v228_v60 = vld [vmem:[%s5202_s28 + $0x48] sm:$0xf] }
  0x77   : > { %213 = vst.msk [vmem:[#allocation2 + $0x74] sm:$0xf] %vm183_vm5, %v5115_v2  ;;  %v999_v34 = vsel %vm5387_vm6, %v997_v21, %v998_v22  ;;  %v888_v21 = vld [vmem:[%s5202_s28 + $0xac] sm:$0xf] }
  0x78   : > { %214 = vst.msk [vmem:[#allocation2 + $0x78] sm:$0xf] %vm183_vm5, %v5115_v2 }
  0x79   : > { %215 = vst.msk [vmem:[#allocation2 + $0x7c] sm:$0xf] %vm183_vm5, %v5115_v2  ;;  %vm3716_vm5 = vsmask.f32 7938 }
  0x7a   : > { %1060 = vrot.lane.b32.xlu1 %v954_v4, %s5116_s30  ;;  %251 = vst.msk [vmem:[#allocation2 + $0x8] sm:$0xf] %vm248_vm7, %v218_v55  ;;  %v996_v4 = vsel %vm5387_vm6, %v4472_v56, %v995_v57  ;;  %v877_v55 = vld [vmem:[%s5202_s28 + $0x80] sm:$0x1]  ;;  %v1025_v56 = vrot.slane %v1023_v48, 4  ;;  %v1026_v57 = vrot.slane %v880_v51, 5 }
  0x7b   : > { %1058 = vrot.lane.b32.xlu0 %v950_v6, %s5116_s30  ;;  %1056 = vrot.lane.b32.xlu2 %v947_v9, %s5116_s30  ;;  %v1002_v6 = vrot.slane %v870_v61, 5  ;;  %249 = vst.msk [vmem:[#allocation2] sm:$0xf] %vm248_vm7, %v216_v0  ;;  %v219_v9 = vld [vmem:[%s5202_s28 + $0x10] sm:$0xf] }
  0x7c   : > { %254 = vst.msk [vmem:[#allocation2 + $0x14] sm:$0xf] %vm248_vm7, %v221_v5  ;;  %v882_v61 = vld [vmem:[%s5202_s28 + $0x94] sm:$0xf]  ;;  %v233_v0 = vld [vmem:[%s5202_s28 + $0x64] sm:$0xf] }
  0x7d   : > { %v1004_v14 = vrot.slane %v1002_v6, 4  ;;  %252 = vst.msk [vmem:[#allocation2 + $0xc] sm:$0xf] %vm248_vm7, %v219_v9 }
  0x7e   : > { %250 = vst.msk [vmem:[#allocation2 + $0x4] sm:$0xf] %vm248_vm7, %v217_v13 }
  0x7f   : > { %v1006_v26 = vsel %vm5387_vm6, %v1004_v14, %v1005_v15  ;;  %257 = vst.msk [vmem:[#allocation2 + $0x20] sm:$0xf] %vm248_vm7, %v224_v18  ;;  %v236_v14 = vld [vmem:[%s5202_s28 + $0x78] sm:$0xf]  ;;  %v881_v15 = vld [vmem:[%s5202_s28 + $0x90] sm:$0xe] }
  0x80   : > { %255 = vst.msk [vmem:[#allocation2 + $0x18] sm:$0xf] %vm248_vm7, %v222_v27  ;;  %v234_v27 = vld [vmem:[%s5202_s28 + $0x6c] sm:$0xf] }
  0x81   : > { %259 = vst.msk [vmem:[#allocation2 + $0x28] sm:$0xf] %vm248_vm7, %v226_v43 }
  0x82   : > { %1066 = vrot.lane.b32.xlu1 %v964_v17, %s5116_s30  ;;  %v4473_v17 = vrot.slane %v869_v10, 9  ;;  %258 = vst.msk [vmem:[#allocation2 + $0x24] sm:$0xf] %vm248_vm7, %v225_v45  ;;  %v1030_v10 = vrot.slane %v882_v61, 5 }
  0x83   : > { %1064 = vrot.lane.b32.xlu0 %v961_v19, %s5116_s30  ;;  %1062 = vrot.lane.b32.xlu2 %v957_v23, %s5116_s30  ;;  %v223_v23 = vld [vmem:[%s5202_s28 + $0x28] sm:$0xf]  ;;  %261 = vst.msk [vmem:[#allocation2 + $0x30] sm:$0xf] %vm248_vm7, %v228_v60 }
  0x84   : > { %v1003_v29 = vsel %vm5387_vm6, %v4473_v17, %v1002_v6  ;;  %256 = vst.msk [vmem:[#allocation2 + $0x1c] sm:$0xf] %vm248_vm7, %v223_v23  ;;  %v1027_v6 = vsel %vm5387_vm6, %v1025_v56, %v1026_v57  ;;  %v235_v23 = vld [vmem:[%s5202_s28 + $0x70] sm:$0xf]  ;;  %v244_v56 = vld [vmem:[%s5202_s28 + $0xa8] sm:$0xf] }
  0x85   : > { %v725_v32 = vpop.permute.xlu2 %724  ;;  %266 = vst.msk [vmem:[#allocation2 + $0x44] sm:$0xf] %vm248_vm7, %v233_v0  ;;  %v890_v57 = vld [vmem:[%s5202_s28 + $0xb4] sm:$0xe]  ;;  %v243_v0 = vld [vmem:[%s5202_s28 + $0xa0] sm:$0xf] }
  0x86   : > { %817 = vst.msk [vmem:[#allocation2 + $0x10] sm:$0xf] %vm812_vm8, %v725_v32  ;;  %v874_v32 = vld [vmem:[%s5202_s28 + $0x74] sm:$0x1] }
  0x87   : > { %v1012_v40 = vrot.slane %v874_v32, 5  ;;  %265 = vst.msk [vmem:[#allocation2 + $0x40] sm:$0xf] %vm248_vm7, %v232_v8  ;;  %v889_v32 = vld [vmem:[%s5202_s28 + $0xb0] sm:$0x1] }
  0x88   : > { %269 = vst.msk [vmem:[#allocation2 + $0x50] sm:$0xf] %vm248_vm7, %v236_v14 }
  0x89   : > { %v1013_v50 = vsel %vm5387_vm6, %v1011_v39, %v1012_v40  ;;  %268 = vst.msk [vmem:[#allocation2 + $0x4c] sm:$0xf] %vm248_vm7, %v235_v23  ;;  %v1047_v39 = vrot.slane %v889_v32, 5  ;;  %v4490_v23 = vld [vmem:[%s5202_s28 + $0x40] sm:$0xf] }
  0x8a   : > { %1072 = vrot.lane.b32.xlu1 %v975_v33, %s5116_s30  ;;  %v227_v33 = vld [vmem:[%s5202_s28 + $0x40] sm:$0xf]  ;;  %267 = vst.msk [vmem:[#allocation2 + $0x48] sm:$0xf] %vm248_vm7, %v234_v27  ;;  %v4491_v32 = vld [vmem:[%s5202_s28 + $0x48] sm:$0xf] }
  0x8b   : > { %1070 = vrot.lane.b32.xlu0 %v971_v35, %s5116_s30  ;;  %1068 = vrot.lane.b32.xlu2 %v968_v38, %s5116_s30  ;;  %v872_v35 = vld [vmem:[%s5202_s28 + $0x6c] sm:$0xe]  ;;  %260 = vst.msk [vmem:[#allocation2 + $0x2c] sm:$0xf] %vm248_vm7, %v227_v33  ;;  %v238_v33 = vld [vmem:[%s5202_s28 + $0x84] sm:$0xf] }
  0x8c   : > { %v4474_v44 = vrot.slane %v872_v35, 9  ;;  %272 = vst.msk [vmem:[#allocation2 + $0x5c] sm:$0xf] %vm248_vm7, %v239_v30  ;;  %v4493_v30 = vld [vmem:[%s5202_s28 + $0x54] sm:$0xf] }
  0x8d   : > { %v727_v46 = vpop.permute.xlu2 %726  ;;  %271 = vst.msk [vmem:[#allocation2 + $0x58] sm:$0xf] %vm248_vm7, %v238_v33 }
  0x8e   : > { %818 = vst.msk [vmem:[#allocation2 + $0x14] sm:$0xf] %vm812_vm8, %v727_v46  ;;  %v1010_v54 = vsel %vm5387_vm6, %v4474_v44, %v1009_v31 }
  0x8f   : > { %277 = vst.msk [vmem:[#allocation2 + $0x70] sm:$0xf] %vm248_vm7, %v244_v56  ;;  %v4503_v56 = vld [vmem:[%s5202_s28 + $0x90] sm:$0xf] }
  0x90   : > { %276 = vst.msk [vmem:[#allocation2 + $0x6c] sm:$0xf] %vm248_vm7, %v243_v0 }
  0x91   : > { %3651 = vst.msk [vmem:[%s6610_s29] sm:$0xf] %vm3650_vm0, %v5115_v2 }
  0x92   : > { %1078 = vrot.lane.b32.xlu1 %v985_v47, %s5116_s30  ;;  %v1017_v47 = vsel %vm5387_vm6, %v4475_v36, %v1016_v37  ;;  %v237_v36 = vld [vmem:[%s5202_s28 + $0x7c] sm:$0xf]  ;;  %v886_v37 = vld [vmem:[%s5202_s28 + $0xa4] sm:$0x1]  ;;  %3652 = vst.msk [vmem:[%s6610_s29 + $0x4] sm:$0xf] %vm3650_vm0, %v5115_v2 }
  0x93   : > { %1076 = vrot.lane.b32.xlu0 %v982_v49, %s5116_s30  ;;  %1074 = vrot.lane.b32.xlu2 %v978_v53, %s5116_s30  ;;  %v230_v49 = vld [vmem:[%s5202_s28 + $0x54] sm:$0xf]  ;;  %v229_v53 = vld [vmem:[%s5202_s28 + $0x4c] sm:$0xf]  ;;  %270 = vst.msk [vmem:[#allocation2 + $0x54] sm:$0xf] %vm248_vm7, %v237_v36 }
  0x94   : > { %v721_v58 = vpop.permute.xlu1 %720  ;;  %263 = vst.msk [vmem:[#allocation2 + $0x38] sm:$0xf] %vm248_vm7, %v230_v49  ;;  %v1040_v45 = vrot.slane %v886_v37, 5  ;;  %v4496_v36 = vld [vmem:[%s5202_s28 + $0x64] sm:$0xf] }
  0x95   : > { %v717_v62 = vpop.permute.xlu0 %716  ;;  %v733_v3 = vpop.permute.xlu2 %732  ;;  %815 = vst.msk [vmem:[#allocation2 + $0x8] sm:$0xf] %vm812_vm8, %v721_v58  ;;  %v4476_v58 = vrot.slane %v878_v52, 9  ;;  %v4495_v37 = vld [vmem:[%s5202_s28 + $0x60] sm:$0xf] }
  0x96   : > { %813 = vst.msk [vmem:[#allocation2] sm:$0xf] %vm812_vm8, %v717_v62 }
  0x97   : > { %821 = vst.msk [vmem:[#allocation2 + $0x20] sm:$0xf] %vm812_vm8, %v733_v3  ;;  %v1019_v3 = vrot.slane %v877_v55, 5  ;;  %v1024_v9 = vsel %vm5387_vm6, %v4476_v58, %v1023_v48  ;;  %v241_v48 = vld [vmem:[%s5202_s28 + $0x94] sm:$0xf] }
  0x98   : > { %262 = vst.msk [vmem:[#allocation2 + $0x34] sm:$0xf] %vm248_vm7, %v229_v53  ;;  %v245_v53 = vld [vmem:[%s5202_s28 + $0xac] sm:$0xf] }
  0x99   : > { %v1020_v13 = vsel %vm5387_vm6, %v1018_v1, %v1019_v3  ;;  %274 = vst.msk [vmem:[#allocation2 + $0x64] sm:$0xf] %vm248_vm7, %v241_v48  ;;  %v247_v3 = vld [vmem:[%s5202_s28 + $0xb8] sm:$0xf]  ;;  %v4502_v48 = vld [vmem:[%s5202_s28 + $0x88] sm:$0xf] }
  0x9a   : > { %1084 = vrot.lane.b32.xlu1 %v996_v4, %s5116_s30  ;;  %v884_v4 = vld [vmem:[%s5202_s28 + $0x9c] sm:$0xe]  ;;  %278 = vst.msk [vmem:[#allocation2 + $0x74] sm:$0xf] %vm248_vm7, %v245_v53 }
  0x9b   : > { %1082 = vrot.lane.b32.xlu0 %v992_v7, %s5116_s30  ;;  %1080 = vrot.lane.b32.xlu2 %v989_v11, %s5116_s30  ;;  %v885_v7 = vld [vmem:[%s5202_s28 + $0xa0] sm:$0xf]  ;;  %v231_v11 = vld [vmem:[%s5202_s28 + $0x58] sm:$0xf]  ;;  %280 = vst.msk [vmem:[#allocation2 + $0x7c] sm:$0xf] %vm248_vm7, %v247_v3 }
  0x9c   : > { %v723_v16 = vpop.permute.xlu1 %722  ;;  %v1037_v17 = vrot.slane %v885_v7, 5  ;;  %264 = vst.msk [vmem:[#allocation2 + $0x3c] sm:$0xf] %vm248_vm7, %v231_v11  ;;  %v4484_v11 = vld [vmem:[%s5202_s28 + $0x1c] sm:$0xf] }
  0x9d   : > { %816 = vst.msk [vmem:[#allocation2 + $0xc] sm:$0xf] %vm812_vm8, %v723_v16  ;;  %v719_v19 = vpop.permute.xlu0 %718  ;;  %v739_v24 = vpop.permute.xlu2 %738  ;;  %v4478_v16 = vrot.slane %v884_v4, 9  ;;  %v4481_v4 = vld [vmem:[%s5202_s28 + $0xc] sm:$0xf] }
  0x9e   : > { %814 = vst.msk [vmem:[#allocation2 + $0x4] sm:$0xf] %vm812_vm8, %v719_v19  ;;  %v1032_v19 = vrot.slane %v1030_v10, 4  ;;  %v1039_v44 = vrot.slane %v1037_v17, 4  ;;  %v4507_v3 = vld [vmem:[%s5202_s28 + $0xa8] sm:$0xf] }
  0x9f   : > { %824 = vst.msk [vmem:[#allocation2 + $0x2c] sm:$0xf] %vm812_vm8, %v739_v24  ;;  %v4477_v24 = vrot.slane %v881_v15, 9  ;;  %v1038_v28 = vsel %vm5387_vm6, %v4478_v16, %v1037_v17  ;;  %v4487_v17 = vld [vmem:[%s5202_s28 + $0x30] sm:$0xf] }
  0xa0   : > { %v1034_v31 = vsel %vm5387_vm6, %v1032_v19, %v1033_v20  ;;  %v1041_v55 = vsel %vm5387_vm6, %v1039_v44, %v1040_v45  ;;  %v4485_v19 = vld [vmem:[%s5202_s28 + $0x24] sm:$0xf]  ;;  %v4497_v44 = vld [vmem:[%s5202_s28 + $0x6c] sm:$0xf]  ;;  %3654 = vst.msk [vmem:[%s6610_s29 + $0x8] sm:$0x1] %vm3653_vm1, %v5115_v2 }
  0xa1   : > { %v1031_v35 = vsel %vm5387_vm6, %v4477_v24, %v1030_v10  ;;  %v4489_v24 = vld [vmem:[%s5202_s28 + $0x3c] sm:$0xf]  ;;  %4865 = vst.msk [vmem:[%s6610_s29 + $0xcc] sm:$0xf] %vm3650_vm0, %v5115_v2 }
  0xa2   : > { %1090 = vrot.lane.b32.xlu1 %v1006_v26, %s5116_s30  ;;  %4866 = vst.msk [vmem:[%s6610_s29 + $0xd0] sm:$0xf] %vm3650_vm0, %v5115_v2 }
  0xa3   : > { %1088 = vrot.lane.b32.xlu0 %v1003_v29, %s5116_s30  ;;  %1086 = vrot.lane.b32.xlu2 %v999_v34, %s5116_s30  ;;  %v1044_v29 = vrot.slane %v888_v21, 5  ;;  %v887_v34 = vld [vmem:[%s5202_s28 + $0xa8] sm:$0xe]  ;;  %4867 = vst.msk [vmem:[%s6610_s29 + $0xd4] sm:$0x1] %vm3653_vm1, %v5115_v2 }
  0xa4   : > { %v731_v38 = vpop.permute.xlu1 %730  ;;  %v4479_v41 = vrot.slane %v887_v34, 9 }
  0xa5   : > { %820 = vst.msk [vmem:[#allocation2 + $0x1c] sm:$0xf] %vm812_vm8, %v731_v38  ;;  %v729_v42 = vpop.permute.xlu0 %728  ;;  %v745_v46 = vpop.permute.xlu2 %744  ;;  %v1046_v38 = vrot.slane %v1044_v29, 4 }
  0xa6   : > { %819 = vst.msk [vmem:[#allocation2 + $0x18] sm:$0xf] %vm812_vm8, %v729_v42  ;;  %v891_v42 = vld [vmem:[%s5202_s28 + $0xb8] sm:$0xf]  ;;  %v1045_v51 = vsel %vm5387_vm6, %v4479_v41, %v1044_v29 }
  0xa7   : > { %827 = vst.msk [vmem:[#allocation2 + $0x38] sm:$0xf] %vm812_vm8, %v745_v46  ;;  %v242_v46 = vld [vmem:[%s5202_s28 + $0x9c] sm:$0xf]  ;;  %v1048_v49 = vsel %vm5387_vm6, %v1046_v38, %v1047_v39  ;;  %v1051_v52 = vrot.slane %v891_v42, 5 }
  0xa8   : > { %275 = vst.msk [vmem:[#allocation2 + $0x68] sm:$0xf] %vm248_vm7, %v242_v46  ;;  %v4494_v38 = vld [vmem:[%s5202_s28 + $0x58] sm:$0xf] }
  0xa9   : > { %v4499_v42 = vld [vmem:[%s5202_s28 + $0x78] sm:$0xf] }
  0xaa   : > { %1096 = vrot.lane.b32.xlu1 %v1017_v47, %s5116_s30 }
  0xab   : > { %1094 = vrot.lane.b32.xlu0 %v1013_v50, %s5116_s30  ;;  %1092 = vrot.lane.b32.xlu2 %v1010_v54, %s5116_s30  ;;  %v240_v50 = vld [vmem:[%s5202_s28 + $0x90] sm:$0xf]  ;;  %v892_v54 = vld [vmem:[%s5202_s28 + $0xbc] sm:$0x1] }
  0xac   : > { %v737_v59 = vpop.permute.xlu1 %736  ;;  %273 = vst.msk [vmem:[#allocation2 + $0x60] sm:$0xf] %vm248_vm7, %v240_v50  ;;  %v1054_v60 = vrot.slane %v892_v54, 5  ;;  %v4500_v50 = vld [vmem:[%s5202_s28 + $0x7c] sm:$0xf] }
  0xad   : > { %823 = vst.msk [vmem:[#allocation2 + $0x28] sm:$0xf] %vm812_vm8, %v737_v59  ;;  %v735_v62 = vpop.permute.xlu0 %734  ;;  %v751_v5 = vpop.permute.xlu2 %750  ;;  %v1053_v59 = vrot.slane %v1051_v52, 4  ;;  %v4505_v54 = vld [vmem:[%s5202_s28 + $0x9c] sm:$0xf] }
  0xae   : > { %822 = vst.msk [vmem:[#allocation2 + $0x24] sm:$0xf] %vm812_vm8, %v735_v62  ;;  %v4480_v62 = vrot.slane %v890_v57, 9  ;;  %v4514_v57 = vld [vmem:[%s5202_s28 + $0x10] sm:$0xf] }
  0xaf   : > { %830 = vst.msk [vmem:[#allocation2 + $0x44] sm:$0xf] %vm812_vm8, %v751_v5  ;;  %v246_v5 = vld [vmem:[%s5202_s28 + $0xb4] sm:$0xf]  ;;  %v1441_v0 = vshrl.u32 %v4514_v57, 16 }
  0xb0   : > { %v1052_v7 = vsel %vm5387_vm6, %v4480_v62, %v1051_v52  ;;  %279 = vst.msk [vmem:[#allocation2 + $0x78] sm:$0xf] %vm248_vm7, %v246_v5  ;;  %v1437_v62 = vshll.u32 %v4514_v57, 16  ;;  %vm6655_vm7 = vmand %vm3653_vm1, %vm3716_vm5 }
  0xb2   : > { %1102 = vrot.lane.b32.xlu1 %v1027_v6, %s5116_s30  ;;  %v1055_v6 = vsel %vm5387_vm6, %v1053_v59, %v1054_v60  ;;  %v4513_v60 = vld [vmem:[%s5202_s28 + $0xc] sm:$0xf] }
  0xb3   : > { %1100 = vrot.lane.b32.xlu0 %v1024_v9, %s5116_s30  ;;  %1098 = vrot.lane.b32.xlu2 %v1020_v13, %s5116_s30  ;;  %v4482_v13 = vld [vmem:[%s5202_s28 + $0x10] sm:$0xf]  ;;  %v1431_v5 = vshll.u32 %v4513_v60, 16 }
  0xb4   : > { %v743_v18 = vpop.permute.xlu1 %742 }
  0xb5   : > { %826 = vst.msk [vmem:[#allocation2 + $0x34] sm:$0xf] %vm812_vm8, %v743_v18  ;;  %v741_v22 = vpop.permute.xlu0 %740  ;;  %v757_v26 = vpop.permute.xlu2 %756  ;;  %v4486_v18 = vld [vmem:[%s5202_s28 + $0x28] sm:$0xf] }
  0xb6   : > { %825 = vst.msk [vmem:[#allocation2 + $0x30] sm:$0xf] %vm812_vm8, %v741_v22 }
  0xb7   : > { %833 = vst.msk [vmem:[#allocation2 + $0x50] sm:$0xf] %vm812_vm8, %v757_v26  ;;  %v4488_v26 = vld [vmem:[%s5202_s28 + $0x34] sm:$0xf] }
  0xba   : > { %1108 = vrot.lane.b32.xlu1 %v1038_v28, %s5116_s30 }
  0xbb   : > { %1106 = vrot.lane.b32.xlu0 %v1034_v31, %s5116_s30  ;;  %1104 = vrot.lane.b32.xlu2 %v1031_v35, %s5116_s30  ;;  %v4492_v31 = vld [vmem:[%s5202_s28 + $0x4c] sm:$0xf] }
  0xbc   : > { %v749_v40 = vpop.permute.xlu1 %748 }
  0xbd   : > { %829 = vst.msk [vmem:[#allocation2 + $0x40] sm:$0xf] %vm812_vm8, %v749_v40  ;;  %v747_v43 = vpop.permute.xlu0 %746  ;;  %v763_v47 = vpop.permute.xlu2 %762 }
  0xbe   : > { %828 = vst.msk [vmem:[#allocation2 + $0x3c] sm:$0xf] %vm812_vm8, %v747_v43  ;;  %v4498_v43 = vld [vmem:[%s5202_s28 + $0x70] sm:$0xf] }
  0xbf   : > { %836 = vst.msk [vmem:[#allocation2 + $0x5c] sm:$0xf] %vm812_vm8, %v763_v47 }
  0xc2   : > { %1114 = vrot.lane.b32.xlu1 %v1048_v49, %s5116_s30  ;;  %v4501_v49 = vld [vmem:[%s5202_s28 + $0x84] sm:$0xf] }
  0xc3   : > { %1112 = vrot.lane.b32.xlu0 %v1045_v51, %s5116_s30  ;;  %1110 = vrot.lane.b32.xlu2 %v1041_v55, %s5116_s30  ;;  %v4504_v55 = vld [vmem:[%s5202_s28 + $0x94] sm:$0xf] }
  0xc4   : > { %v755_v58 = vpop.permute.xlu1 %754 }
  0xc5   : > { %832 = vst.msk [vmem:[#allocation2 + $0x4c] sm:$0xf] %vm812_vm8, %v755_v58  ;;  %v753_v61 = vpop.permute.xlu0 %752  ;;  %v769_v1 = vpop.permute.xlu2 %768 }
  0xc6   : > { %831 = vst.msk [vmem:[#allocation2 + $0x48] sm:$0xf] %vm812_vm8, %v753_v61 }
  0xc7   : > { %839 = vst.msk [vmem:[#allocation2 + $0x68] sm:$0xf] %vm812_vm8, %v769_v1  ;;  %v4508_v1 = vld [vmem:[%s5202_s28 + $0xac] sm:$0xf] }
  0xca   : > { %1250 = vrot.lane.b32.xlu1 %v4481_v4, %s5117_s4  ;;  %v1428_v4 = vshrl.u32 %v4513_v60, 16 }
  0xcb   : > { %1118 = vrot.lane.b32.xlu0 %v1055_v6, %s5116_s30  ;;  %1116 = vrot.lane.b32.xlu2 %v1052_v7, %s5116_s30  ;;  %v4506_v6 = vld [vmem:[%s5202_s28 + $0xa0] sm:$0xf]  ;;  %v5764_v7 = vrot.slane %v1437_v62, 5 }
  0xcc   : > { %v761_v8 = vpop.permute.xlu1 %760 }
  0xcd   : > { %835 = vst.msk [vmem:[#allocation2 + $0x58] sm:$0xf] %vm812_vm8, %v761_v8  ;;  %v759_v9 = vpop.permute.xlu0 %758  ;;  %v775_v10 = vpop.permute.xlu2 %774  ;;  %v1443_v8 = vrot.slane %v1441_v0, 4 }
  0xce   : > { %834 = vst.msk [vmem:[#allocation2 + $0x54] sm:$0xf] %vm812_vm8, %v759_v9  ;;  %v4515_v9 = vld [vmem:[%s5202_s28 + $0x14] sm:$0x1] }
  0xcf   : > { %842 = vst.msk [vmem:[#allocation2 + $0x74] sm:$0xf] %vm812_vm8, %v775_v10 }
  0xd2   : > { %1256 = vrot.lane.b32.xlu1 %v4484_v11, %s5117_s4  ;;  %v1430_v11 = vrot.slane %v1428_v4, 4  ;;  %v4524_v4 = vld [vmem:[%s5202_s28 + $0x38] sm:$0x1] }
  0xd3   : > { %1254 = vrot.lane.b32.xlu0 %v4483_v12, %s5117_s4  ;;  %1252 = vrot.lane.b32.xlu2 %v4482_v13, %s5117_s4  ;;  %v1433_v12 = vrot.slane %v1431_v5, 5  ;;  %v4519_v13 = vld [vmem:[%s5202_s28 + $0x24] sm:$0xf]  ;;  %v4528_v5 = vld [vmem:[%s5202_s28 + $0x48] sm:$0xf] }
  0xd4   : > { %v767_v14 = vpop.permute.xlu1 %766 }
  0xd5   : > { %838 = vst.msk [vmem:[#allocation2 + $0x64] sm:$0xf] %vm812_vm8, %v767_v14  ;;  %v765_v15 = vpop.permute.xlu0 %764  ;;  %v1057_v16 = vpop.permute.xlu2 %1056 }
  0xd6   : > { %837 = vst.msk [vmem:[#allocation2 + $0x60] sm:$0xf] %vm812_vm8, %v765_v15  ;;  %v4517_v15 = vld [vmem:[%s5202_s28 + $0x1c] sm:$0xf] }
  0xd7   : > { %1153 = vst.msk [vmem:[#allocation2] sm:$0xf] %vm1152_vm9, %v1057_v16  ;;  %v1444_v16 = vor.u32 %v1443_v8, %v5764_v7 }
  0xda   : > { %1262 = vrot.lane.b32.xlu1 %v4487_v17, %s5117_s4  ;;  %v1447_v17 = vshll.u32 %v4515_v9, 16  ;;  %v4526_v9 = vld [vmem:[%s5202_s28 + $0x40] sm:$0xf] }
  0xdb   : > { %1260 = vrot.lane.b32.xlu0 %v4486_v18, %s5117_s4  ;;  %1258 = vrot.lane.b32.xlu2 %v4485_v19, %s5117_s4  ;;  %v4516_v19 = vld [vmem:[%s5202_s28 + $0x18] sm:$0xf] }
  0xdc   : > { %v773_v20 = vpop.permute.xlu1 %772 }
  0xdd   : > { %841 = vst.msk [vmem:[#allocation2 + $0x70] sm:$0xf] %vm812_vm8, %v773_v20  ;;  %v771_v21 = vpop.permute.xlu0 %770  ;;  %v1063_v22 = vpop.permute.xlu2 %1062  ;;  %v4511_v20 = vld [vmem:[%s5202_s28 + $0xc0] sm:$0xf] }
  0xde   : > { %840 = vst.msk [vmem:[#allocation2 + $0x6c] sm:$0xf] %vm812_vm8, %v771_v21  ;;  %v1476_v21 = vshrl.u32 %v4519_v13, 16 }
  0xdf   : > { %1156 = vst.msk [vmem:[#allocation2 + $0xc] sm:$0xf] %vm1152_vm9, %v1063_v22  ;;  %v1479_v22 = vshll.u32 %v4519_v13, 16  ;;  %v4525_v13 = vld [vmem:[%s5202_s28 + $0x3c] sm:$0xf] }
  0xe2   : > { %1268 = vrot.lane.b32.xlu1 %v4490_v23, %s5117_s4  ;;  %v4510_v23 = vld [vmem:[%s5202_s28 + $0xb8] sm:$0xf] }
  0xe3   : > { %1266 = vrot.lane.b32.xlu0 %v4489_v24, %s5117_s4  ;;  %1264 = vrot.lane.b32.xlu2 %v4488_v26, %s5117_s4  ;;  %v1434_v24 = vor.u32 %v1433_v12, %v1430_v11  ;;  %v1461_v26 = vshll.u32 %v4517_v15, 16 }
  0xe4   : > { %v779_v27 = vpop.permute.xlu1 %778 }
  0xe5   : > { %844 = vst.msk [vmem:[#allocation2 + $0x7c] sm:$0xf] %vm812_vm8, %v779_v27  ;;  %v777_v28 = vpop.permute.xlu0 %776  ;;  %v1069_v29 = vpop.permute.xlu2 %1068  ;;  %v1465_v27 = vshrl.u32 %v4517_v15, 16  ;;  %v1519_v15 = vshll.u32 %v4524_v4, 16  ;;  %v4537_v4 = vld [vmem:[%s5202_s28 + $0x6c] sm:$0xf] }
  0xe6   : > { %843 = vst.msk [vmem:[#allocation2 + $0x78] sm:$0xf] %vm812_vm8, %v777_v28  ;;  %v4509_v28 = vld [vmem:[%s5202_s28 + $0xb4] sm:$0xf] }
  0xe7   : > { %1159 = vst.msk [vmem:[#allocation2 + $0x18] sm:$0xf] %vm1152_vm9, %v1069_v29  ;;  %v1452_v29 = vshrl.u32 %v4516_v19, 16 }
  0xea   : > { %1274 = vrot.lane.b32.xlu1 %v4493_v30, %s5117_s4  ;;  %v1455_v30 = vshll.u32 %v4516_v19, 16  ;;  %v4521_v19 = vld [vmem:[%s5202_s28 + $0x2c] sm:$0x1] }
  0xeb   : > { %1272 = vrot.lane.b32.xlu0 %v4492_v31, %s5117_s4  ;;  %1270 = vrot.lane.b32.xlu2 %v4491_v32, %s5117_s4  ;;  %v1445_v31 = vrot.slane %v1444_v16, 4  ;;  %v1449_v32 = vrot.slane %v1447_v17, 5 }
  0xec   : > { %v1061_v33 = vpop.permute.xlu1 %1060 }
  0xed   : > { %1155 = vst.msk [vmem:[#allocation2 + $0x8] sm:$0xf] %vm1152_vm9, %v1061_v33  ;;  %v1059_v34 = vpop.permute.xlu0 %1058  ;;  %v1075_v35 = vpop.permute.xlu2 %1074  ;;  %v1478_v33 = vrot.slane %v1476_v21, 4  ;;  %v1551_v21 = vshll.u32 %v4528_v5, 16 }
  0xee   : > { %1154 = vst.msk [vmem:[#allocation2 + $0x4] sm:$0xf] %vm1152_vm9, %v1059_v34  ;;  %v1481_v34 = vrot.slane %v1479_v22, 5  ;;  %v1533_v22 = vshll.u32 %v4526_v9, 16 }
  0xef   : > { %1162 = vst.msk [vmem:[#allocation2 + $0x24] sm:$0xf] %vm1152_vm9, %v1075_v35  ;;  %v4523_v35 = vld [vmem:[%s5202_s28 + $0x34] sm:$0xf] }
  0xf2   : > { %1280 = vrot.lane.b32.xlu1 %v4496_v36, %s5117_s4  ;;  %v4522_v36 = vld [vmem:[%s5202_s28 + $0x30] sm:$0xf] }
  0xf3   : > { %1278 = vrot.lane.b32.xlu0 %v4495_v37, %s5117_s4  ;;  %1276 = vrot.lane.b32.xlu2 %v4494_v38, %s5117_s4  ;;  %v1435_v38 = vrot.slane %v1434_v24, 4 }
  0xf4   : > { %v1067_v39 = vpop.permute.xlu1 %1066 }
  0xf5   : > { %1158 = vst.msk [vmem:[#allocation2 + $0x14] sm:$0xf] %vm1152_vm9, %v1067_v39  ;;  %v1065_v40 = vpop.permute.xlu0 %1064  ;;  %v1081_v41 = vpop.permute.xlu2 %1080  ;;  %v4520_v39 = vld [vmem:[%s5202_s28 + $0x28] sm:$0xf] }
  0xf6   : > { %1157 = vst.msk [vmem:[#allocation2 + $0x10] sm:$0xf] %vm1152_vm9, %v1065_v40  ;;  %v5785_v40 = vrot.slane %v1461_v26, 5  ;;  %v1489_v57 = vshrl.u32 %v4520_v39, 16  ;;  %v1524_v26 = vshrl.u32 %v4525_v13, 16 }
  0xf7   : > { %1165 = vst.msk [vmem:[#allocation2 + $0x30] sm:$0xf] %vm1152_vm9, %v1081_v41  ;;  %v1467_v41 = vrot.slane %v1465_v27, 4  ;;  %v1527_v27 = vshll.u32 %v4525_v13, 16 }
  0xf8   : > { %v1491_v12 = vrot.slane %v1489_v57, 4 }
  0xfa   : > { %1286 = vrot.lane.b32.xlu1 %v4499_v42, %s5117_s4 }
  0xfb   : > { %1284 = vrot.lane.b32.xlu0 %v4498_v43, %s5117_s4  ;;  %1282 = vrot.lane.b32.xlu2 %v4497_v44, %s5117_s4  ;;  %v4518_v43 = vld [vmem:[%s5202_s28 + $0x20] sm:$0x1]  ;;  %v1454_v44 = vrot.slane %v1452_v29, 4 }
  0xfc   : > { %v1073_v45 = vpop.permute.xlu1 %1072 }
  0xfd   : > { %1161 = vst.msk [vmem:[#allocation2 + $0x20] sm:$0xf] %vm1152_vm9, %v1073_v45  ;;  %v1071_v46 = vpop.permute.xlu0 %1070  ;;  %v1087_v47 = vpop.permute.xlu2 %1086  ;;  %v1457_v45 = vrot.slane %v1455_v30, 5  ;;  %v1495_v30 = vshll.u32 %v4521_v19, 16 }
  0xfe   : > { %1160 = vst.msk [vmem:[#allocation2 + $0x1c] sm:$0xf] %vm1152_vm9, %v1071_v46 }
  0xff   : > { %1168 = vst.msk [vmem:[#allocation2 + $0x3c] sm:$0xf] %vm1152_vm9, %v1087_v47  ;;  %v1509_v47 = vshll.u32 %v4523_v35, 16 }
 0x101   : > { %v5799_v60 = vrot.slane %v1509_v47, 5 }
 0x102   : > { %1292 = vrot.lane.b32.xlu1 %v4502_v48, %s5117_s4  ;;  %v1513_v48 = vshrl.u32 %v4523_v35, 16  ;;  %v4529_v35 = vld [vmem:[%s5202_s28 + $0x4c] sm:$0xf] }
 0x103   : > { %1290 = vrot.lane.b32.xlu0 %v4501_v49, %s5117_s4  ;;  %1288 = vrot.lane.b32.xlu2 %v4500_v50, %s5117_s4  ;;  %v1500_v49 = vshrl.u32 %v4522_v36, 16  ;;  %v1503_v50 = vshll.u32 %v4522_v36, 16 }
 0x104   : > { %v1079_v51 = vpop.permute.xlu1 %1078 }
 0x105   : > { %1164 = vst.msk [vmem:[#allocation2 + $0x2c] sm:$0xf] %vm1152_vm9, %v1079_v51  ;;  %v1077_v52 = vpop.permute.xlu0 %1076  ;;  %v1093_v53 = vpop.permute.xlu2 %1092  ;;  %v1450_v51 = vsel %vm5213_vm2, %v1445_v31, %v1449_v32  ;;  %v1502_v62 = vrot.slane %v1500_v49, 4  ;;  %v1505_v0 = vrot.slane %v1503_v50, 5  ;;  %v4532_v31 = vld [vmem:[%s5202_s28 + $0x58] sm:$0xf] }
 0x106   : > { %1163 = vst.msk [vmem:[#allocation2 + $0x28] sm:$0xf] %vm1152_vm9, %v1077_v52  ;;  %v1482_v52 = vor.u32 %v1481_v34, %v1478_v33  ;;  %v1521_v33 = vrot.slane %v1519_v15, 5  ;;  %v1497_v49 = vrot.slane %v1495_v30, 5 }
 0x107   : > { %1171 = vst.msk [vmem:[#allocation2 + $0x48] sm:$0xf] %vm1152_vm9, %v1093_v53  ;;  %v1485_v53 = vshll.u32 %v4520_v39, 16  ;;  %v1506_v16 = vor.u32 %v1505_v0, %v1502_v62  ;;  %v5824_v39 = vrot.slane %v1533_v22, 5 }
 0x109   : > { %v1507_v34 = vrot.slane %v1506_v16, 4  ;;  %v1620_v16 = vshrl.u32 %v4537_v4, 16 }
 0x10a   : > { %1298 = vrot.lane.b32.xlu1 %v4505_v54, %s5117_s4  ;;  %v1440_v54 = vsel %vm5213_vm2, %v1435_v38, %v5764_v7  ;;  %v4527_v38 = vld [vmem:[%s5202_s28 + $0x44] sm:$0x1] }
 0x10b   : > { %1296 = vrot.lane.b32.xlu0 %v4504_v55, %s5117_s4  ;;  %1294 = vrot.lane.b32.xlu2 %v4503_v56, %s5117_s4  ;;  %v1468_v55 = vor.u32 %v1467_v41, %v5785_v40  ;;  %v1471_v56 = vshll.u32 %v4518_v43, 16  ;;  %v1585_v43 = vshrl.u32 %v4532_v31, 16 }
 0x10c   : > { %v1085_v58 = vpop.permute.xlu1 %1084 }
 0x10d   : > { %1167 = vst.msk [vmem:[#allocation2 + $0x38] sm:$0xf] %vm1152_vm9, %v1085_v58  ;;  %v1083_v59 = vpop.permute.xlu0 %1082  ;;  %v1099_v61 = vpop.permute.xlu2 %1098  ;;  %v4512_v58 = vld [vmem:[%s5202_s28 + $0xc4] sm:$0xf]  ;;  %v1469_v7 = vrot.slane %v1468_v55, 4  ;;  %v1473_v8 = vrot.slane %v1471_v56, 5 }
 0x10e   : > { %1166 = vst.msk [vmem:[#allocation2 + $0x34] sm:$0xf] %vm1152_vm9, %v1083_v59  ;;  %v1458_v59 = vor.u32 %v1457_v45, %v1454_v44  ;;  %v4531_v44 = vld [vmem:[%s5202_s28 + $0x54] sm:$0xf]  ;;  %v1526_v45 = vrot.slane %v1524_v26, 4  ;;  %v1543_v56 = vshll.u32 %v4527_v38, 16 }
 0x10f   : > { %1174 = vst.msk [vmem:[#allocation2 + $0x54] sm:$0xf] %vm1152_vm9, %v1099_v61  ;;  %v1515_v61 = vrot.slane %v1513_v48, 4  ;;  %v1474_v24 = vsel %vm5213_vm2, %v1469_v7, %v1473_v8  ;;  %v1572_v57 = vshrl.u32 %v4531_v44, 16  ;;  %v1575_v62 = vshll.u32 %v4531_v44, 16 }
 0x110   : > { %v1459_v11 = vrot.slane %v1458_v59, 4  ;;  %v1545_v7 = vrot.slane %v1543_v56, 5  ;;  %v4536_v44 = vld [vmem:[%s5202_s28 + $0x68] sm:$0x1] }
 0x112   : > { %1304 = vrot.lane.b32.xlu1 %v4508_v1, %s5117_s4  ;;  %v1483_v1 = vrot.slane %v1482_v52, 4  ;;  %v1557_v52 = vshll.u32 %v4529_v35, 16 }
 0x113   : > { %1302 = vrot.lane.b32.xlu0 %v4507_v3, %s5117_s4  ;;  %1300 = vrot.lane.b32.xlu2 %v4506_v6, %s5117_s4  ;;  %v1487_v3 = vrot.slane %v1485_v53, 5 }
 0x114   : > { %v1091_v10 = vpop.permute.xlu1 %1090 }
 0x115   : > { %1170 = vst.msk [vmem:[#allocation2 + $0x44] sm:$0xf] %vm1152_vm9, %v1091_v10  ;;  %v1089_v14 = vpop.permute.xlu0 %1088  ;;  %v1105_v18 = vpop.permute.xlu2 %1104  ;;  %v1492_v29 = vor.u32 %v1491_v12, %v1487_v3  ;;  %v1577_v12 = vrot.slane %v1575_v62, 5 }
 0x116   : > { %1169 = vst.msk [vmem:[#allocation2 + $0x40] sm:$0xf] %vm1152_vm9, %v1089_v14  ;;  %v1516_v14 = vor.u32 %v1515_v61, %v5799_v60  ;;  %v1587_v61 = vrot.slane %v1585_v43, 4 }
 0x117   : > { %1177 = vst.msk [vmem:[#allocation2 + $0x60] sm:$0xf] %vm1152_vm9, %v1105_v18  ;;  %v1548_v18 = vshrl.u32 %v4528_v5, 16  ;;  %v1493_v48 = vrot.slane %v1492_v29, 4 }
 0x118   : > { %v1517_v32 = vrot.slane %v1516_v14, 4  ;;  %v4535_v14 = vld [vmem:[%s5202_s28 + $0x64] sm:$0xf] }
 0x119   : > { %v1550_v36 = vrot.slane %v1548_v18, 4  ;;  %v1609_v26 = vshrl.u32 %v4535_v14, 16 }
 0x11a   : > { %1310 = vrot.lane.b32.xlu1 %v4511_v20, %s5117_s4  ;;  %v1488_v20 = vsel %vm5213_vm2, %v1483_v1, %v1487_v3  ;;  %v1522_v50 = vsel %vm5213_vm2, %v1517_v32, %v1521_v33  ;;  %v1561_v1 = vshrl.u32 %v4529_v35, 16  ;;  %v1559_v3 = vrot.slane %v1557_v52, 5 }
 0x11b   : > { %1308 = vrot.lane.b32.xlu0 %v4510_v23, %s5117_s4  ;;  %1306 = vrot.lane.b32.xlu2 %v4509_v28, %s5117_s4  ;;  %v1537_v23 = vshrl.u32 %v4526_v9, 16  ;;  %v1464_v28 = vsel %vm5213_vm2, %v1459_v11, %v5785_v40  ;;  %v1574_v11 = vrot.slane %v1572_v57, 4  ;;  %v1622_v35 = vrot.slane %v1620_v16, 4 }
 0x11c   : > { %v1097_v37 = vpop.permute.xlu1 %1096  ;;  %v1563_v18 = vrot.slane %v1561_v1, 4  ;;  %v1615_v57 = vshll.u32 %v4536_v44, 16 }
 0x11d   : > { %1173 = vst.msk [vmem:[#allocation2 + $0x50] sm:$0xf] %vm1152_vm9, %v1097_v37  ;;  %v1095_v42 = vpop.permute.xlu0 %1094  ;;  %v1111_v46 = vpop.permute.xlu2 %1110  ;;  %v1553_v37 = vrot.slane %v1551_v21, 5  ;;  %v1539_v41 = vrot.slane %v1537_v23, 4  ;;  %v4534_v21 = vld [vmem:[%s5202_s28 + $0x60] sm:$0xf]  ;;  %v1578_v29 = vor.u32 %v1577_v12, %v1574_v11 }
 0x11e   : > { %1172 = vst.msk [vmem:[#allocation2 + $0x4c] sm:$0xf] %vm1152_vm9, %v1095_v42  ;;  %v1581_v42 = vshll.u32 %v4532_v31, 16  ;;  %v1564_v31 = vor.u32 %v1563_v18, %v1559_v3  ;;  %v1596_v33 = vshrl.u32 %v4534_v21, 16  ;;  %v4546_v12 = vld [vmem:[%s5202_s28 + $0x90] sm:$0xf] }
 0x11f   : > { %1180 = vst.msk [vmem:[#allocation2 + $0x6c] sm:$0xf] %vm1152_vm9, %v1111_v46  ;;  %v1529_v46 = vrot.slane %v1527_v27, 5  ;;  %v1540_v55 = vor.u32 %v1539_v41, %v5824_v39  ;;  %v1611_v41 = vrot.slane %v1609_v26, 4  ;;  %v1579_v43 = vrot.slane %v1578_v29, 4 }
 0x120   : > { %v5838_v59 = vrot.slane %v1581_v42, 5  ;;  %v1692_v26 = vshrl.u32 %v4546_v12, 16 }
 0x121   : > { %v1530_v0 = vor.u32 %v1529_v46, %v1526_v45  ;;  %v4540_v45 = vld [vmem:[%s5202_s28 + $0x78] sm:$0xf] }
 0x122   : > { %1813 = vrot.lane.b32.xlu1 %v1450_v51, %s5118_s5  ;;  %v1512_v51 = vsel %vm5213_vm2, %v1507_v34, %v5799_v60  ;;  %v1498_v60 = vsel %vm5213_vm2, %v1493_v48, %v1497_v49  ;;  %v1599_v34 = vshll.u32 %v4534_v21, 16  ;;  %v1598_v49 = vrot.slane %v1596_v33, 4 }
 0x123   : > { %1811 = vrot.lane.b32.xlu0 %v1440_v54, %s5118_s5  ;;  %1312 = vrot.lane.b32.xlu2 %v4512_v58, %s5117_s4  ;;  %v1554_v54 = vor.u32 %v1553_v37, %v1550_v36  ;;  %v4533_v58 = vld [vmem:[%s5202_s28 + $0x5c] sm:$0x1]  ;;  %v1531_v13 = vrot.slane %v1530_v0, 4  ;;  %v4538_v37 = vld [vmem:[%s5202_s28 + $0x70] sm:$0xf]  ;;  %v1584_v62 = vsel %vm5213_vm2, %v1579_v43, %v5838_v59  ;;  %s4356_s4 = scalar_lea.sflag [#allocation4], %s169_s24 }
 0x124   : > { %v1103_v6 = vpop.permute.xlu1 %1102  ;;  %v1591_v8 = vshll.u32 %v4533_v58, 16  ;;  %v1629_v52 = vshll.u32 %v4538_v37, 16  ;;  %v1644_v58 = vshrl.u32 %v4540_v45, 16  ;;  %v1633_v0 = vshrl.u32 %v4538_v37, 16  ;;  %v4547_v37 = vld [vmem:[%s5202_s28 + $0x94] sm:$0xf] }
 0x125   : > { %1176 = vst.msk [vmem:[#allocation2 + $0x5c] sm:$0xf] %vm1152_vm9, %v1103_v6  ;;  %v1101_v10 = vpop.permute.xlu0 %1100  ;;  %v1117_v17 = vpop.permute.xlu2 %1116  ;;  %v1555_v5 = vrot.slane %v1554_v54, 4  ;;  %v1541_v6 = vrot.slane %v1540_v55, 4  ;;  %v1536_v30 = vsel %vm5213_vm2, %v1531_v13, %v5824_v39  ;;  %v4544_v13 = vld [vmem:[%s5202_s28 + $0x88] sm:$0xf] }
 0x126   : > { %1175 = vst.msk [vmem:[#allocation2 + $0x58] sm:$0xf] %vm1152_vm9, %v1101_v10  ;;  %v1588_v10 = vor.u32 %v1587_v61, %v5838_v59  ;;  %v1647_v61 = vshll.u32 %v4540_v45, 16  ;;  %v4542_v59 = vld [vmem:[%s5202_s28 + $0x80] sm:$0x1]  ;;  %v1635_v16 = vrot.slane %v1633_v0, 4 }
 0x127   : > { %1183 = vst.msk [vmem:[#allocation2 + $0x78] sm:$0xf] %vm1152_vm9, %v1117_v17  ;;  %v1623_v17 = vshll.u32 %v4537_v4, 16  ;;  %v1560_v22 = vsel %vm5213_vm2, %v1555_v5, %v1559_v3  ;;  %v1546_v23 = vsel %vm5213_vm2, %v1541_v6, %v1545_v7  ;;  %v1631_v4 = vrot.slane %v1629_v52, 5  ;;  %v4549_v45 = vld [vmem:[%s5202_s28 + $0x9c] sm:$0xf] }
 0x128   : > { %v1589_v27 = vrot.slane %v1588_v10, 4  ;;  %v1649_v10 = vrot.slane %v1647_v61, 5  ;;  %v1681_v29 = vshrl.u32 %v4544_v13, 16  ;;  %v1719_v61 = vshll.u32 %v4549_v45, 16 }
 0x129   : > { %v1625_v36 = vrot.slane %v1623_v17, 5  ;;  %v4543_v17 = vld [vmem:[%s5202_s28 + $0x84] sm:$0xf]  ;;  %v1636_v33 = vor.u32 %v1635_v16, %v1631_v4 }
 0x12a   : > { %1819 = vrot.lane.b32.xlu1 %v1488_v20, %s5118_s5  ;;  %v4530_v20 = vld [vmem:[%s5202_s28 + $0x50] sm:$0x1] }
 0x12b   : > { %1817 = vrot.lane.b32.xlu0 %v1474_v24, %s5118_s5  ;;  %1815 = vrot.lane.b32.xlu2 %v1464_v28, %s5118_s5  ;;  %v1605_v24 = vshll.u32 %v4535_v14, 16  ;;  %v1593_v28 = vrot.slane %v1591_v8, 5  ;;  %v1567_v32 = vshll.u32 %v4530_v20, 16  ;;  %v1617_v8 = vrot.slane %v1615_v57, 5 }
 0x12c   : > { %v1109_v40 = vpop.permute.xlu1 %1108  ;;  %v1663_v20 = vshll.u32 %v4542_v59, 16  ;;  %v1701_v57 = vshll.u32 %v4547_v37, 16 }
 0x12d   : > { %1179 = vst.msk [vmem:[#allocation2 + $0x68] sm:$0xf] %vm1152_vm9, %v1109_v40  ;;  %v1107_v47 = vpop.permute.xlu0 %1106  ;;  %v1253_v53 = vpop.permute.xlu2 %1252  ;;  %v5863_v38 = vrot.slane %v1605_v24, 5  ;;  %v4541_v40 = vld [vmem:[%s5202_s28 + $0x7c] sm:$0xf]  ;;  %v1594_v39 = vsel %vm5213_vm2, %v1589_v27, %v1593_v28  ;;  %v1569_v48 = vrot.slane %v1567_v32, 5 }
 0x12e   : > { %1178 = vst.msk [vmem:[#allocation2 + $0x64] sm:$0xf] %vm1152_vm9, %v1107_v47  ;;  %v1565_v47 = vrot.slane %v1564_v31, 4  ;;  %v1653_v54 = vshll.u32 %v4541_v40, 16  ;;  %v1657_v55 = vshrl.u32 %v4541_v40, 16  ;;  %v1695_v27 = vshll.u32 %v4546_v12, 16 }
 0x12f   : > { %1348 = vst.msk [vmem:[#allocation2 + $0x4] sm:$0xf] %vm1346_vm10, %v1253_v53  ;;  %v1612_v56 = vor.u32 %v1611_v41, %v5863_v38  ;;  %v1677_v28 = vshll.u32 %v4544_v13, 16  ;;  %v1671_v31 = vshll.u32 %v4543_v17, 16  ;;  %v1694_v40 = vrot.slane %v1692_v26, 4 }
 0x130   : > { %v1570_v1 = vsel %vm5213_vm2, %v1565_v47, %v1569_v48  ;;  %v5881_v5 = vrot.slane %v1653_v54, 5  ;;  %v1659_v6 = vrot.slane %v1657_v55, 4 }
 0x131   : > { %v1613_v7 = vrot.slane %v1612_v56, 4  ;;  %v5906_v44 = vrot.slane %v1677_v28, 5  ;;  %v1673_v47 = vrot.slane %v1671_v31, 5 }
 0x132   : > { %1825 = vrot.lane.b32.xlu1 %v1522_v50, %s5118_s5  ;;  %v1601_v50 = vrot.slane %v1599_v34, 5 }
 0x133   : > { %1823 = vrot.lane.b32.xlu0 %v1512_v51, %s5118_s5  ;;  %1821 = vrot.lane.b32.xlu2 %v1498_v60, %s5118_s5  ;;  %v1626_v51 = vor.u32 %v1625_v36, %v1622_v35  ;;  %v1665_v36 = vrot.slane %v1663_v20, 5 }
 0x134   : > { %v1115_v9 = vpop.permute.xlu1 %1114  ;;  %v1602_v60 = vor.u32 %v1601_v50, %v1598_v49  ;;  %v4545_v49 = vld [vmem:[%s5202_s28 + $0x8c] sm:$0x1]  ;;  %v1637_v50 = vrot.slane %v1636_v33, 4 }
 0x135   : > { %1182 = vst.msk [vmem:[#allocation2 + $0x74] sm:$0xf] %vm1152_vm9, %v1115_v9  ;;  %v1113_v15 = vpop.permute.xlu0 %1112  ;;  %v1259_v19 = vpop.permute.xlu2 %1258  ;;  %v1627_v3 = vrot.slane %v1626_v51, 4  ;;  %v1646_v9 = vrot.slane %v1644_v58, 4  ;;  %v1716_v58 = vshrl.u32 %v4549_v45, 16 }
 0x136   : > { %1181 = vst.msk [vmem:[#allocation2 + $0x70] sm:$0xf] %vm1152_vm9, %v1113_v15  ;;  %v1603_v15 = vrot.slane %v1602_v60, 4 }
 0x137   : > { %1351 = vst.msk [vmem:[#allocation2 + $0x10] sm:$0xf] %vm1346_vm10, %v1259_v19  ;;  %v1632_v18 = vsel %vm5213_vm2, %v1627_v3, %v1631_v4  ;;  %v1660_v19 = vor.u32 %v1659_v6, %v5881_v5  ;;  %v1650_v24 = vor.u32 %v1649_v10, %v1646_v9  ;;  %v1705_v3 = vshrl.u32 %v4547_v37, 16  ;;  %v4551_v6 = vld [vmem:[%s5202_s28 + $0xa4] sm:$0x1] }
 0x138   : > { %v1608_v32 = vsel %vm5213_vm2, %v1603_v15, %v5863_v38  ;;  %v1683_v38 = vrot.slane %v1681_v29, 4  ;;  %v1718_v9 = vrot.slane %v1716_v58, 4  ;;  %v1721_v10 = vrot.slane %v1719_v61, 5  ;;  %v4555_v15 = vld [vmem:[%s5202_s28 + $0xb4] sm:$0xf] }
 0x139   : > { %v1661_v35 = vrot.slane %v1660_v19, 4  ;;  %v1651_v41 = vrot.slane %v1650_v24, 4  ;;  %v1707_v19 = vrot.slane %v1705_v3, 4  ;;  %v1767_v28 = vshll.u32 %v4555_v15, 16 }
 0x13a   : > { %1831 = vrot.lane.b32.xlu1 %v1560_v22, %s5118_s5  ;;  %v4539_v22 = vld [vmem:[%s5202_s28 + $0x74] sm:$0x1]  ;;  %v1684_v0 = vor.u32 %v1683_v38, %v5906_v44  ;;  %v1722_v26 = vor.u32 %v1721_v10, %v1718_v9  ;;  %v4554_v38 = vld [vmem:[%s5202_s28 + $0xb0] sm:$0x1] }
 0x13b   : > { %1829 = vrot.lane.b32.xlu0 %v1546_v23, %s5118_s5  ;;  %1827 = vrot.lane.b32.xlu2 %v1536_v30, %s5118_s5  ;;  %v1618_v23 = vsel %vm5213_vm2, %v1613_v7, %v1617_v8  ;;  %v1668_v30 = vshrl.u32 %v4543_v17, 16  ;;  %v1639_v34 = vshll.u32 %v4539_v22, 16  ;;  %v1666_v52 = vsel %vm5213_vm2, %v1661_v35, %v1665_v36  ;;  %v4548_v22 = vld [vmem:[%s5202_s28 + $0x98] sm:$0x1] }
 0x13c   : > { %v1251_v42 = vpop.permute.xlu1 %1250  ;;  %v1685_v12 = vrot.slane %v1684_v0, 4  ;;  %v1735_v17 = vshll.u32 %v4551_v6, 16 }
 0x13d   : > { %1347 = vst.msk [vmem:[#allocation2] sm:$0xf] %vm1346_vm10, %v1251_v42  ;;  %v1119_v46 = vpop.permute.xlu0 %1118  ;;  %v1265_v53 = vpop.permute.xlu2 %1264  ;;  %v1697_v42 = vrot.slane %v1695_v27, 5  ;;  %v1641_v51 = vrot.slane %v1639_v34, 5  ;;  %v1764_v27 = vshrl.u32 %v4555_v15, 16  ;;  %v1711_v34 = vshll.u32 %v4548_v22, 16 }
 0x13e   : > { %1184 = vst.msk [vmem:[#allocation2 + $0x7c] sm:$0xf] %vm1152_vm9, %v1119_v46  ;;  %v1670_v46 = vrot.slane %v1668_v30, 4 }
 0x13f   : > { %1354 = vst.msk [vmem:[#allocation2 + $0x1c] sm:$0xf] %vm1346_vm10, %v1265_v53  ;;  %v1698_v56 = vor.u32 %v1697_v42, %v1694_v40  ;;  %v1642_v4 = vsel %vm5213_vm2, %v1637_v50, %v1641_v51  ;;  %v4556_v40 = vld [vmem:[%s5202_s28 + $0xb8] sm:$0xf]  ;;  %v1723_v42 = vrot.slane %v1722_v26, 4  ;;  %v1713_v51 = vrot.slane %v1711_v34, 5 }
 0x140   : > { %v1674_v60 = vor.u32 %v1673_v47, %v1670_v46  ;;  %v4559_v47 = vld [vmem:[%s5202_s28 + $0xc4] sm:$0xf] }
 0x141   : > { %v1699_v59 = vrot.slane %v1698_v56, 4  ;;  %v1797_v61 = vshll.u32 %v4559_v47, 16 }
 0x142   : > { %1837 = vrot.lane.b32.xlu1 %v1594_v39, %s5118_s5  ;;  %v4550_v39 = vld [vmem:[%s5202_s28 + $0xa0] sm:$0xf] }
 0x143   : > { %1835 = vrot.lane.b32.xlu0 %v1584_v62, %s5118_s5  ;;  %1833 = vrot.lane.b32.xlu2 %v1570_v1, %s5118_s5  ;;  %v1725_v54 = vshll.u32 %v4550_v39, 16  ;;  %v1729_v55 = vshrl.u32 %v4550_v39, 16  ;;  %v1656_v62 = vsel %vm5213_vm2, %v1651_v41, %v5881_v5  ;;  %v1687_v1 = vshll.u32 %v4545_v49, 16 }
 0x144   : > { %v1257_v11 = vpop.permute.xlu1 %1256  ;;  %v1703_v5 = vrot.slane %v1701_v57, 5  ;;  %v1737_v41 = vrot.slane %v1735_v17, 5  ;;  %v1766_v39 = vrot.slane %v1764_v27, 4 }
 0x145   : > { %1350 = vst.msk [vmem:[#allocation2 + $0xc] sm:$0xf] %vm1346_vm10, %v1257_v11  ;;  %v1255_v14 = vpop.permute.xlu0 %1254  ;;  %v1271_v21 = vpop.permute.xlu2 %1270  ;;  %v5923_v7 = vrot.slane %v1725_v54, 5  ;;  %v1731_v8 = vrot.slane %v1729_v55, 4  ;;  %v1689_v13 = vrot.slane %v1687_v1, 5  ;;  %v1773_v55 = vshll.u32 %v4556_v40, 16 }
 0x146   : > { %1349 = vst.msk [vmem:[#allocation2 + $0x8] sm:$0xf] %vm1346_vm10, %v1255_v14  ;;  %v1675_v14 = vrot.slane %v1674_v60, 4  ;;  %v1704_v24 = vsel %vm5213_vm2, %v1699_v59, %v1703_v5  ;;  %v1708_v33 = vor.u32 %v1707_v19, %v1703_v5  ;;  %v1759_v1 = vshll.u32 %v4554_v38, 16 }
 0x147   : > { %1357 = vst.msk [vmem:[#allocation2 + $0x28] sm:$0xf] %vm1346_vm10, %v1271_v21  ;;  %v1732_v20 = vor.u32 %v1731_v8, %v5923_v7  ;;  %v1690_v29 = vsel %vm5213_vm2, %v1685_v12, %v1689_v13  ;;  %v1728_v57 = vsel %vm5213_vm2, %v1723_v42, %v5923_v7  ;;  %v1775_v59 = vrot.slane %v1773_v55, 5  ;;  %v4560_v13 = vld [vmem:[%s5202_s28 + $0xc8] sm:$0x1] }
 0x148   : > { %v1680_v30 = vsel %vm5213_vm2, %v1675_v14, %v5906_v44  ;;  %v1709_v50 = vrot.slane %v1708_v33, 4  ;;  %v1799_v5 = vrot.slane %v1797_v61, 5  ;;  %v1761_v12 = vrot.slane %v1759_v1, 5  ;;  %v4569_v61 = vld [vmem:[%s5202_s28 + $0x2c] sm:$0x1] }
 0x149   : > { %v1733_v37 = vrot.slane %v1732_v20, 4  ;;  %v4557_v20 = vld [vmem:[%s5202_s28 + $0xbc] sm:$0x1]  ;;  %v4566_v1 = vld [vmem:[%s5202_s28 + $0x20] sm:$0x1] }
 0x14a   : > { %1843 = vrot.lane.b32.xlu1 %v1632_v18, %s5118_s5  ;;  %v4553_v18 = vld [vmem:[%s5202_s28 + $0xac] sm:$0xf]  ;;  %v1714_v6 = vsel %vm5213_vm2, %v1709_v50, %v1713_v51 }
 0x14b   : > { %1841 = vrot.lane.b32.xlu0 %v1618_v23, %s5118_s5  ;;  %1839 = vrot.lane.b32.xlu2 %v1608_v32, %s5118_s5  ;;  %v4552_v23 = vld [vmem:[%s5202_s28 + $0xa8] sm:$0xf]  ;;  %v1749_v31 = vshll.u32 %v4553_v18, 16  ;;  %v1753_v32 = vshrl.u32 %v4553_v18, 16  ;;  %v1738_v54 = vsel %vm5213_vm2, %v1733_v37, %v1737_v41 }
 0x14c   : > { %v1263_v43 = vpop.permute.xlu1 %1262  ;;  %v1740_v35 = vshrl.u32 %v4552_v23, 16  ;;  %v1743_v36 = vshll.u32 %v4552_v23, 16  ;;  %v1807_v23 = vshll.u32 %v4560_v13, 16  ;;  %v4574_v13 = vld [vmem:[%s5202_s28 + $0x40] sm:$0xf] }
 0x14d   : > { %1353 = vst.msk [vmem:[#allocation2 + $0x18] sm:$0xf] %vm1346_vm10, %v1263_v43  ;;  %v1261_v48 = vpop.permute.xlu0 %1260  ;;  %v1277_v53 = vpop.permute.xlu2 %1276  ;;  %v1769_v43 = vrot.slane %v1767_v28, 5  ;;  %v1751_v45 = vrot.slane %v1749_v31, 5  ;;  %v1755_v46 = vrot.slane %v1753_v32, 4 }
 0x14e   : > { %1352 = vst.msk [vmem:[#allocation2 + $0x14] sm:$0xf] %vm1346_vm10, %v1261_v48  ;;  %v4558_v48 = vld [vmem:[%s5202_s28 + $0xc0] sm:$0xf]  ;;  %v1809_v31 = vrot.slane %v1807_v23, 5 }
 0x14f   : > { %1360 = vst.msk [vmem:[#allocation2 + $0x34] sm:$0xf] %vm1346_vm10, %v1277_v53  ;;  %v1745_v53 = vrot.slane %v1743_v36, 5  ;;  %v1770_v58 = vor.u32 %v1769_v43, %v1766_v39  ;;  %v1756_v0 = vor.u32 %v1755_v46, %v1751_v45  ;;  %v1788_v60 = vshrl.u32 %v4558_v48, 16  ;;  %v4564_v39 = vld [vmem:[%s5202_s28 + $0x18] sm:$0xe] }
 0x150   : > { %v1791_v3 = vshll.u32 %v4558_v48, 16  ;;  %v4565_v43 = vld [vmem:[%s5202_s28 + $0x1c] sm:$0xf]  ;;  %v4561_v46 = vld [vmem:[%s5202_s28 + $0xc] sm:$0xe] }
 0x151   : > { %v1771_v7 = vrot.slane %v1770_v58, 4  ;;  %v1790_v14 = vrot.slane %v1788_v60, 4  ;;  %v2045_v48 = vrot.slane %v4565_v43, 5  ;;  %v4577_v23 = vld [vmem:[%s5202_s28 + $0x4c] sm:$0xf] }
 0x152   : > { %1849 = vrot.lane.b32.xlu1 %v1666_v52, %s5118_s5  ;;  %v1742_v52 = vrot.slane %v1740_v35, 4  ;;  %v1793_v15 = vrot.slane %v1791_v3, 5  ;;  %v4562_v35 = vld [vmem:[%s5202_s28 + $0x10] sm:$0xf]  ;;  %v2055_v3 = vrot.slane %v4569_v61, 5 }
 0x153   : > { %1847 = vrot.lane.b32.xlu0 %v1656_v62, %s5118_s5  ;;  %1845 = vrot.lane.b32.xlu2 %v1642_v4, %s5118_s5  ;;  %v1801_v62 = vshrl.u32 %v4559_v47, 16  ;;  %v1777_v4 = vshrl.u32 %v4556_v40, 16  ;;  %v2038_v38 = vrot.slane %v4562_v35, 5  ;;  %v4610_v47 = vrot.slane %v4564_v39, 9 }
 0x154   : > { %v1269_v11 = vpop.permute.xlu1 %1268  ;;  %v1746_v8 = vor.u32 %v1745_v53, %v1742_v52  ;;  %v1794_v26 = vor.u32 %v1793_v15, %v1790_v14  ;;  %v4568_v52 = vld [vmem:[%s5202_s28 + $0x28] sm:$0xf]  ;;  %v4572_v15 = vld [vmem:[%s5202_s28 + $0x38] sm:$0x1] }
 0x155   : > { %1356 = vst.msk [vmem:[#allocation2 + $0x24] sm:$0xf] %vm1346_vm10, %v1269_v11  ;;  %v1267_v16 = vpop.permute.xlu0 %1266  ;;  %v1283_v21 = vpop.permute.xlu2 %1282  ;;  %v1803_v9 = vrot.slane %v1801_v62, 4  ;;  %v1757_v11 = vrot.slane %v1756_v0, 4  ;;  %v1779_v18 = vrot.slane %v1777_v4, 4  ;;  %v2040_v50 = vrot.slane %v2038_v38, 4 }
 0x156   : > { %1355 = vst.msk [vmem:[#allocation2 + $0x20] sm:$0xf] %vm1346_vm10, %v1267_v16  ;;  %v1747_v17 = vrot.slane %v1746_v8, 4  ;;  %v1795_v33 = vrot.slane %v1794_v26, 4  ;;  %v4567_v62 = vld [vmem:[%s5202_s28 + $0x24] sm:$0xe] }
 0x157   : > { %1363 = vst.msk [vmem:[#allocation2 + $0x40] sm:$0xf] %vm1346_vm10, %v1283_v21  ;;  %v1776_v21 = vsel %vm5213_vm2, %v1771_v7, %v1775_v59  ;;  %v1804_v22 = vor.u32 %v1803_v9, %v1799_v5  ;;  %v1780_v28 = vor.u32 %v1779_v18, %v1775_v59  ;;  %v4571_v7 = vld [vmem:[%s5202_s28 + $0x34] sm:$0xf]  ;;  %v2047_v59 = vrot.slane %v2045_v48, 4 }
 0x158   : > { %v1752_v27 = vsel %vm5213_vm2, %v1747_v17, %v1751_v45  ;;  %v1800_v42 = vsel %vm5213_vm2, %v1795_v33, %v1799_v5  ;;  %v2048_v5 = vrot.slane %v4566_v1, 5  ;;  %v2059_v14 = vrot.slane %v4571_v7, 5  ;;  %v4570_v17 = vld [vmem:[%s5202_s28 + $0x30] sm:$0xe] }
 0x159   : > { %v1781_v36 = vrot.slane %v1780_v28, 4  ;;  %v4612_v26 = vrot.slane %v4570_v17, 9  ;;  %v4591_v17 = vld [vmem:[%s5202_s28 + $0x84] sm:$0xe] }
 0x15a   : > { %1855 = vrot.lane.b32.xlu1 %v1704_v24, %s5118_s5  ;;  %v1762_v24 = vsel %vm5213_vm2, %v1757_v11, %v1761_v12  ;;  %v4573_v12 = vld [vmem:[%s5202_s28 + $0x3c] sm:$0xe] }
 0x15b   : > { %1853 = vrot.lane.b32.xlu0 %v1690_v29, %s5118_s5  ;;  %1851 = vrot.lane.b32.xlu2 %v1680_v30, %s5118_s5  ;;  %v1783_v29 = vshll.u32 %v4557_v20, 16  ;;  %v1805_v30 = vrot.slane %v1804_v22, 4  ;;  %v4613_v18 = vrot.slane %v4573_v12, 9  ;;  %v2062_v22 = vrot.slane %v4572_v15, 5 }
 0x15c   : > { %v1275_v44 = vpop.permute.xlu1 %1274  ;;  %v2060_v33 = vsel %vm5387_vm6, %v4612_v26, %v2059_v14 }
 0x15d   : > { %1359 = vst.msk [vmem:[#allocation2 + $0x30] sm:$0xf] %vm1346_vm10, %v1275_v44  ;;  %v1273_v49 = vpop.permute.xlu0 %1272  ;;  %v1289_v56 = vpop.permute.xlu2 %1288  ;;  %v1785_v37 = vrot.slane %v1783_v29, 5  ;;  %v1810_v40 = vsel %vm5213_vm2, %v1805_v30, %v1809_v31  ;;  %v4563_v44 = vld [vmem:[%s5202_s28 + $0x14] sm:$0x1]  ;;  %v2073_v29 = vrot.slane %v4577_v23, 5 }
 0x15e   : > { %1358 = vst.msk [vmem:[#allocation2 + $0x2c] sm:$0xf] %vm1346_vm10, %v1273_v49  ;;  %v2041_v51 = vrot.slane %v4563_v44, 5  ;;  %v4578_v31 = vld [vmem:[%s5202_s28 + $0x50] sm:$0x1]  ;;  %v4619_v23 = vrot.slane %v4591_v17, 9 }
 0x15f   : > { %1366 = vst.msk [vmem:[#allocation2 + $0x4c] sm:$0xf] %vm1346_vm10, %v1289_v56  ;;  %v1786_v45 = vsel %vm5213_vm2, %v1781_v36, %v1785_v37  ;;  %v2046_v56 = vsel %vm5387_vm6, %v4610_v47, %v2045_v48  ;;  %v2075_v35 = vrot.slane %v2073_v29, 4  ;;  %v2076_v36 = vrot.slane %v4578_v31, 5  ;;  %v4583_v47 = vld [vmem:[%s5202_s28 + $0x64] sm:$0xf] }
 0x160   : > { %v2042_v58 = vsel %vm5387_vm6, %v2040_v50, %v2041_v51  ;;  %v4579_v51 = vld [vmem:[%s5202_s28 + $0x54] sm:$0xe] }
 0x161   : > { %v2077_v44 = vsel %vm5387_vm6, %v2075_v35, %v2076_v36  ;;  %v4615_v61 = vrot.slane %v4579_v51, 9  ;;  %v4596_v36 = vld [vmem:[%s5202_s28 + $0x98] sm:$0x1]  ;;  %v4600_v51 = vld [vmem:[%s5202_s28 + $0xa8] sm:$0xe] }
 0x162   : > { %1861 = vrot.lane.b32.xlu1 %v1738_v54, %s5118_s5  ;;  %v4609_v54 = vrot.slane %v4561_v46, 9  ;;  %v4582_v46 = vld [vmem:[%s5202_s28 + $0x60] sm:$0xe] }
 0x163   : > { %1859 = vrot.lane.b32.xlu0 %v1728_v57, %s5118_s5  ;;  %1857 = vrot.lane.b32.xlu2 %v1714_v6, %s5118_s5  ;;  %v2052_v57 = vrot.slane %v4568_v52, 5  ;;  %v4611_v6 = vrot.slane %v4567_v62, 9  ;;  %v4616_v52 = vrot.slane %v4582_v46, 9 }
 0x164   : > { %v1281_v10 = vpop.permute.xlu1 %1280  ;;  %v2039_v0 = vsel %vm5387_vm6, %v4609_v54, %v2038_v38 }
 0x165   : > { %1362 = vst.msk [vmem:[#allocation2 + $0x3c] sm:$0xf] %vm1346_vm10, %v1281_v10  ;;  %v1279_v16 = vpop.permute.xlu0 %1278  ;;  %v1295_v19 = vpop.permute.xlu2 %1294  ;;  %v2054_v60 = vrot.slane %v2052_v57, 4  ;;  %v2053_v11 = vsel %vm5387_vm6, %v4611_v6, %v2052_v57  ;;  %v4586_v57 = vld [vmem:[%s5202_s28 + $0x70] sm:$0xf] }
 0x166   : > { %1361 = vst.msk [vmem:[#allocation2 + $0x38] sm:$0xf] %vm1346_vm10, %v1279_v16  ;;  %v2049_v16 = vsel %vm5387_vm6, %v2047_v59, %v2048_v5  ;;  %v2094_v1 = vrot.slane %v4586_v57, 5  ;;  %v4622_v57 = vrot.slane %v4600_v51, 9 }
 0x167   : > { %1369 = vst.msk [vmem:[#allocation2 + $0x58] sm:$0xf] %vm1346_vm10, %v1295_v19  ;;  %v2056_v10 = vsel %vm5387_vm6, %v2054_v60, %v2055_v3  ;;  %v2066_v19 = vrot.slane %v4574_v13, 5  ;;  %v4587_v3 = vld [vmem:[%s5202_s28 + $0x74] sm:$0x1] }
 0x168   : > { %v2096_v7 = vrot.slane %v2094_v1, 4  ;;  %v2097_v59 = vrot.slane %v4587_v3, 5 }
 0x169   : > { %v2067_v28 = vsel %vm5387_vm6, %v4613_v18, %v2066_v19  ;;  %v2068_v39 = vrot.slane %v2066_v19, 4  ;;  %v4592_v18 = vld [vmem:[%s5202_s28 + $0x88] sm:$0xf] }
 0x16a   : > { %1867 = vrot.lane.b32.xlu1 %v1776_v21, %s5118_s5  ;;  %v2061_v21 = vrot.slane %v2059_v14, 4  ;;  %v2098_v15 = vsel %vm5387_vm6, %v2096_v7, %v2097_v59 }
 0x16b   : > { %1865 = vrot.lane.b32.xlu0 %v1762_v24, %s5118_s5  ;;  %1863 = vrot.lane.b32.xlu2 %v1752_v27, %s5118_s5 }
 0x16c   : > { %v1287_v32 = vpop.permute.xlu1 %1286  ;;  %v2063_v30 = vsel %vm5387_vm6, %v2061_v21, %v2062_v22  ;;  %v4588_v22 = vld [vmem:[%s5202_s28 + $0x78] sm:$0xe] }
 0x16d   : > { %1365 = vst.msk [vmem:[#allocation2 + $0x48] sm:$0xf] %vm1346_vm10, %v1287_v32  ;;  %v1285_v34 = vpop.permute.xlu0 %1284  ;;  %v1301_v41 = vpop.permute.xlu2 %1300  ;;  %v4576_v32 = vld [vmem:[%s5202_s28 + $0x48] sm:$0xe]  ;;  %v4618_v31 = vrot.slane %v4588_v22, 9 }
 0x16e   : > { %1364 = vst.msk [vmem:[#allocation2 + $0x44] sm:$0xf] %vm1346_vm10, %v1285_v34  ;;  %v4575_v34 = vld [vmem:[%s5202_s28 + $0x44] sm:$0x1] }
 0x16f   : > { %1372 = vst.msk [vmem:[#allocation2 + $0x64] sm:$0xf] %vm1346_vm10, %v1301_v41  ;;  %v4614_v41 = vrot.slane %v4576_v32, 9  ;;  %v2069_v43 = vrot.slane %v4575_v34, 5 }
 0x171   : > { %v2070_v50 = vsel %vm5387_vm6, %v2068_v39, %v2069_v43  ;;  %v2118_v39 = vrot.slane %v4596_v36, 5 }
 0x172   : > { %1873 = vrot.lane.b32.xlu1 %v1810_v40, %s5118_s5 }
 0x173   : > { %1871 = vrot.lane.b32.xlu0 %v1800_v42, %s5118_s5  ;;  %1869 = vrot.lane.b32.xlu2 %v1786_v45, %s5118_s5  ;;  %v4580_v42 = vld [vmem:[%s5202_s28 + $0x58] sm:$0xf]  ;;  %v2074_v45 = vsel %vm5387_vm6, %v4614_v41, %v2073_v29  ;;  %v4595_v29 = vld [vmem:[%s5202_s28 + $0x94] sm:$0xf] }
 0x174   : > { %v1293_v49 = vpop.permute.xlu1 %1292  ;;  %v2080_v48 = vrot.slane %v4580_v42, 5  ;;  %v2115_v34 = vrot.slane %v4595_v29, 5 }
 0x175   : > { %1368 = vst.msk [vmem:[#allocation2 + $0x54] sm:$0xf] %vm1346_vm10, %v1293_v49  ;;  %v1291_v53 = vpop.permute.xlu0 %1290  ;;  %v1307_v55 = vpop.permute.xlu2 %1306  ;;  %v4581_v49 = vld [vmem:[%s5202_s28 + $0x5c] sm:$0x1] }
 0x176   : > { %1367 = vst.msk [vmem:[#allocation2 + $0x50] sm:$0xf] %vm1346_vm10, %v1291_v53  ;;  %v2087_v53 = vrot.slane %v4583_v47, 5  ;;  %v2081_v6 = vsel %vm5387_vm6, %v4615_v61, %v2080_v48  ;;  %v2117_v42 = vrot.slane %v2115_v34, 4 }
 0x177   : > { %1375 = vst.msk [vmem:[#allocation2 + $0x70] sm:$0xf] %vm1346_vm10, %v1307_v55  ;;  %v2082_v55 = vrot.slane %v2080_v48, 4 }
 0x178   : > { %v2089_v12 = vrot.slane %v2087_v53, 4 }
 0x17a   : > { %2152 = vrot.lane.b32.xlu1 %v2046_v56, %s5119_s6  ;;  %v2083_v56 = vrot.slane %v4581_v49, 5  ;;  %v2119_v49 = vsel %vm5387_vm6, %v2117_v42, %v2118_v39 }
 0x17b   : > { %2150 = vrot.lane.b32.xlu0 %v2042_v58, %s5119_s6  ;;  %2148 = vrot.lane.b32.xlu2 %v2039_v0, %s5119_s6  ;;  %v2088_v0 = vsel %vm5387_vm6, %v4616_v52, %v2087_v53  ;;  %v4601_v52 = vld [vmem:[%s5202_s28 + $0xac] sm:$0xf] }
 0x17c   : > { %v1299_v4 = vpop.permute.xlu1 %1298  ;;  %v2084_v60 = vsel %vm5387_vm6, %v2082_v55, %v2083_v56  ;;  %v4597_v56 = vld [vmem:[%s5202_s28 + $0x9c] sm:$0xe] }
 0x17d   : > { %1371 = vst.msk [vmem:[#allocation2 + $0x60] sm:$0xf] %vm1346_vm10, %v1299_v4  ;;  %v1297_v8 = vpop.permute.xlu0 %1296  ;;  %v1313_v9 = vpop.permute.xlu2 %1312  ;;  %v4585_v4 = vld [vmem:[%s5202_s28 + $0x6c] sm:$0xe]  ;;  %v4621_v3 = vrot.slane %v4597_v56, 9 }
 0x17e   : > { %1370 = vst.msk [vmem:[#allocation2 + $0x5c] sm:$0xf] %vm1346_vm10, %v1297_v8  ;;  %v4584_v8 = vld [vmem:[%s5202_s28 + $0x68] sm:$0x1]  ;;  %v4627_v56 = vld [vmem:[%s5202_s28 + $0x24] sm:$0xf] }
 0x17f   : > { %1378 = vst.msk [vmem:[#allocation2 + $0x7c] sm:$0xf] %vm1346_vm10, %v1313_v9  ;;  %v4617_v9 = vrot.slane %v4585_v4, 9  ;;  %v2090_v13 = vrot.slane %v4584_v8, 5  ;;  %v4657_v4 = vld [vmem:[%s5202_s28 + $0x18] sm:$0xf] }
 0x181   : > { %v2091_v21 = vsel %vm5387_vm6, %v2089_v12, %v2090_v13  ;;  %v6136_v12 = vld [vmem:[%s5202_s28 + $0xb8] sm:$0xf] }
 0x182   : > { %2158 = vrot.lane.b32.xlu1 %v2056_v10, %s5119_s6 }
 0x183   : > { %2156 = vrot.lane.b32.xlu0 %v2053_v11, %s5119_s6  ;;  %2154 = vrot.lane.b32.xlu2 %v2049_v16, %s5119_s6  ;;  %v4589_v11 = vld [vmem:[%s5202_s28 + $0x7c] sm:$0xf]  ;;  %v2095_v16 = vsel %vm5387_vm6, %v4617_v9, %v2094_v1  ;;  %v2520_v9 = vshrl.u32 %v4657_v4, 16 }
 0x184   : > { %v1305_v20 = vpop.permute.xlu1 %1304  ;;  %v2101_v19 = vrot.slane %v4589_v11, 5  ;;  %v4658_v1 = vld [vmem:[%s5202_s28 + $0x1c] sm:$0xf]  ;;  %v4603_v11 = vld [vmem:[%s5202_s28 + $0xb4] sm:$0xe] }
 0x185   : > { %1374 = vst.msk [vmem:[#allocation2 + $0x6c] sm:$0xf] %vm1346_vm10, %v1305_v20  ;;  %v1303_v24 = vpop.permute.xlu0 %1302  ;;  %v1816_v27 = vpop.permute.xlu2 %1815  ;;  %v4590_v20 = vld [vmem:[%s5202_s28 + $0x80] sm:$0x1]  ;;  %v2529_v7 = vshll.u32 %v4658_v1, 16  ;;  %v2533_v59 = vshrl.u32 %v4658_v1, 16 }
 0x186   : > { %1373 = vst.msk [vmem:[#allocation2 + $0x68] sm:$0xf] %vm1346_vm10, %v1303_v24  ;;  %v2108_v24 = vrot.slane %v4592_v18, 5  ;;  %v2102_v41 = vsel %vm5387_vm6, %v4618_v31, %v2101_v19  ;;  %v4623_v18 = vrot.slane %v4603_v11, 9 }
 0x187   : > { %1910 = vst.msk [vmem:[#allocation2 + $0x8] sm:$0xf] %vm1907_vm11, %v1816_v27  ;;  %v2103_v27 = vrot.slane %v2101_v19, 4  ;;  %v2136_v19 = vrot.slane %v6136_v12, 5 }
 0x188   : > { %v2110_v46 = vrot.slane %v2108_v24, 4 }
 0x189   : > { %v2137_v31 = vsel %vm5387_vm6, %v4623_v18, %v2136_v19  ;;  %v4633_v18 = vld [vmem:[%s5202_s28 + $0x48] sm:$0xf] }
 0x18a   : > { %2164 = vrot.lane.b32.xlu1 %v2067_v28, %s5119_s6  ;;  %v2104_v28 = vrot.slane %v4590_v20, 5  ;;  %v4659_v20 = vld [vmem:[%s5202_s28 + $0x20] sm:$0x1] }
 0x18b   : > { %2162 = vrot.lane.b32.xlu0 %v2063_v30, %s5119_s6  ;;  %2160 = vrot.lane.b32.xlu2 %v2060_v33, %s5119_s6  ;;  %v2109_v33 = vsel %vm5387_vm6, %v4619_v23, %v2108_v24 }
 0x18c   : > { %v1311_v37 = vpop.permute.xlu1 %1310  ;;  %v2105_v35 = vsel %vm5387_vm6, %v2103_v27, %v2104_v28  ;;  %v4625_v28 = vld [vmem:[%s5202_s28 + $0x18] sm:$0xf] }
 0x18d   : > { %1377 = vst.msk [vmem:[#allocation2 + $0x78] sm:$0xf] %vm1346_vm10, %v1311_v37  ;;  %v1309_v40 = vpop.permute.xlu0 %1308  ;;  %v1822_v38 = vpop.permute.xlu2 %1821  ;;  %v4594_v37 = vld [vmem:[%s5202_s28 + $0x90] sm:$0xe] }
 0x18e   : > { %1376 = vst.msk [vmem:[#allocation2 + $0x74] sm:$0xf] %vm1346_vm10, %v1309_v40  ;;  %v4593_v40 = vld [vmem:[%s5202_s28 + $0x8c] sm:$0x1] }
 0x18f   : > { %1913 = vst.msk [vmem:[#allocation2 + $0x14] sm:$0xf] %vm1907_vm11, %v1822_v38  ;;  %v4620_v38 = vrot.slane %v4594_v37, 9  ;;  %v2111_v47 = vrot.slane %v4593_v40, 5  ;;  %v4706_v40 = vld [vmem:[%s5202_s28 + $0x1c] sm:$0xf] }
 0x191   : > { %v2112_v55 = vsel %vm5387_vm6, %v2110_v46, %v2111_v47  ;;  %v4705_v46 = vld [vmem:[%s5202_s28 + $0x18] sm:$0xe] }
 0x192   : > { %2170 = vrot.lane.b32.xlu1 %v2077_v44, %s5119_s6 }
 0x193   : > { %2168 = vrot.lane.b32.xlu0 %v2074_v45, %s5119_s6  ;;  %2166 = vrot.lane.b32.xlu2 %v2070_v50, %s5119_s6  ;;  %v4598_v45 = vld [vmem:[%s5202_s28 + $0xa0] sm:$0xf]  ;;  %v2116_v50 = vsel %vm5387_vm6, %v4620_v38, %v2115_v34  ;;  %v3130_v38 = vrot.slane %v4706_v40, 5 }
 0x194   : > { %v1814_v54 = vpop.permute.xlu1 %1813  ;;  %v2122_v53 = vrot.slane %v4598_v45, 5  ;;  %v4626_v45 = vld [vmem:[%s5202_s28 + $0x1c] sm:$0xf] }
 0x195   : > { %1909 = vst.msk [vmem:[#allocation2 + $0x4] sm:$0xf] %vm1907_vm11, %v1814_v54  ;;  %v1812_v58 = vpop.permute.xlu0 %1811  ;;  %v1828_v62 = vpop.permute.xlu2 %1827  ;;  %v4599_v54 = vld [vmem:[%s5202_s28 + $0xa4] sm:$0x1] }
 0x196   : > { %1908 = vst.msk [vmem:[#allocation2] sm:$0xf] %vm1907_vm11, %v1812_v58  ;;  %v2129_v58 = vrot.slane %v4601_v52, 5  ;;  %v2123_v13 = vsel %vm5387_vm6, %v4621_v3, %v2122_v53  ;;  %v4753_v52 = vrot.slane %v4705_v46, 9 }
 0x197   : > { %1916 = vst.msk [vmem:[#allocation2 + $0x20] sm:$0xf] %vm1907_vm11, %v1828_v62  ;;  %v2124_v62 = vrot.slane %v2122_v53, 4  ;;  %v4661_v53 = vld [vmem:[%s5202_s28 + $0x28] sm:$0xf] }
 0x198   : > { %v2130_v8 = vsel %vm5387_vm6, %v4622_v57, %v2129_v58  ;;  %v2131_v24 = vrot.slane %v2129_v58, 4  ;;  %v3131_v1 = vsel %vm5387_vm6, %v4753_v52, %v3130_v38 }
 0x19a   : > { %2176 = vrot.lane.b32.xlu1 %v2088_v0, %s5119_s6  ;;  %v2125_v0 = vrot.slane %v4599_v54, 5 }
 0x19b   : > { %2174 = vrot.lane.b32.xlu0 %v2084_v60, %s5119_s6  ;;  %2172 = vrot.lane.b32.xlu2 %v2081_v6, %s5119_s6 }
 0x19c   : > { %v1820_v5 = vpop.permute.xlu1 %1819 }
 0x19d   : > { %1912 = vst.msk [vmem:[#allocation2 + $0x10] sm:$0xf] %vm1907_vm11, %v1820_v5  ;;  %v1818_v10 = vpop.permute.xlu0 %1817  ;;  %v1834_v14 = vpop.permute.xlu2 %1833  ;;  %v2126_v5 = vsel %vm5387_vm6, %v2124_v62, %v2125_v0  ;;  %v2553_v62 = vshll.u32 %v4661_v53, 16  ;;  %v2557_v0 = vshrl.u32 %v4661_v53, 16 }
 0x19e   : > { %1911 = vst.msk [vmem:[#allocation2 + $0xc] sm:$0xf] %vm1907_vm11, %v1818_v10  ;;  %v2523_v10 = vshll.u32 %v4657_v4, 16 }
 0x19f   : > { %1919 = vst.msk [vmem:[#allocation2 + $0x2c] sm:$0xf] %vm1907_vm11, %v1834_v14  ;;  %v4602_v14 = vld [vmem:[%s5202_s28 + $0xb0] sm:$0x1] }
 0x1a0   : > { %v2525_v22 = vrot.slane %v2523_v10, 5  ;;  %v4662_v10 = vld [vmem:[%s5202_s28 + $0x2c] sm:$0x1] }
 0x1a2   : > { %2182 = vrot.lane.b32.xlu1 %v2098_v15, %s5119_s6  ;;  %v2531_v15 = vrot.slane %v2529_v7, 5  ;;  %v4670_v7 = vld [vmem:[%s5202_s28 + $0x4c] sm:$0xf] }
 0x1a3   : > { %2180 = vrot.lane.b32.xlu0 %v2095_v16, %s5119_s6  ;;  %2178 = vrot.lane.b32.xlu2 %v2091_v21, %s5119_s6  ;;  %v2535_v16 = vrot.slane %v2533_v59, 4  ;;  %v2522_v21 = vrot.slane %v2520_v9, 4  ;;  %v2555_v59 = vrot.slane %v2553_v62, 5 }
 0x1a4   : > { %v1826_v26 = vpop.permute.xlu1 %1825 }
 0x1a5   : > { %1915 = vst.msk [vmem:[#allocation2 + $0x1c] sm:$0xf] %vm1907_vm11, %v1826_v26  ;;  %v1824_v30 = vpop.permute.xlu0 %1823  ;;  %v1840_v32 = vpop.permute.xlu2 %1839  ;;  %v2132_v26 = vrot.slane %v4602_v14, 5  ;;  %v2536_v29 = vor.u32 %v2535_v16, %v2531_v15 }
 0x1a6   : > { %1914 = vst.msk [vmem:[#allocation2 + $0x18] sm:$0xf] %vm1907_vm11, %v1824_v30  ;;  %v2539_v30 = vshll.u32 %v4659_v20, 16 }
 0x1a7   : > { %1922 = vst.msk [vmem:[#allocation2 + $0x38] sm:$0xf] %vm1907_vm11, %v1840_v32  ;;  %v2526_v32 = vor.u32 %v2525_v22, %v2522_v21  ;;  %v2537_v34 = vrot.slane %v2536_v29, 4  ;;  %v2563_v21 = vshll.u32 %v4662_v10, 16  ;;  %v2629_v22 = vshrl.u32 %v4670_v7, 16 }
 0x1a9   : > { %v2527_v37 = vrot.slane %v2526_v32, 4 }
 0x1aa   : > { %2188 = vrot.lane.b32.xlu1 %v2109_v33, %s5119_s6  ;;  %v2133_v33 = vsel %vm5387_vm6, %v2131_v24, %v2132_v26 }
 0x1ab   : > { %2186 = vrot.lane.b32.xlu0 %v2105_v35, %s5119_s6  ;;  %2184 = vrot.lane.b32.xlu2 %v2102_v41, %s5119_s6  ;;  %v2541_v35 = vrot.slane %v2539_v30, 5  ;;  %v2565_v30 = vrot.slane %v2563_v21, 5 }
 0x1ac   : > { %v1832_v43 = vpop.permute.xlu1 %1831 }
 0x1ad   : > { %1918 = vst.msk [vmem:[#allocation2 + $0x28] sm:$0xf] %vm1907_vm11, %v1832_v43  ;;  %v1830_v44 = vpop.permute.xlu0 %1829  ;;  %v1846_v48 = vpop.permute.xlu2 %1845  ;;  %v2542_v39 = vsel %vm5213_vm2, %v2537_v34, %v2541_v35  ;;  %v2532_v43 = vsel %vm5213_vm2, %v2527_v37, %v2531_v15  ;;  %v4634_v15 = vld [vmem:[%s5202_s28 + $0x4c] sm:$0xf]  ;;  %v2631_v34 = vrot.slane %v2629_v22, 4 }
 0x1ae   : > { %1917 = vst.msk [vmem:[#allocation2 + $0x24] sm:$0xf] %vm1907_vm11, %v1830_v44  ;;  %v4707_v44 = vld [vmem:[%s5202_s28 + $0x20] sm:$0x1] }
 0x1af   : > { %1925 = vst.msk [vmem:[#allocation2 + $0x44] sm:$0xf] %vm1907_vm11, %v1846_v48  ;;  %v3132_v48 = vrot.slane %v3130_v38, 4 }
 0x1b2   : > { %2194 = vrot.lane.b32.xlu1 %v2119_v49, %s5119_s6  ;;  %v3133_v49 = vrot.slane %v4707_v44, 5 }
 0x1b3   : > { %2192 = vrot.lane.b32.xlu0 %v2116_v50, %s5119_s6  ;;  %2190 = vrot.lane.b32.xlu2 %v2112_v55, %s5119_s6  ;;  %v4669_v50 = vld [vmem:[%s5202_s28 + $0x48] sm:$0xf]  ;;  %v4660_v55 = vld [vmem:[%s5202_s28 + $0x24] sm:$0xf] }
 0x1b4   : > { %v1838_v61 = vpop.permute.xlu1 %1837  ;;  %v2616_v57 = vshrl.u32 %v4669_v50, 16  ;;  %v2619_v58 = vshll.u32 %v4669_v50, 16  ;;  %v2547_v3 = vshll.u32 %v4660_v55, 16  ;;  %v4682_v50 = vld [vmem:[%s5202_s28 + $0x7c] sm:$0xf] }
 0x1b5   : > { %1921 = vst.msk [vmem:[#allocation2 + $0x34] sm:$0xf] %vm1907_vm11, %v1838_v61  ;;  %v1836_v60 = vpop.permute.xlu0 %1835  ;;  %v1852_v6 = vpop.permute.xlu2 %1851  ;;  %v3134_v61 = vsel %vm5387_vm6, %v3132_v48, %v3133_v49  ;;  %v4718_v49 = vld [vmem:[%s5202_s28 + $0x4c] sm:$0xf] }
 0x1b6   : > { %1920 = vst.msk [vmem:[#allocation2 + $0x30] sm:$0xf] %vm1907_vm11, %v1836_v60  ;;  %v2544_v60 = vshrl.u32 %v4660_v55, 16  ;;  %v2618_v4 = vrot.slane %v2616_v57, 4  ;;  %v2721_v57 = vshll.u32 %v4682_v50, 16  ;;  %v3158_v62 = vrot.slane %v4718_v49, 5 }
 0x1b7   : > { %1928 = vst.msk [vmem:[#allocation2 + $0x50] sm:$0xf] %vm1907_vm11, %v1852_v6  ;;  %v2621_v6 = vrot.slane %v2619_v58, 5  ;;  %v2725_v58 = vshrl.u32 %v4682_v50, 16 }
 0x1b8   : > { %v2546_v11 = vrot.slane %v2544_v60, 4  ;;  %v4719_v60 = vld [vmem:[%s5202_s28 + $0x50] sm:$0x1] }
 0x1b9   : > { %v2622_v16 = vor.u32 %v2621_v6, %v2618_v4  ;;  %v4717_v4 = vld [vmem:[%s5202_s28 + $0x48] sm:$0xe]  ;;  %v2723_v6 = vrot.slane %v2721_v57, 5 }
 0x1ba   : > { %2200 = vrot.lane.b32.xlu1 %v2130_v8, %s5119_s6 }
 0x1bb   : > { %2198 = vrot.lane.b32.xlu0 %v2126_v5, %s5119_s6  ;;  %2196 = vrot.lane.b32.xlu2 %v2123_v13, %s5119_s6  ;;  %v2559_v5 = vrot.slane %v2557_v0, 4  ;;  %v2549_v13 = vrot.slane %v2547_v3, 5  ;;  %v2623_v26 = vrot.slane %v2622_v16, 4  ;;  %v4641_v16 = vld [vmem:[%s5202_s28 + $0x78] sm:$0xf] }
 0x1bc   : > { %v1844_v17 = vpop.permute.xlu1 %1843 }
 0x1bd   : > { %1924 = vst.msk [vmem:[#allocation2 + $0x40] sm:$0xf] %vm1907_vm11, %v1844_v17  ;;  %v1842_v23 = vpop.permute.xlu0 %1841  ;;  %v1858_v27 = vpop.permute.xlu2 %1857  ;;  %v2625_v17 = vshll.u32 %v4670_v7, 16  ;;  %v2560_v20 = vor.u32 %v2559_v5, %v2555_v59  ;;  %v2550_v24 = vor.u32 %v2549_v13, %v2546_v11  ;;  %v3161_v5 = vrot.slane %v4719_v60, 5 }
 0x1be   : > { %1923 = vst.msk [vmem:[#allocation2 + $0x3c] sm:$0xf] %vm1907_vm11, %v1842_v23  ;;  %v4628_v23 = vld [vmem:[%s5202_s28 + $0x28] sm:$0xf] }
 0x1bf   : > { %1931 = vst.msk [vmem:[#allocation2 + $0x5c] sm:$0xf] %vm1907_vm11, %v1858_v27  ;;  %v2627_v27 = vrot.slane %v2625_v17, 5  ;;  %v2561_v29 = vrot.slane %v2560_v20, 4 }
 0x1c1   : > { %v2628_v37 = vsel %vm5213_vm2, %v2623_v26, %v2627_v27  ;;  %v2566_v40 = vsel %vm5213_vm2, %v2561_v29, %v2565_v30  ;;  %v2632_v38 = vor.u32 %v2631_v34, %v2627_v27  ;;  %v4730_v29 = vld [vmem:[%s5202_s28 + $0x7c] sm:$0xf]  ;;  %v4731_v34 = vld [vmem:[%s5202_s28 + $0x80] sm:$0x1] }
 0x1c2   : > { %2342 = vrot.lane.b32.xlu1 %v4625_v28, %s5120_s7 }
 0x1c3   : > { %2204 = vrot.lane.b32.xlu0 %v2137_v31, %s5119_s6  ;;  %2202 = vrot.lane.b32.xlu2 %v2133_v33, %s5119_s6  ;;  %v4709_v31 = vld [vmem:[%s5202_s28 + $0x28] sm:$0xf]  ;;  %v2551_v33 = vrot.slane %v2550_v24, 4  ;;  %v2633_v52 = vrot.slane %v2632_v38, 4  ;;  %v4664_v38 = vld [vmem:[%s5202_s28 + $0x34] sm:$0xf] }
 0x1c4   : > { %v1850_v36 = vpop.permute.xlu1 %1849  ;;  %v2577_v50 = vshll.u32 %v4664_v38, 16 }
 0x1c5   : > { %1927 = vst.msk [vmem:[#allocation2 + $0x4c] sm:$0xf] %vm1907_vm11, %v1850_v36  ;;  %v1848_v41 = vpop.permute.xlu0 %1847  ;;  %v1864_v42 = vpop.permute.xlu2 %1863  ;;  %v4671_v36 = vld [vmem:[%s5202_s28 + $0x50] sm:$0x1] }
 0x1c6   : > { %1926 = vst.msk [vmem:[#allocation2 + $0x48] sm:$0xf] %vm1907_vm11, %v1848_v41  ;;  %v3137_v41 = vrot.slane %v4709_v31, 5  ;;  %v2635_v44 = vshll.u32 %v4671_v36, 16  ;;  %v4729_v36 = vld [vmem:[%s5202_s28 + $0x78] sm:$0xe] }
 0x1c7   : > { %1934 = vst.msk [vmem:[#allocation2 + $0x68] sm:$0xf] %vm1907_vm11, %v1864_v42  ;;  %v4710_v42 = vld [vmem:[%s5202_s28 + $0x2c] sm:$0x1] }
 0x1c8   : > { %v3140_v46 = vrot.slane %v4710_v42, 5  ;;  %v2637_v53 = vrot.slane %v2635_v44, 5  ;;  %v4672_v42 = vld [vmem:[%s5202_s28 + $0x54] sm:$0xf] }
 0x1ca   : > { %2905 = vrot.lane.b32.xlu1 %v2542_v39, %s5121_s8  ;;  %v4708_v39 = vld [vmem:[%s5202_s28 + $0x24] sm:$0xe]  ;;  %v2638_v3 = vsel %vm5213_vm2, %v2633_v52, %v2637_v53 }
 0x1cb   : > { %2903 = vrot.lane.b32.xlu0 %v2532_v43, %s5121_s8  ;;  %2344 = vrot.lane.b32.xlu2 %v4626_v45, %s5120_s7  ;;  %v2556_v43 = vsel %vm5213_vm2, %v2551_v33, %v2555_v59  ;;  %v3139_v45 = vrot.slane %v3137_v41, 4  ;;  %v4754_v48 = vrot.slane %v4708_v39, 9  ;;  %v3160_v59 = vrot.slane %v3158_v62, 4 }
 0x1cc   : > { %v1856_v47 = vpop.permute.xlu1 %1855  ;;  %v3186_v33 = vrot.slane %v4730_v29, 5 }
 0x1cd   : > { %1930 = vst.msk [vmem:[#allocation2 + $0x58] sm:$0xf] %vm1907_vm11, %v1856_v47  ;;  %v1854_v51 = vpop.permute.xlu0 %1853  ;;  %v1870_v54 = vpop.permute.xlu2 %1869  ;;  %v3162_v20 = vsel %vm5387_vm6, %v3160_v59, %v3161_v5  ;;  %v4635_v59 = vld [vmem:[%s5202_s28 + $0x54] sm:$0xf] }
 0x1ce   : > { %1929 = vst.msk [vmem:[#allocation2 + $0x54] sm:$0xf] %vm1907_vm11, %v1854_v51 }
 0x1cf   : > { %1937 = vst.msk [vmem:[#allocation2 + $0x74] sm:$0xf] %vm1907_vm11, %v1870_v54  ;;  %v4681_v54 = vld [vmem:[%s5202_s28 + $0x78] sm:$0xf] }
 0x1d0   : > { %v2712_v0 = vshrl.u32 %v4681_v54, 16 }
 0x1d2   : > { %2346 = vrot.lane.b32.xlu1 %v4627_v56, %s5120_s7  ;;  %v3141_v56 = vsel %vm5387_vm6, %v3139_v45, %v3140_v46  ;;  %v2714_v10 = vrot.slane %v2712_v0, 4  ;;  %v4663_v45 = vld [vmem:[%s5202_s28 + $0x30] sm:$0xf] }
 0x1d3   : > { %3242 = vrot.lane.b32.xlu0 %v3134_v61, %s5122_s9  ;;  %3240 = vrot.lane.b32.xlu2 %v3131_v1, %s5122_s9  ;;  %v3138_v61 = vsel %vm5387_vm6, %v4754_v48, %v3137_v41  ;;  %v2715_v1 = vshll.u32 %v4681_v54, 16  ;;  %v3188_v41 = vrot.slane %v3186_v33, 4  ;;  %v4629_v46 = vld [vmem:[%s5202_s28 + $0x30] sm:$0xf]  ;;  %v2643_v48 = vshll.u32 %v4672_v42, 16 }
 0x1d4   : > { %v1862_v8 = vpop.permute.xlu1 %1861  ;;  %v2568_v53 = vshrl.u32 %v4663_v45, 16  ;;  %v2571_v54 = vshll.u32 %v4663_v45, 16 }
 0x1d5   : > { %1933 = vst.msk [vmem:[#allocation2 + $0x64] sm:$0xf] %vm1907_vm11, %v1862_v8  ;;  %v1860_v9 = vpop.permute.xlu0 %1859  ;;  %v2149_v14 = vpop.permute.xlu2 %2148  ;;  %v2727_v8 = vrot.slane %v2725_v58, 4  ;;  %v2717_v11 = vrot.slane %v2715_v1, 5  ;;  %v4673_v58 = vld [vmem:[%s5202_s28 + $0x58] sm:$0xf] }
 0x1d6   : > { %1932 = vst.msk [vmem:[#allocation2 + $0x60] sm:$0xf] %vm1907_vm11, %v1860_v9  ;;  %v4683_v9 = vld [vmem:[%s5202_s28 + $0x80] sm:$0x1]  ;;  %v4665_v1 = vld [vmem:[%s5202_s28 + $0x38] sm:$0x1] }
 0x1d7   : > { %2245 = vst.msk [vmem:[#allocation2] sm:$0xf] %vm2244_vm12, %v2149_v14  ;;  %v4757_v14 = vrot.slane %v4717_v4, 9  ;;  %v2728_v17 = vor.u32 %v2727_v8, %v2723_v6  ;;  %v2718_v21 = vor.u32 %v2717_v11, %v2714_v10  ;;  %v2570_v60 = vrot.slane %v2568_v53, 4  ;;  %v4630_v11 = vld [vmem:[%s5202_s28 + $0x34] sm:$0xf] }
 0x1d8   : > { %v2653_v10 = vshrl.u32 %v4673_v58, 16  ;;  %v4972_v53 = vld [vmem:[%s7235_s1 + $0x20] sm:$0xff] }
 0x1d9   : > { %v3159_v22 = vsel %vm5387_vm6, %v4757_v14, %v3158_v62  ;;  %v2719_v27 = vrot.slane %v2718_v21, 4 }
 0x1da   : > { %2360 = vrot.lane.b32.xlu1 %v4634_v15, %s5120_s7 }
 0x1db   : > { %2358 = vrot.lane.b32.xlu0 %v4633_v18, %s5120_s7  ;;  %2348 = vrot.lane.b32.xlu2 %v4628_v23, %s5120_s7  ;;  %v2731_v18 = vshll.u32 %v4683_v9, 16  ;;  %v2729_v23 = vrot.slane %v2728_v17, 4  ;;  %v2587_v9 = vshll.u32 %v4665_v1, 16 }
 0x1dc   : > { %v1868_v28 = vpop.permute.xlu1 %1867 }
 0x1dd   : > { %1936 = vst.msk [vmem:[#allocation2 + $0x70] sm:$0xf] %vm1907_vm11, %v1868_v28  ;;  %v1866_v32 = vpop.permute.xlu0 %1865  ;;  %v2155_v35 = vpop.permute.xlu2 %2154  ;;  %v2733_v24 = vrot.slane %v2731_v18, 5  ;;  %v2589_v18 = vrot.slane %v2587_v9, 5 }
 0x1de   : > { %1935 = vst.msk [vmem:[#allocation2 + $0x6c] sm:$0xf] %vm1907_vm11, %v1866_v32  ;;  %v2724_v32 = vsel %vm5213_vm2, %v2719_v27, %v2723_v6  ;;  %v4636_v6 = vld [vmem:[%s5202_s28 + $0x58] sm:$0xf] }
 0x1df   : > { %2248 = vst.msk [vmem:[#allocation2 + $0xc] sm:$0xf] %vm2244_vm12, %v2155_v35  ;;  %v2734_v31 = vsel %vm5213_vm2, %v2729_v23, %v2733_v24  ;;  %v4642_v35 = vld [vmem:[%s5202_s28 + $0x7c] sm:$0xf]  ;;  %v2655_v23 = vrot.slane %v2653_v10, 4 }
 0x1e0   : > { %v4975_v27 = vld [vmem:[%s7235_s1 + $0x38] sm:$0xff] }
 0x1e1   : > { %3561 = vmatpush.bf16.msra.mxu0 %v4975_v27  ;;  %4976 = vmatpush.bf16.msra.mxu1 %v4975_v27 }
 0x1e2   : > { %2919 = vrot.lane.b32.xlu1 %v2628_v37, %s5121_s8  ;;  %4977 = vmatpush.bf16.msra.mxu2 %v4975_v27 }
 0x1e3   : > { %2909 = vrot.lane.b32.xlu0 %v2566_v40, %s5121_s8  ;;  %2907 = vrot.lane.b32.xlu2 %v2556_v43, %s5121_s8  ;;  %v3189_v40 = vrot.slane %v4731_v34, 5  ;;  %v4761_v43 = vrot.slane %v4729_v36, 9 }
 0x1e4   : > { %v1874_v47 = vpop.permute.xlu1 %1873  ;;  %4978 = vmatpush.bf16.msra.mxu3 %v4975_v27  ;;  %v4650_v27 = vld [vmem:[%s5202_s28 + $0xac] sm:$0xf] }
 0x1e5   : > { %1939 = vst.msk [vmem:[#allocation2 + $0x7c] sm:$0xf] %vm1907_vm11, %v1874_v47  ;;  %v1872_v51 = vpop.permute.xlu0 %1871  ;;  %v2161_v55 = vpop.permute.xlu2 %2160  ;;  %v2640_v47 = vshrl.u32 %v4672_v42, 16  ;;  %v3190_v49 = vsel %vm5387_vm6, %v3188_v41, %v3189_v40  ;;  %v3187_v52 = vsel %vm5387_vm6, %v4761_v43, %v3186_v33  ;;  %v4974_v41 = vld [vmem:[%s7235_s1 + $0x30] sm:$0xff]  ;;  %v4721_v43 = vld [vmem:[%s5202_s28 + $0x58] sm:$0xf] }
 0x1e6   : > { %1938 = vst.msk [vmem:[#allocation2 + $0x78] sm:$0xf] %vm1907_vm11, %v1872_v51  ;;  %v2581_v51 = vshrl.u32 %v4664_v38, 16  ;;  %3562 = vmatpush.bf16.msra.mxu0 %v4974_v41  ;;  %4979 = vmatpush.bf16.msra.mxu1 %v4974_v41 }
 0x1e7   : > { %2251 = vst.msk [vmem:[#allocation2 + $0x18] sm:$0xf] %vm2244_vm12, %v2161_v55  ;;  %v2642_v55 = vrot.slane %v2640_v47, 4  ;;  %4980 = vmatpush.bf16.msra.mxu2 %v4974_v41 }
 0x1e8   : > { %v2583_v62 = vrot.slane %v2581_v51, 4  ;;  %4981 = vmatpush.bf16.msra.mxu3 %v4974_v41  ;;  %v4968_v41 = vld [vmem:[%s7235_s1] sm:$0xff] }
 0x1ea   : > { %3246 = vrot.lane.b32.xlu1 %v3141_v56, %s5122_s9  ;;  %v2645_v56 = vrot.slane %v2643_v48, 5 }
 0x1eb   : > { %3244 = vrot.lane.b32.xlu0 %v3138_v61, %s5122_s9  ;;  %2921 = vrot.lane.b32.xlu2 %v2638_v3, %s5121_s8  ;;  %v2579_v61 = vrot.slane %v2577_v50, 5  ;;  %v2573_v3 = vrot.slane %v2571_v54, 5  ;;  %v4722_v50 = vld [vmem:[%s5202_s28 + $0x5c] sm:$0x1] }
 0x1ec   : > { %v2153_v7 = vpop.permute.xlu1 %2152  ;;  %v2646_v8 = vor.u32 %v2645_v56, %v2642_v55  ;;  %v3168_v56 = vrot.slane %v4722_v50, 5 }
 0x1ed   : > { %2247 = vst.msk [vmem:[#allocation2 + $0x8] sm:$0xf] %vm2244_vm12, %v2153_v7  ;;  %v2151_v13 = vpop.permute.xlu0 %2150  ;;  %v2167_v15 = vpop.permute.xlu2 %2166  ;;  %v2649_v7 = vshll.u32 %v4673_v58, 16  ;;  %v2584_v5 = vor.u32 %v2583_v62, %v2579_v61  ;;  %v4685_v62 = vld [vmem:[%s5202_s28 + $0x88] sm:$0xf] }
 0x1ee   : > { %2246 = vst.msk [vmem:[#allocation2 + $0x4] sm:$0xf] %vm2244_vm12, %v2151_v13  ;;  %v2574_v13 = vor.u32 %v2573_v3, %v2570_v60  ;;  %v2647_v14 = vrot.slane %v2646_v8, 4  ;;  %v4684_v60 = vld [vmem:[%s5202_s28 + $0x84] sm:$0xf] }
 0x1ef   : > { %2254 = vst.msk [vmem:[#allocation2 + $0x24] sm:$0xf] %vm2244_vm12, %v2167_v15  ;;  %v2651_v15 = vrot.slane %v2649_v7, 5  ;;  %v2585_v17 = vrot.slane %v2584_v5, 4  ;;  %v2745_v7 = vshll.u32 %v4685_v62, 16  ;;  %v2736_v9 = vshrl.u32 %v4684_v60, 16 }
 0x1f0   : > { %v2739_v10 = vshll.u32 %v4684_v60, 16 }
 0x1f1   : > { %v2656_v34 = vor.u32 %v2655_v23, %v2651_v15 }
 0x1f2   : > { %2374 = vrot.lane.b32.xlu1 %v4641_v16, %s5120_s7  ;;  %v2741_v23 = vrot.slane %v2739_v10, 5 }
 0x1f3   : > { %3258 = vrot.lane.b32.xlu0 %v3162_v20, %s5122_s9  ;;  %3256 = vrot.lane.b32.xlu2 %v3159_v22, %s5122_s9  ;;  %v4712_v20 = vld [vmem:[%s5202_s28 + $0x34] sm:$0xf]  ;;  %v2575_v22 = vrot.slane %v2574_v13, 4  ;;  %v2657_v38 = vrot.slane %v2656_v34, 4  ;;  %v4644_v34 = vld [vmem:[%s5202_s28 + $0x88] sm:$0xf] }
 0x1f4   : > { %v2159_v26 = vpop.permute.xlu1 %2158  ;;  %v3144_v29 = vrot.slane %v4712_v20, 5 }
 0x1f5   : > { %2250 = vst.msk [vmem:[#allocation2 + $0x14] sm:$0xf] %vm2244_vm12, %v2159_v26  ;;  %v2157_v28 = vpop.permute.xlu0 %2156  ;;  %v2173_v30 = vpop.permute.xlu2 %2172  ;;  %v4674_v26 = vld [vmem:[%s5202_s28 + $0x5c] sm:$0x1]  ;;  %v2580_v33 = vsel %vm5213_vm2, %v2575_v22, %v2579_v61  ;;  %v2738_v22 = vrot.slane %v2736_v9, 4 }
 0x1f6   : > { %2249 = vst.msk [vmem:[#allocation2 + $0x10] sm:$0xf] %vm2244_vm12, %v2157_v28  ;;  %v2652_v28 = vsel %vm5213_vm2, %v2647_v14, %v2651_v15  ;;  %v3146_v36 = vrot.slane %v3144_v29, 4  ;;  %v4970_v14 = vld [vmem:[%s7235_s1 + $0x10] sm:$0xff] }
 0x1f7   : > { %2257 = vst.msk [vmem:[#allocation2 + $0x30] sm:$0xf] %vm2244_vm12, %v2173_v30  ;;  %v2590_v30 = vsel %vm5213_vm2, %v2585_v17, %v2589_v18  ;;  %v6346_v17 = vrot.slane %v2745_v7, 5  ;;  %v4743_v7 = vld [vmem:[%s5202_s28 + $0xb0] sm:$0x1] }
 0x1fa   : > { %2937 = vrot.lane.b32.xlu1 %v2734_v31, %s5121_s8  ;;  %v4713_v31 = vld [vmem:[%s5202_s28 + $0x38] sm:$0x1] }
 0x1fb   : > { %2935 = vrot.lane.b32.xlu0 %v2724_v32, %s5121_s8  ;;  %2376 = vrot.lane.b32.xlu2 %v4642_v35, %s5120_s7  ;;  %v4711_v32 = vld [vmem:[%s5202_s28 + $0x30] sm:$0xe]  ;;  %v2659_v35 = vshll.u32 %v4674_v26, 16  ;;  %v4969_v26 = vld [vmem:[%s7235_s1 + $0x8] sm:$0xff] }
 0x1fc   : > { %v2165_v37 = vpop.permute.xlu1 %2164  ;;  %v4755_v42 = vrot.slane %v4711_v32, 9 }
 0x1fd   : > { %2253 = vst.msk [vmem:[#allocation2 + $0x20] sm:$0xf] %vm2244_vm12, %v2165_v37  ;;  %v2163_v39 = vpop.permute.xlu0 %2162  ;;  %v2179_v44 = vpop.permute.xlu2 %2178  ;;  %v3147_v37 = vrot.slane %v4713_v31, 5 }
 0x1fe   : > { %2252 = vst.msk [vmem:[#allocation2 + $0x1c] sm:$0xf] %vm2244_vm12, %v2163_v39  ;;  %v3145_v48 = vsel %vm5387_vm6, %v4755_v42, %v3144_v29 }
 0x1ff   : > { %2260 = vst.msk [vmem:[#allocation2 + $0x3c] sm:$0xf] %vm2244_vm12, %v2179_v44  ;;  %v2661_v44 = vrot.slane %v2659_v35, 5  ;;  %v3148_v47 = vsel %vm5387_vm6, %v3146_v36, %v3147_v37  ;;  %v2742_v35 = vor.u32 %v2741_v23, %v2738_v22 }
 0x201   : > { %v2662_v51 = vsel %vm5213_vm2, %v2657_v38, %v2661_v44  ;;  %v2743_v44 = vrot.slane %v2742_v35, 4 }
 0x202   : > { %2350 = vrot.lane.b32.xlu1 %v4629_v46, %s5120_s7  ;;  %v4973_v46 = vld [vmem:[%s7235_s1 + $0x28] sm:$0xff] }
 0x203   : > { %3274 = vrot.lane.b32.xlu0 %v3190_v49, %s5122_s9  ;;  %3272 = vrot.lane.b32.xlu2 %v3187_v52, %s5122_s9  ;;  %v3165_v49 = vrot.slane %v4721_v43, 5  ;;  %v4720_v52 = vld [vmem:[%s5202_s28 + $0x54] sm:$0xe]  ;;  %v4733_v43 = vld [vmem:[%s5202_s28 + $0x88] sm:$0xf] }
 0x204   : > { %v2171_v57 = vpop.permute.xlu1 %2170  ;;  %3563 = vmatpush.bf16.msra.mxu0 %v4973_v46  ;;  %4982 = vmatpush.bf16.msra.mxu1 %v4973_v46  ;;  %v4758_v61 = vrot.slane %v4720_v52, 9  ;;  %v4732_v52 = vld [vmem:[%s5202_s28 + $0x84] sm:$0xe] }
 0x205   : > { %2256 = vst.msk [vmem:[#allocation2 + $0x2c] sm:$0xf] %vm2244_vm12, %v2171_v57  ;;  %v2169_v0 = vpop.permute.xlu0 %2168  ;;  %v2185_v4 = vpop.permute.xlu2 %2184  ;;  %4983 = vmatpush.bf16.msra.mxu2 %v4973_v46  ;;  %4984 = vmatpush.bf16.msra.mxu3 %v4973_v46  ;;  %v3167_v55 = vrot.slane %v3165_v49, 4  ;;  %v4693_v57 = vld [vmem:[%s5202_s28 + $0xa8] sm:$0xf] }
 0x206   : > { %2255 = vst.msk [vmem:[#allocation2 + $0x28] sm:$0xf] %vm2244_vm12, %v2169_v0  ;;  %v4643_v0 = vld [vmem:[%s5202_s28 + $0x84] sm:$0xf]  ;;  %v2808_v3 = vshrl.u32 %v4693_v57, 16  ;;  %v3166_v5 = vsel %vm5387_vm6, %v4758_v61, %v3165_v49  ;;  %v3193_v49 = vrot.slane %v4733_v43, 5 }
 0x207   : > { %2263 = vst.msk [vmem:[#allocation2 + $0x48] sm:$0xf] %vm2244_vm12, %v2185_v4  ;;  %v2811_v4 = vshll.u32 %v4693_v57, 16  ;;  %v3169_v8 = vsel %vm5387_vm6, %v3167_v55, %v3168_v56  ;;  %v4762_v61 = vrot.slane %v4732_v52, 9 }
 0x208   : > { %3564 = vmatpush.bf16.msra.mxu0 %v4972_v53  ;;  %4985 = vmatpush.bf16.msra.mxu1 %v4972_v53  ;;  %v3195_v56 = vrot.slane %v3193_v49, 4 }
 0x209   : > { %4986 = vmatpush.bf16.msra.mxu2 %v4972_v53  ;;  %4987 = vmatpush.bf16.msra.mxu3 %v4972_v53  ;;  %v2813_v13 = vrot.slane %v2811_v4, 5  ;;  %v2748_v53 = vsel %vm5213_vm2, %v2743_v44, %v6346_v17  ;;  %v4637_v44 = vld [vmem:[%s5202_s28 + $0x60] sm:$0xf] }
 0x20a   : > { %2364 = vrot.lane.b32.xlu1 %v4636_v6, %s5120_s7  ;;  %v4971_v6 = vld [vmem:[%s7235_s1 + $0x18] sm:$0xff] }
 0x20b   : > { %2362 = vrot.lane.b32.xlu0 %v4635_v59, %s5120_s7  ;;  %2352 = vrot.lane.b32.xlu2 %v4630_v11, %s5120_s7  ;;  %v2749_v59 = vshrl.u32 %v4685_v62, 16  ;;  %v2810_v11 = vrot.slane %v2808_v3, 4 }
 0x20c   : > { %v2177_v16 = vpop.permute.xlu1 %2176  ;;  %3565 = vmatpush.bf16.msra.mxu0 %v4971_v6  ;;  %4988 = vmatpush.bf16.msra.mxu1 %v4971_v6 }
 0x20d   : > { %2259 = vst.msk [vmem:[#allocation2 + $0x38] sm:$0xf] %vm2244_vm12, %v2177_v16  ;;  %v2175_v21 = vpop.permute.xlu0 %2174  ;;  %v2191_v24 = vpop.permute.xlu2 %2190  ;;  %4989 = vmatpush.bf16.msra.mxu2 %v4971_v6  ;;  %4990 = vmatpush.bf16.msra.mxu3 %v4971_v6  ;;  %v4694_v16 = vld [vmem:[%s5202_s28 + $0xac] sm:$0xf]  ;;  %v2751_v18 = vrot.slane %v2749_v59, 4  ;;  %v3194_v6 = vsel %vm5387_vm6, %v4762_v61, %v3193_v49 }
 0x20e   : > { %2258 = vst.msk [vmem:[#allocation2 + $0x34] sm:$0xf] %vm2244_vm12, %v2175_v21  ;;  %v4686_v21 = vld [vmem:[%s5202_s28 + $0x8c] sm:$0x1]  ;;  %v2817_v29 = vshll.u32 %v4694_v16, 16 }
 0x20f   : > { %2266 = vst.msk [vmem:[#allocation2 + $0x54] sm:$0xf] %vm2244_vm12, %v2191_v24  ;;  %v2752_v31 = vor.u32 %v2751_v18, %v6346_v17  ;;  %v2755_v32 = vshll.u32 %v4686_v21, 16  ;;  %v4666_v18 = vld [vmem:[%s5202_s28 + $0x3c] sm:$0xf] }
 0x210   : > { %3566 = vmatpush.bf16.msra.mxu0 %v4970_v14  ;;  %4991 = vmatpush.bf16.msra.mxu1 %v4970_v14  ;;  %v2819_v37 = vrot.slane %v2817_v29, 5  ;;  %v2595_v29 = vshll.u32 %v4666_v18, 16 }
 0x211   : > { %4992 = vmatpush.bf16.msra.mxu2 %v4970_v14  ;;  %4993 = vmatpush.bf16.msra.mxu3 %v4970_v14  ;;  %v2753_v42 = vrot.slane %v2752_v31, 4 }
 0x212   : > { %2923 = vrot.lane.b32.xlu1 %v2652_v28, %s5121_s8  ;;  %v2814_v28 = vor.u32 %v2813_v13, %v2810_v11  ;;  %v3217_v11 = vrot.slane %v4743_v7, 5  ;;  %v4675_v13 = vld [vmem:[%s5202_s28 + $0x60] sm:$0xf] }
 0x213   : > { %2913 = vrot.lane.b32.xlu0 %v2590_v30, %s5121_s8  ;;  %2911 = vrot.lane.b32.xlu2 %v2580_v33, %s5121_s8  ;;  %v4649_v30 = vld [vmem:[%s5202_s28 + $0xa8] sm:$0xf]  ;;  %v2821_v33 = vshrl.u32 %v4694_v16, 16  ;;  %v4667_v16 = vld [vmem:[%s5202_s28 + $0x40] sm:$0xf]  ;;  %v2664_v21 = vshrl.u32 %v4675_v13, 16 }
 0x214   : > { %v2183_v40 = vpop.permute.xlu1 %2182  ;;  %3567 = vmatpush.bf16.msra.mxu0 %v4969_v26  ;;  %4994 = vmatpush.bf16.msra.mxu1 %v4969_v26  ;;  %v2815_v36 = vrot.slane %v2814_v28, 4  ;;  %v2667_v22 = vshll.u32 %v4675_v13, 16  ;;  %v2592_v28 = vshrl.u32 %v4666_v18, 16 }
 0x215   : > { %2262 = vst.msk [vmem:[#allocation2 + $0x44] sm:$0xf] %vm2244_vm12, %v2183_v40  ;;  %v2181_v39 = vpop.permute.xlu0 %2180  ;;  %v2197_v45 = vpop.permute.xlu2 %2196  ;;  %4995 = vmatpush.bf16.msra.mxu2 %v4969_v26  ;;  %4996 = vmatpush.bf16.msra.mxu3 %v4969_v26  ;;  %v2605_v26 = vshrl.u32 %v4667_v16, 16 }
 0x216   : > { %2261 = vst.msk [vmem:[#allocation2 + $0x40] sm:$0xf] %vm2244_vm12, %v2181_v39  ;;  %v2757_v39 = vrot.slane %v2755_v32, 5  ;;  %v2669_v31 = vrot.slane %v2667_v22, 5  ;;  %v4725_v22 = vld [vmem:[%s5202_s28 + $0x68] sm:$0x1] }
 0x217   : > { %2269 = vst.msk [vmem:[#allocation2 + $0x60] sm:$0xf] %vm2244_vm12, %v2197_v45  ;;  %v2823_v45 = vrot.slane %v2821_v33, 4  ;;  %v4676_v33 = vld [vmem:[%s5202_s28 + $0x64] sm:$0xf]  ;;  %v2607_v35 = vrot.slane %v2605_v26, 4 }
 0x218   : > { %3568 = vmatpush.bf16.msra.mxu0 %v4968_v41  ;;  %4997 = vmatpush.bf16.msra.mxu1 %v4968_v41  ;;  %v2758_v50 = vsel %vm5213_vm2, %v2753_v42, %v2757_v39  ;;  %v4638_v39 = vld [vmem:[%s5202_s28 + $0x64] sm:$0xf] }
 0x219   : > { %4998 = vmatpush.bf16.msra.mxu2 %v4968_v41  ;;  %4999 = vmatpush.bf16.msra.mxu3 %v4968_v41  ;;  %v2594_v41 = vrot.slane %v2592_v28, 4  ;;  %v3175_v28 = vrot.slane %v4725_v22, 5 }
 0x21a   : > { %3250 = vrot.lane.b32.xlu1 %v3148_v47, %s5122_s9  ;;  %v4695_v47 = vld [vmem:[%s5202_s28 + $0xb0] sm:$0x1] }
 0x21b   : > { %3248 = vrot.lane.b32.xlu0 %v3145_v48, %s5122_s9  ;;  %2925 = vrot.lane.b32.xlu2 %v2662_v51, %s5121_s8  ;;  %v2820_v48 = vsel %vm5213_vm2, %v2815_v36, %v2819_v37  ;;  %v4734_v51 = vld [vmem:[%s5202_s28 + $0x8c] sm:$0x1]  ;;  %v2827_v55 = vshll.u32 %v4695_v47, 16  ;;  %v2677_v47 = vshrl.u32 %v4676_v33, 16 }
 0x21c   : > { %v2189_v54 = vpop.permute.xlu1 %2188  ;;  %v3196_v57 = vrot.slane %v4734_v51, 5 }
 0x21d   : > { %2265 = vst.msk [vmem:[#allocation2 + $0x50] sm:$0xf] %vm2244_vm12, %v2189_v54  ;;  %v2187_v58 = vpop.permute.xlu0 %2186  ;;  %v2203_v1 = vpop.permute.xlu2 %2202  ;;  %v2824_v54 = vor.u32 %v2823_v45, %v2819_v37  ;;  %v2829_v60 = vrot.slane %v2827_v55, 5  ;;  %v4668_v37 = vld [vmem:[%s5202_s28 + $0x44] sm:$0x1]  ;;  %v2679_v61 = vrot.slane %v2677_v47, 4 }
 0x21e   : > { %2264 = vst.msk [vmem:[#allocation2 + $0x4c] sm:$0xf] %vm2244_vm12, %v2187_v58  ;;  %v3197_v4 = vsel %vm5387_vm6, %v3195_v56, %v3196_v57  ;;  %v4715_v55 = vld [vmem:[%s5202_s28 + $0x40] sm:$0xf]  ;;  %v4697_v47 = vld [vmem:[%s5202_s28 + $0xb8] sm:$0xf] }
 0x21f   : > { %2272 = vst.msk [vmem:[#allocation2 + $0x6c] sm:$0xf] %vm2244_vm12, %v2203_v1  ;;  %v2825_v1 = vrot.slane %v2824_v54, 4 }
 0x221   : > { %v2830_v59 = vsel %vm5213_vm2, %v2825_v1, %v2829_v60  ;;  %v3151_v60 = vrot.slane %v4715_v55, 5 }
 0x222   : > { %2378 = vrot.lane.b32.xlu1 %v4643_v0, %s5120_s7  ;;  %v4742_v0 = vld [vmem:[%s5202_s28 + $0xac] sm:$0xf] }
 0x223   : > { %3262 = vrot.lane.b32.xlu0 %v3169_v8, %s5122_s9  ;;  %3260 = vrot.lane.b32.xlu2 %v3166_v5, %s5122_s9  ;;  %v3214_v8 = vrot.slane %v4742_v0, 5  ;;  %v4741_v5 = vld [vmem:[%s5202_s28 + $0xa8] sm:$0xe]  ;;  %v4677_v0 = vld [vmem:[%s5202_s28 + $0x68] sm:$0x1] }
 0x224   : > { %v2195_v15 = vpop.permute.xlu1 %2194 }
 0x225   : > { %2268 = vst.msk [vmem:[#allocation2 + $0x5c] sm:$0xf] %vm2244_vm12, %v2195_v15  ;;  %v2193_v20 = vpop.permute.xlu0 %2192  ;;  %v2345_v24 = vpop.permute.xlu2 %2344  ;;  %v3216_v10 = vrot.slane %v3214_v8, 4  ;;  %v4765_v15 = vrot.slane %v4741_v5, 9  ;;  %v3153_v5 = vrot.slane %v3151_v60, 4 }
 0x226   : > { %2267 = vst.msk [vmem:[#allocation2 + $0x58] sm:$0xf] %vm2244_vm12, %v2193_v20  ;;  %v4631_v20 = vld [vmem:[%s5202_s28 + $0x3c] sm:$0xf] }
 0x227   : > { %2440 = vst.msk [vmem:[#allocation2 + $0x4] sm:$0xf] %vm2438_vm13, %v2345_v24  ;;  %v3218_v23 = vsel %vm5387_vm6, %v3216_v10, %v3217_v11  ;;  %v2601_v24 = vshll.u32 %v4667_v16, 16 }
 0x22a   : > { %2392 = vrot.lane.b32.xlu1 %v4650_v27, %s5120_s7  ;;  %v3215_v27 = vsel %vm5387_vm6, %v4765_v15, %v3214_v8 }
 0x22b   : > { %2390 = vrot.lane.b32.xlu0 %v4649_v30, %s5120_s7  ;;  %2380 = vrot.lane.b32.xlu2 %v4644_v34, %s5120_s7  ;;  %v2666_v30 = vrot.slane %v2664_v21, 4  ;;  %v2603_v34 = vrot.slane %v2601_v24, 5  ;;  %v4723_v24 = vld [vmem:[%s5202_s28 + $0x60] sm:$0xe] }
 0x22c   : > { %v2201_v40 = vpop.permute.xlu1 %2200 }
 0x22d   : > { %2271 = vst.msk [vmem:[#allocation2 + $0x68] sm:$0xf] %vm2244_vm12, %v2201_v40  ;;  %v2199_v38 = vpop.permute.xlu0 %2198  ;;  %v3241_v46 = vpop.permute.xlu2 %3240  ;;  %v2597_v40 = vrot.slane %v2595_v29, 5  ;;  %v2670_v43 = vor.u32 %v2669_v31, %v2666_v30  ;;  %v2608_v45 = vor.u32 %v2607_v35, %v2603_v34  ;;  %v4696_v29 = vld [vmem:[%s5202_s28 + $0xb4] sm:$0xf]  ;;  %v4759_v31 = vrot.slane %v4723_v24, 9 }
 0x22e   : > { %2270 = vst.msk [vmem:[#allocation2 + $0x64] sm:$0xf] %vm2244_vm12, %v2199_v38  ;;  %v2673_v38 = vshll.u32 %v4676_v33, 16  ;;  %v4645_v35 = vld [vmem:[%s5202_s28 + $0x90] sm:$0xf] }
 0x22f   : > { %v2598_v49 = vor.u32 %v2597_v40, %v2594_v41 }
 0x230   : > { %v2675_v51 = vrot.slane %v2673_v38, 5 }
 0x232   : > { %2951 = vrot.lane.b32.xlu1 %v2820_v48, %s5121_s8  ;;  %v4632_v48 = vld [vmem:[%s5202_s28 + $0x40] sm:$0xf]  ;;  %v2680_v7 = vor.u32 %v2679_v61, %v2675_v51  ;;  %v4651_v61 = vld [vmem:[%s5202_s28 + $0xb4] sm:$0xf] }
 0x233   : > { %2941 = vrot.lane.b32.xlu0 %v2758_v50, %s5121_s8  ;;  %2939 = vrot.lane.b32.xlu2 %v2748_v53, %s5121_s8  ;;  %v2671_v50 = vrot.slane %v2670_v43, 4  ;;  %v2609_v53 = vrot.slane %v2608_v45, 4 }
 0x234   : > { %v2343_v58 = vpop.permute.xlu1 %2342  ;;  %v2681_v15 = vrot.slane %v2680_v7, 4 }
 0x235   : > { %2439 = vst.msk [vmem:[#allocation2] sm:$0xf] %vm2438_vm13, %v2343_v58  ;;  %v2205_v62 = vpop.permute.xlu0 %2204  ;;  %v2349_v3 = vpop.permute.xlu2 %2348  ;;  %v2599_v58 = vrot.slane %v2598_v49, 4  ;;  %v2676_v1 = vsel %vm5213_vm2, %v2671_v50, %v2675_v51 }
 0x236   : > { %2273 = vst.msk [vmem:[#allocation2 + $0x70] sm:$0xf] %vm2244_vm12, %v2205_v62 }
 0x237   : > { %2442 = vst.msk [vmem:[#allocation2 + $0xc] sm:$0xf] %vm2438_vm13, %v2349_v3  ;;  %v2604_v8 = vsel %vm5213_vm2, %v2599_v58, %v2603_v34  ;;  %v4687_v34 = vld [vmem:[%s5202_s28 + $0x90] sm:$0xf]  ;;  %v2841_v58 = vshll.u32 %v4697_v47, 16 }
 0x238   : > { %v2760_v43 = vshrl.u32 %v4687_v34, 16  ;;  %v2763_v38 = vshll.u32 %v4687_v34, 16 }
 0x23a   : > { %3278 = vrot.lane.b32.xlu1 %v3197_v4, %s5122_s9  ;;  %v4716_v4 = vld [vmem:[%s5202_s28 + $0x44] sm:$0x1] }
 0x23b   : > { %3276 = vrot.lane.b32.xlu0 %v3194_v6, %s5122_s9  ;;  %2953 = vrot.lane.b32.xlu2 %v2830_v59, %s5121_s8  ;;  %v4714_v6 = vld [vmem:[%s5202_s28 + $0x3c] sm:$0xe]  ;;  %v2683_v59 = vshll.u32 %v4677_v0, 16 }
 0x23c   : > { %v2906_v9 = vpop.permute.xlu1 %2905  ;;  %v4756_v11 = vrot.slane %v4714_v6, 9  ;;  %v2843_v6 = vrot.slane %v2841_v58, 5 }
 0x23d   : > { %3001 = vst.msk [vmem:[#allocation2 + $0x4] sm:$0xf] %vm2999_vm14, %v2906_v9  ;;  %v2904_v14 = vpop.permute.xlu0 %2903  ;;  %v2908_v17 = vpop.permute.xlu2 %2907  ;;  %v3154_v9 = vrot.slane %v4716_v4, 5  ;;  %v2685_v16 = vrot.slane %v2683_v59, 5 }
 0x23e   : > { %3000 = vst.msk [vmem:[#allocation2] sm:$0xf] %vm2999_vm14, %v2904_v14  ;;  %v4724_v14 = vld [vmem:[%s5202_s28 + $0x64] sm:$0xf] }
 0x23f   : > { %3337 = vst.msk [vmem:[#allocation2] sm:$0xf] %vm3336_vm15, %v3241_v46  ;;  %v2611_v46 = vshll.u32 %v4668_v37, 16  ;;  %v3155_v18 = vsel %vm5387_vm6, %v3153_v5, %v3154_v9  ;;  %v3172_v21 = vrot.slane %v4724_v14, 5  ;;  %v2835_v37 = vshll.u32 %v4696_v29, 16 }
 0x240   : > { %v4736_v5 = vld [vmem:[%s5202_s28 + $0x94] sm:$0xf] }
 0x241   : > { %v2613_v54 = vrot.slane %v2611_v46, 5  ;;  %v2837_v45 = vrot.slane %v2835_v37, 5 }
 0x242   : > { %2354 = vrot.lane.b32.xlu1 %v4631_v20, %s5120_s7  ;;  %v3152_v20 = vsel %vm5387_vm6, %v4756_v11, %v3151_v60  ;;  %v4646_v60 = vld [vmem:[%s5202_s28 + $0x94] sm:$0xf] }
 0x243   : > { %3290 = vrot.lane.b32.xlu0 %v3218_v23, %s5122_s9  ;;  %3288 = vrot.lane.b32.xlu2 %v3215_v27, %s5122_s9  ;;  %v2614_v3 = vsel %vm5213_vm2, %v2609_v53, %v2613_v54  ;;  %v2686_v23 = vsel %vm5213_vm2, %v2681_v15, %v2685_v16  ;;  %v3174_v27 = vrot.slane %v3172_v21, 4  ;;  %v2762_v53 = vrot.slane %v2760_v43, 4  ;;  %v4698_v15 = vld [vmem:[%s5202_s28 + $0xbc] sm:$0x1] }
 0x244   : > { %v2347_v32 = vpop.permute.xlu1 %2346  ;;  %v2765_v54 = vrot.slane %v2763_v38, 5  ;;  %v2851_v24 = vshll.u32 %v4698_v15, 16  ;;  %v4728_v15 = vld [vmem:[%s5202_s28 + $0x74] sm:$0x1] }
 0x245   : > { %2441 = vst.msk [vmem:[#allocation2 + $0x8] sm:$0xf] %vm2438_vm13, %v2347_v32  ;;  %v3243_v36 = vpop.permute.xlu0 %3242  ;;  %v2922_v42 = vpop.permute.xlu2 %2921  ;;  %v4688_v32 = vld [vmem:[%s5202_s28 + $0x94] sm:$0xf]  ;;  %v3176_v41 = vsel %vm5387_vm6, %v3174_v27, %v3175_v28 }
 0x246   : > { %3338 = vst.msk [vmem:[#allocation2 + $0x4] sm:$0xf] %vm3336_vm15, %v3243_v36  ;;  %v2832_v36 = vshrl.u32 %v4696_v29, 16  ;;  %v2769_v40 = vshll.u32 %v4688_v32, 16  ;;  %v2853_v34 = vrot.slane %v2851_v24, 5 }
 0x247   : > { %3002 = vst.msk [vmem:[#allocation2 + $0x8] sm:$0xf] %vm2999_vm14, %v2908_v17  ;;  %v4691_v24 = vld [vmem:[%s5202_s28 + $0xa0] sm:$0xf] }
 0x248   : > { %v2771_v49 = vrot.slane %v2769_v40, 5 }
 0x24a   : > { %2368 = vrot.lane.b32.xlu1 %v4638_v39, %s5120_s7  ;;  %v3173_v39 = vsel %vm5387_vm6, %v4759_v31, %v3172_v21  ;;  %v4735_v21 = vld [vmem:[%s5202_s28 + $0x90] sm:$0xe] }
 0x24b   : > { %2366 = vrot.lane.b32.xlu0 %v4637_v44, %s5120_s7  ;;  %2356 = vrot.lane.b32.xlu2 %v4632_v48, %s5120_s7  ;;  %v2834_v44 = vrot.slane %v2832_v36, 4  ;;  %v4689_v48 = vld [vmem:[%s5202_s28 + $0x98] sm:$0x1]  ;;  %v4763_v29 = vrot.slane %v4735_v21, 9  ;;  %v4679_v31 = vld [vmem:[%s5202_s28 + $0x70] sm:$0xf] }
 0x24c   : > { %v2361_v52 = vpop.permute.xlu1 %2360  ;;  %v2779_v0 = vshll.u32 %v4689_v48, 16  ;;  %v2701_v40 = vshrl.u32 %v4679_v31, 16 }
 0x24d   : > { %2448 = vst.msk [vmem:[#allocation2 + $0x24] sm:$0xf] %vm2438_vm13, %v2361_v52  ;;  %v2359_v56 = vpop.permute.xlu0 %2358  ;;  %v4952_v57 = vld [vmem:[#allocation2] sm:$0xff]  ;;  %v3257_v62 = vpop.permute.xlu2 %3256 }
 0x24e   : > { %2447 = vst.msk [vmem:[#allocation2 + $0x20] sm:$0xf] %vm2438_vm13, %v2359_v56  ;;  %3569 = vmatmul.bf16.vlgmr.msra.gmra.mxu0 %v4952_v57  ;;  %v4652_v56 = vld [vmem:[%s5202_s28 + $0xb8] sm:$0xf]  ;;  %v2838_v57 = vor.u32 %v2837_v45, %v2834_v44  ;;  %v2781_v59 = vrot.slane %v2779_v0, 5  ;;  %v2703_v48 = vrot.slane %v2701_v40, 4 }
 0x24f   : > { %3009 = vst.msk [vmem:[#allocation2 + $0x24] sm:$0xf] %vm2999_vm14, %v2922_v42  ;;  %v2773_v42 = vshrl.u32 %v4688_v32, 16  ;;  %v4746_v44 = vld [vmem:[%s5202_s28 + $0xbc] sm:$0x1] }
 0x250   : > { %v2839_v4 = vrot.slane %v2838_v57, 4 }
 0x251   : > { %v2775_v50 = vrot.slane %v2773_v42, 4 }
 0x252   : > { %2927 = vrot.lane.b32.xlu1 %v2676_v1, %s5121_s8  ;;  %v2845_v1 = vshrl.u32 %v4697_v47, 16  ;;  %v2844_v16 = vsel %vm5213_vm2, %v2839_v4, %v2843_v6 }
 0x253   : > { %2917 = vrot.lane.b32.xlu0 %v2614_v3, %s5121_s8  ;;  %2915 = vrot.lane.b32.xlu2 %v2604_v8, %s5121_s8  ;;  %v2766_v3 = vor.u32 %v2765_v54, %v2762_v53 }
 0x254   : > { %v2920_v10 = vpop.permute.xlu1 %2919 }
 0x255   : > { %3008 = vst.msk [vmem:[#allocation2 + $0x20] sm:$0xf] %vm2999_vm14, %v2920_v10  ;;  %v2910_v13 = vpop.permute.xlu0 %2909  ;;  %v2377_v17 = vpop.permute.xlu2 %2376  ;;  %v2767_v11 = vrot.slane %v2766_v3, 4 }
 0x256   : > { %3003 = vst.msk [vmem:[#allocation2 + $0xc] sm:$0xf] %vm2999_vm14, %v2910_v13  ;;  %v2847_v13 = vrot.slane %v2845_v1, 4 }
 0x257   : > { %3345 = vst.msk [vmem:[#allocation2 + $0x20] sm:$0xf] %vm3336_vm15, %v3257_v62  ;;  %v2776_v62 = vor.u32 %v2775_v50, %v2771_v49  ;;  %v2772_v22 = vsel %vm5213_vm2, %v2767_v11, %v2771_v49 }
 0x258   : > { %2456 = vst.msk [vmem:[#allocation2 + $0x44] sm:$0xf] %vm2438_vm13, %v2377_v17  ;;  %v3200_v17 = vrot.slane %v4736_v5, 5  ;;  %v4727_v5 = vld [vmem:[%s5202_s28 + $0x70] sm:$0xf] }
 0x259   : > { %v2777_v7 = vrot.slane %v2776_v62, 4 }
 0x25a   : > { %3254 = vrot.lane.b32.xlu1 %v3155_v18, %s5122_s9  ;;  %v3201_v42 = vsel %vm5387_vm6, %v4763_v29, %v3200_v17 }
 0x25b   : > { %3252 = vrot.lane.b32.xlu0 %v3152_v20, %s5122_s9  ;;  %2929 = vrot.lane.b32.xlu2 %v2686_v23, %s5121_s8  ;;  %v2782_v18 = vsel %vm5213_vm2, %v2777_v7, %v2781_v59  ;;  %v4737_v20 = vld [vmem:[%s5202_s28 + $0x98] sm:$0x1]  ;;  %v2848_v23 = vor.u32 %v2847_v13, %v2843_v6  ;;  %v4605_v13 = vld [vmem:[%s5202_s28 + $0xbc] sm:$0x1] }
 0x25c   : > { %v3247_v26 = vpop.permute.xlu1 %3246  ;;  %v3203_v27 = vrot.slane %v4737_v20, 5  ;;  %v2139_v20 = vrot.slane %v4605_v13, 5  ;;  %v4654_v13 = vld [vmem:[%s5202_s28 + $0xc4] sm:$0xf] }
 0x25d   : > { %3340 = vst.msk [vmem:[#allocation2 + $0xc] sm:$0xf] %vm3336_vm15, %v3247_v26  ;;  %v3245_v30 = vpop.permute.xlu0 %3244  ;;  %v3273_v33 = vpop.permute.xlu2 %3272  ;;  %v3202_v26 = vrot.slane %v3200_v17, 4  ;;  %v4726_v17 = vld [vmem:[%s5202_s28 + $0x6c] sm:$0xe] }
 0x25e   : > { %3339 = vst.msk [vmem:[#allocation2 + $0x8] sm:$0xf] %vm3336_vm15, %v3245_v30  ;;  %v4745_v30 = vld [vmem:[%s5202_s28 + $0xb8] sm:$0xf] }
 0x25f   : > { %v3204_v37 = vsel %vm5387_vm6, %v3202_v26, %v3203_v27  ;;  %v4760_v27 = vrot.slane %v4726_v17, 9 }
 0x262   : > { %2382 = vrot.lane.b32.xlu1 %v4645_v35, %s5120_s7  ;;  %v4678_v35 = vld [vmem:[%s5202_s28 + $0x6c] sm:$0xf] }
 0x263   : > { %3266 = vrot.lane.b32.xlu0 %v3176_v41, %s5122_s9  ;;  %3264 = vrot.lane.b32.xlu2 %v3173_v39, %s5122_s9  ;;  %v2697_v41 = vshll.u32 %v4679_v31, 16  ;;  %v3221_v39 = vrot.slane %v4745_v30, 5  ;;  %v2688_v43 = vshrl.u32 %v4678_v35, 16  ;;  %v2691_v38 = vshll.u32 %v4678_v35, 16 }
 0x264   : > { %v2375_v46 = vpop.permute.xlu1 %2374  ;;  %v2797_v30 = vshrl.u32 %v4691_v24, 16 }
 0x265   : > { %2455 = vst.msk [vmem:[#allocation2 + $0x40] sm:$0xf] %vm2438_vm13, %v2375_v46  ;;  %v3259_v51 = vpop.permute.xlu0 %3258  ;;  %v4953_v52 = vld [vmem:[#allocation2 + $0x8] sm:$0xff]  ;;  %v2353_v55 = vpop.permute.xlu2 %2352  ;;  %v4744_v46 = vld [vmem:[%s5202_s28 + $0xb4] sm:$0xe]  ;;  %v2699_v47 = vrot.slane %v2697_v41, 5 }
 0x266   : > { %3346 = vst.msk [vmem:[#allocation2 + $0x24] sm:$0xf] %vm3336_vm15, %v3259_v51  ;;  %3574 = vmatmul.bf16.gmra.mxu0 %v4953_v52  ;;  %v3223_v50 = vrot.slane %v3221_v39, 4  ;;  %v3224_v51 = vrot.slane %v4746_v44, 5  ;;  %v4680_v52 = vld [vmem:[%s5202_s28 + $0x74] sm:$0x1] }
 0x267   : > { %2444 = vst.msk [vmem:[#allocation2 + $0x14] sm:$0xf] %vm2438_vm13, %v2353_v55  ;;  %v2690_v53 = vrot.slane %v2688_v43, 4  ;;  %v2693_v54 = vrot.slane %v2691_v38, 5  ;;  %v4766_v57 = vrot.slane %v4744_v46, 9  ;;  %v2704_v62 = vor.u32 %v2703_v48, %v2699_v47 }
 0x268   : > { %v2707_v0 = vshll.u32 %v4680_v52, 16  ;;  %v3225_v1 = vsel %vm5387_vm6, %v3223_v50, %v3224_v51  ;;  %v4692_v41 = vld [vmem:[%s5202_s28 + $0xa4] sm:$0x1]  ;;  %v4653_v46 = vld [vmem:[%s5202_s28 + $0xc0] sm:$0xf] }
 0x269   : > { %v3222_v3 = vsel %vm5387_vm6, %v4766_v57, %v3221_v39  ;;  %v2705_v4 = vrot.slane %v2704_v62, 4  ;;  %v4700_v38 = vld [vmem:[%s5202_s28 + $0xc4] sm:$0xf]  ;;  %v2803_v48 = vshll.u32 %v4692_v41, 16  ;;  %v4701_v62 = vld [vmem:[%s5202_s28 + $0xc8] sm:$0x1] }
 0x26a   : > { %2396 = vrot.lane.b32.xlu1 %v4652_v56, %s5120_s7  ;;  %v2709_v6 = vrot.slane %v2707_v0, 5  ;;  %v2865_v51 = vshll.u32 %v4700_v38, 16  ;;  %v2869_v52 = vshrl.u32 %v4700_v38, 16  ;;  %v4703_v38 = vld [vmem:[%s5202_s28 + $0xd0] sm:$0xf] }
 0x26b   : > { %2394 = vrot.lane.b32.xlu0 %v4651_v61, %s5120_s7  ;;  %2384 = vrot.lane.b32.xlu2 %v4646_v60, %s5120_s7  ;;  %v4639_v61 = vld [vmem:[%s5202_s28 + $0x6c] sm:$0xf]  ;;  %v2694_v60 = vor.u32 %v2693_v54, %v2690_v53  ;;  %v4647_v53 = vld [vmem:[%s5202_s28 + $0x9c] sm:$0xf]  ;;  %v2805_v57 = vrot.slane %v2803_v48, 5 }
 0x26c   : > { %v2938_v8 = vpop.permute.xlu1 %2937  ;;  %v2867_v0 = vrot.slane %v2865_v51, 5  ;;  %v2889_v51 = vshll.u32 %v4703_v38, 16 }
 0x26d   : > { %3017 = vst.msk [vmem:[#allocation2 + $0x44] sm:$0xf] %vm2999_vm14, %v2938_v8  ;;  %v2936_v9 = vpop.permute.xlu0 %2935  ;;  %v4956_v10 = vld [vmem:[#allocation2 + $0x20] sm:$0xff]  ;;  %v2912_v14 = vpop.permute.xlu2 %2911  ;;  %v2695_v7 = vrot.slane %v2694_v60, 4 }
 0x26e   : > { %3016 = vst.msk [vmem:[#allocation2 + $0x40] sm:$0xf] %vm2999_vm14, %v2936_v9  ;;  %3589 = vmatmul.bf16.vlgmr.msra.gmra.mxu1 %v4956_v10  ;;  %v2710_v10 = vsel %vm5213_vm2, %v2705_v4, %v2709_v6 }
 0x26f   : > { %3353 = vst.msk [vmem:[#allocation2 + $0x40] sm:$0xf] %vm3336_vm15, %v3273_v33  ;;  %v2849_v33 = vrot.slane %v2848_v23, 4  ;;  %v2700_v11 = vsel %vm5213_vm2, %v2695_v7, %v2699_v47  ;;  %v3182_v23 = vrot.slane %v4728_v15, 5 }
 0x271   : > { %v2854_v45 = vsel %vm5213_vm2, %v2849_v33, %v2853_v34 }
 0x272   : > { %2955 = vrot.lane.b32.xlu1 %v2844_v16, %s5121_s8  ;;  %v4640_v16 = vld [vmem:[%s5202_s28 + $0x70] sm:$0xf] }
 0x273   : > { %2945 = vrot.lane.b32.xlu0 %v2782_v18, %s5121_s8  ;;  %2943 = vrot.lane.b32.xlu2 %v2772_v22, %s5121_s8  ;;  %v2138_v18 = vrot.slane %v2136_v19, 4  ;;  %v2793_v19 = vshll.u32 %v4691_v24, 16 }
 0x274   : > { %v2351_v28 = vpop.permute.xlu1 %2350 }
 0x275   : > { %2443 = vst.msk [vmem:[#allocation2 + $0x10] sm:$0xf] %vm2438_vm13, %v2351_v28  ;;  %v3275_v32 = vpop.permute.xlu0 %3274  ;;  %v2926_v36 = vpop.permute.xlu2 %2925  ;;  %v4690_v28 = vld [vmem:[%s5202_s28 + $0x9c] sm:$0xf]  ;;  %v2140_v12 = vsel %vm5387_vm6, %v2138_v18, %v2139_v20  ;;  %v2795_v35 = vrot.slane %v2793_v19, 5 }
 0x276   : > { %3354 = vst.msk [vmem:[#allocation2 + $0x44] sm:$0xf] %vm3336_vm15, %v3275_v32  ;;  %v2784_v32 = vshrl.u32 %v4690_v28, 16  ;;  %v2787_v33 = vshll.u32 %v4690_v28, 16 }
 0x277   : > { %3004 = vst.msk [vmem:[#allocation2 + $0x10] sm:$0xf] %vm2999_vm14, %v2912_v14  ;;  %v3179_v14 = vrot.slane %v4727_v5, 5  ;;  %v4738_v5 = vld [vmem:[%s5202_s28 + $0x9c] sm:$0xe] }
 0x278   : > { %v2786_v40 = vrot.slane %v2784_v32, 4  ;;  %v4764_v15 = vrot.slane %v4738_v5, 9 }
 0x279   : > { %v3181_v22 = vrot.slane %v3179_v14, 4  ;;  %v3180_v34 = vsel %vm5387_vm6, %v4760_v27, %v3179_v14 }
 0x27a   : > { %3282 = vrot.lane.b32.xlu1 %v3204_v37, %s5122_s9 }
 0x27b   : > { %3280 = vrot.lane.b32.xlu0 %v3201_v42, %s5122_s9  ;;  %2957 = vrot.lane.b32.xlu2 %v2854_v45, %s5121_s8  ;;  %v3183_v31 = vsel %vm5387_vm6, %v3181_v22, %v3182_v23  ;;  %v2789_v42 = vrot.slane %v2787_v33, 5  ;;  %v4699_v45 = vld [vmem:[%s5202_s28 + $0xc0] sm:$0xf]  ;;  %v6596_v33 = vld [vmem:[%s5202_s28 + $0xc4] sm:$0xf] }
 0x27c   : > { %v2365_v49 = vpop.permute.xlu1 %2364  ;;  %v2856_v54 = vshrl.u32 %v4699_v45, 16 }
 0x27d   : > { %2450 = vst.msk [vmem:[#allocation2 + $0x2c] sm:$0xf] %vm2438_vm13, %v2365_v49  ;;  %v2363_v55 = vpop.permute.xlu0 %2362  ;;  %v4960_v56 = vld [vmem:[#allocation2 + $0x40] sm:$0xff]  ;;  %v3261_v58 = vpop.permute.xlu2 %3260  ;;  %v2790_v50 = vor.u32 %v2789_v42, %v2786_v40  ;;  %v4702_v42 = vld [vmem:[%s5202_s28 + $0xcc] sm:$0xf] }
 0x27e   : > { %2449 = vst.msk [vmem:[#allocation2 + $0x28] sm:$0xf] %vm2438_vm13, %v2363_v55  ;;  %3609 = vmatmul.bf16.vlgmr.msra.gmra.mxu2 %v4960_v56  ;;  %v4648_v49 = vld [vmem:[%s5202_s28 + $0xa0] sm:$0xf]  ;;  %v2859_v55 = vshll.u32 %v4699_v45, 16  ;;  %v2858_v4 = vrot.slane %v2856_v54, 4 }
 0x27f   : > { %3011 = vst.msk [vmem:[#allocation2 + $0x2c] sm:$0xf] %vm2999_vm14, %v2926_v36  ;;  %v2799_v36 = vrot.slane %v2797_v30, 4  ;;  %v4740_v30 = vld [vmem:[%s5202_s28 + $0xa4] sm:$0x1]  ;;  %v2893_v45 = vshrl.u32 %v4703_v38, 16 }
 0x280   : > { %v2861_v6 = vrot.slane %v2859_v55, 5  ;;  %v3210_v40 = vrot.slane %v4740_v30, 5  ;;  %v2883_v48 = vshll.u32 %v4702_v42, 16  ;;  %v4606_v54 = vld [vmem:[%s5202_s28 + $0xc0] sm:$0xe] }
 0x281   : > { %v2800_v47 = vor.u32 %v2799_v36, %v2795_v35  ;;  %v4608_v36 = vld [vmem:[%s5202_s28 + $0xc8] sm:$0x1] }
 0x282   : > { %2370 = vrot.lane.b32.xlu1 %v4639_v61, %s5120_s7  ;;  %v2791_v61 = vrot.slane %v2790_v50, 4  ;;  %v2862_v14 = vor.u32 %v2861_v6, %v2858_v4  ;;  %v4624_v4 = vrot.slane %v4606_v54, 9  ;;  %v3678_v54 = vsel %vm6633_vm4, 0, %v3677_v63 }
 0x283   : > { %3294 = vrot.lane.b32.xlu0 %v3225_v1, %s5122_s9  ;;  %3292 = vrot.lane.b32.xlu2 %v3222_v3, %s5122_s9  ;;  %v2801_v56 = vrot.slane %v2800_v47, 4  ;;  %v2871_v1 = vrot.slane %v2869_v52, 4  ;;  %v2880_v47 = vshrl.u32 %v4702_v42, 16  ;;  %3679 = vst [vmem:[%s6610_s29 + $0x3c] sm:$0x1] %v3678_v54 }
 0x284   : > { %v2924_v8 = vpop.permute.xlu1 %2923  ;;  %v2863_v23 = vrot.slane %v2862_v14, 4  ;;  %v3718_v14 = vld [vmem:[%s6610_s29 + $0x8] sm:$0x1] }
 0x285   : > { %3010 = vst.msk [vmem:[#allocation2 + $0x28] sm:$0xf] %vm2999_vm14, %v2924_v8  ;;  %v2914_v59 = vpop.permute.xlu0 %2913  ;;  %v2381_v9 = vpop.permute.xlu2 %2380  ;;  %v2806_v7 = vsel %vm5213_vm2, %v2801_v56, %v2805_v57  ;;  %v2895_v56 = vrot.slane %v2893_v45, 4 }
 0x286   : > { %3005 = vst.msk [vmem:[#allocation2 + $0x14] sm:$0xf] %vm2999_vm14, %v2914_v59  ;;  %v2796_v59 = vsel %vm5213_vm2, %v2791_v61, %v2795_v35  ;;  %v2868_v19 = vsel %vm5213_vm2, %v2863_v23, %v2867_v0  ;;  %v2885_v61 = vrot.slane %v2883_v48, 5  ;;  %v3769_v23 = vld [vmem:[%s6610_s29 + $0xd4] sm:$0x1] }
 0x287   : > { %3347 = vst.msk [vmem:[#allocation2 + $0x28] sm:$0xf] %vm3336_vm15, %v3261_v58 }
 0x288   : > { %2458 = vst.msk [vmem:[#allocation2 + $0x4c] sm:$0xf] %vm2438_vm13, %v2381_v9  ;;  %v4739_v9 = vld [vmem:[%s5202_s28 + $0xa0] sm:$0xf] }
 0x28a   : > { %2933 = vrot.lane.b32.xlu1 %v2710_v10, %s5121_s8  ;;  %v2872_v10 = vor.u32 %v2871_v1, %v2867_v0 }
 0x28b   : > { %2931 = vrot.lane.b32.xlu0 %v2700_v11, %s5121_s8  ;;  %2372 = vrot.lane.b32.xlu2 %v4640_v16, %s5120_s7  ;;  %v2875_v11 = vshll.u32 %v4701_v62, 16  ;;  %v3207_v16 = vrot.slane %v4739_v9, 5  ;;  %v4704_v62 = vld [vmem:[%s5202_s28 + $0xd4] sm:$0x1] }
 0x28c   : > { %v3251_v21 = vpop.permute.xlu1 %3250  ;;  %v2873_v18 = vrot.slane %v2872_v10, 4  ;;  %v2899_v9 = vshll.u32 %v4704_v62, 16 }
 0x28d   : > { %3342 = vst.msk [vmem:[#allocation2 + $0x14] sm:$0xf] %vm3336_vm15, %v3251_v21  ;;  %v3249_v26 = vpop.permute.xlu0 %3248  ;;  %v2940_v29 = vpop.permute.xlu2 %2939  ;;  %v2877_v20 = vrot.slane %v2875_v11, 5  ;;  %v4748_v21 = vld [vmem:[%s5202_s28 + $0xc4] sm:$0xf]  ;;  %v3209_v41 = vrot.slane %v3207_v16, 4 }
 0x28e   : > { %3341 = vst.msk [vmem:[#allocation2 + $0x10] sm:$0xf] %vm3336_vm15, %v3249_v26  ;;  %v3208_v26 = vsel %vm5387_vm6, %v4764_v15, %v3207_v16  ;;  %v3228_v27 = vrot.slane %v4748_v21, 5  ;;  %v3713_v15 = vld [vmem:[%s6610_s29 + $0xcc] sm:$0x1]  ;;  %v3719_v16 = vsel %vm6655_vm7, 0, %v3718_v14 }
 0x28f   : > { %v2878_v28 = vsel %vm5213_vm2, %v2873_v18, %v2877_v20  ;;  %v3211_v50 = vsel %vm5387_vm6, %v3209_v41, %v3210_v40  ;;  %v3714_v20 = vsel %vm6633_vm4, 0, %v3713_v15  ;;  %3720 = vst [vmem:[%s6610_s29 + $0x8] sm:$0x1] %v3719_v16 }
 0x290   : > { %3715 = vst [vmem:[%s6610_s29 + $0xcc] sm:$0x1] %v3714_v20 }
 0x292   : > { %2206 = vrot.lane.b32.xlu1 %v2140_v12, %s5119_s6  ;;  %v4747_v12 = vld [vmem:[%s5202_s28 + $0xc0] sm:$0xe] }
 0x293   : > { %3270 = vrot.lane.b32.xlu0 %v3183_v31, %s5122_s9  ;;  %3268 = vrot.lane.b32.xlu2 %v3180_v34, %s5122_s9  ;;  %v3230_v31 = vrot.slane %v3228_v27, 4  ;;  %v4767_v35 = vrot.slane %v4747_v12, 9  ;;  %v3770_v12 = vsel %vm6655_vm7, 0, %v3769_v23 }
 0x294   : > { %v2379_v37 = vpop.permute.xlu1 %2378  ;;  %3771 = vst [vmem:[%s6610_s29 + $0xd4] sm:$0x1] %v3770_v12 }
 0x295   : > { %2457 = vst.msk [vmem:[#allocation2 + $0x48] sm:$0xf] %vm2438_vm13, %v2379_v37  ;;  %v3263_v39 = vpop.permute.xlu0 %3262  ;;  %v4954_v43 = vld [vmem:[#allocation2 + $0x10] sm:$0xff]  ;;  %v2954_v44 = vpop.permute.xlu2 %2953 }
 0x296   : > { %3348 = vst.msk [vmem:[#allocation2 + $0x2c] sm:$0xf] %vm3336_vm15, %v3263_v39  ;;  %3579 = vmatmul.bf16.gmra.mxu0 %v4954_v43  ;;  %v2143_v39 = vrot.slane %v6596_v33, 5  ;;  %v4752_v33 = vld [vmem:[%s5202_s28 + $0xd4] sm:$0x1] }
 0x297   : > { %3018 = vst.msk [vmem:[#allocation2 + $0x48] sm:$0xf] %vm2999_vm14, %v2940_v29  ;;  %v4749_v29 = vld [vmem:[%s5202_s28 + $0xc8] sm:$0x1]  ;;  %v3238_v41 = vrot.slane %v4752_v33, 5 }
 0x298   : > { %v3231_v32 = vrot.slane %v4749_v29, 5  ;;  %v2145_v55 = vrot.slane %v2143_v39, 4  ;;  %v4751_v29 = vld [vmem:[%s5202_s28 + $0xd0] sm:$0xf] }
 0x29a   : > { %2398 = vrot.lane.b32.xlu1 %v4653_v46, %s5120_s7  ;;  %v3229_v46 = vsel %vm5387_vm6, %v4767_v35, %v3228_v27  ;;  %v4750_v35 = vld [vmem:[%s5202_s28 + $0xcc] sm:$0xe] }
 0x29b   : > { %2388 = vrot.lane.b32.xlu0 %v4648_v49, %s5120_s7  ;;  %2386 = vrot.lane.b32.xlu2 %v4647_v53, %s5120_s7  ;;  %v2146_v49 = vrot.slane %v4608_v36, 5  ;;  %v3665_v53 = vld [vmem:[%s6610_s29 + $0xc] sm:$0x1]  ;;  %v4768_v40 = vrot.slane %v4750_v35, 9 }
 0x29c   : > { %v2393_v58 = vpop.permute.xlu1 %2392 }
 0x29d   : > { %2464 = vst.msk [vmem:[#allocation2 + $0x64] sm:$0xf] %vm2438_vm13, %v2393_v58  ;;  %v2391_v60 = vpop.permute.xlu0 %2390  ;;  %v4957_v3 = vld [vmem:[#allocation2 + $0x28] sm:$0xff]  ;;  %v3289_v8 = vpop.permute.xlu2 %3288  ;;  %v2882_v58 = vrot.slane %v2880_v47, 4  ;;  %v2147_v11 = vsel %vm5387_vm6, %v2145_v55, %v2146_v49 }
 0x29e   : > { %2463 = vst.msk [vmem:[#allocation2 + $0x60] sm:$0xf] %vm2438_vm13, %v2391_v60  ;;  %3594 = vmatmul.bf16.gmra.mxu1 %v4957_v3  ;;  %v2891_v60 = vrot.slane %v2889_v51, 5  ;;  %v3666_v3 = vsel %vm6633_vm4, 0, %v3665_v53 }
 0x29f   : > { %3025 = vst.msk [vmem:[#allocation2 + $0x64] sm:$0xf] %vm2999_vm14, %v2954_v44  ;;  %v3232_v44 = vsel %vm5387_vm6, %v3230_v31, %v3231_v32  ;;  %v3235_v32 = vrot.slane %v4751_v29, 5 }
 0x2a0   : > { %v2896_v5 = vor.u32 %v2895_v56, %v2891_v60  ;;  %3667 = vst [vmem:[%s6610_s29 + $0xc] sm:$0x1] %v3666_v3 }
 0x2a2   : > { %2949 = vrot.lane.b32.xlu1 %v2806_v7, %s5121_s8  ;;  %v3721_v7 = vld [vmem:[%s6610_s29 + $0x14] sm:$0x1]  ;;  %v2897_v21 = vrot.slane %v2896_v5, 4  ;;  %v3733_v5 = vld [vmem:[%s6610_s29 + $0x44] sm:$0x1] }
 0x2a3   : > { %2947 = vrot.lane.b32.xlu0 %v2796_v59, %s5121_s8  ;;  %2400 = vrot.lane.b32.xlu2 %v4654_v13, %s5120_s7  ;;  %v4655_v59 = vld [vmem:[%s5202_s28 + $0xcc] sm:$0xf]  ;;  %v2886_v13 = vor.u32 %v2885_v61, %v2882_v58  ;;  %v3722_v18 = vsel %vm6655_vm7, 0, %v3721_v7 }
 0x2a4   : > { %v2952_v17 = vpop.permute.xlu1 %2951  ;;  %3723 = vst [vmem:[%s6610_s29 + $0x14] sm:$0x1] %v3722_v18 }
 0x2a5   : > { %3024 = vst.msk [vmem:[#allocation2 + $0x60] sm:$0xf] %vm2999_vm14, %v2952_v17  ;;  %v2942_v22 = vpop.permute.xlu0 %2941  ;;  %v2357_v24 = vpop.permute.xlu2 %2356  ;;  %v2144_v17 = vsel %vm5387_vm6, %v4624_v4, %v2143_v39  ;;  %v3668_v39 = vld [vmem:[%s6610_s29 + $0x18] sm:$0x1] }
 0x2a6   : > { %3019 = vst.msk [vmem:[#allocation2 + $0x4c] sm:$0xf] %vm2999_vm14, %v2942_v22  ;;  %v2901_v22 = vrot.slane %v2899_v9, 5 }
 0x2a7   : > { %3361 = vst.msk [vmem:[#allocation2 + $0x60] sm:$0xf] %vm3336_vm15, %v3289_v8  ;;  %v3662_v8 = vld [vmem:[%s6610_s29] sm:$0x1]  ;;  %v4868_v58 = vld [vmem:[%s6610_s29 + $0xc] sm:$0xf] }
 0x2a8   : > { %2446 = vst.msk [vmem:[#allocation2 + $0x1c] sm:$0xf] %vm2438_vm13, %v2357_v24  ;;  %v3663_v10 = vsel %vm6633_vm4, 0, %v3662_v8  ;;  %v2902_v30 = vsel %vm5213_vm2, %v2897_v21, %v2901_v22 }
 0x2a9   : > { %3664 = vst [vmem:[%s6610_s29] sm:$0x1] %v3663_v10 }
 0x2aa   : > { %3284 = vrot.lane.b32.xlu1 %v3208_v26, %s5122_s9  ;;  %v2887_v26 = vrot.slane %v2886_v13, 4 }
 0x2ab   : > { %2961 = vrot.lane.b32.xlu0 %v2878_v28, %s5121_s8  ;;  %2959 = vrot.lane.b32.xlu2 %v2868_v19, %s5121_s8  ;;  %v4871_v16 = vld [vmem:[%s6610_s29 + $0x14] sm:$0x1] }
 0x2ac   : > { %v3279_v34 = vpop.permute.xlu1 %3278  ;;  %v2892_v31 = vsel %vm5213_vm2, %v2887_v26, %v2891_v60  ;;  %vm6728_vm2 = vmand %vm3650_vm0, %vm3716_vm5 }
 0x2ad   : > { %3356 = vst.msk [vmem:[#allocation2 + $0x4c] sm:$0xf] %vm3336_vm15, %v3279_v34  ;;  %v3277_v37 = vpop.permute.xlu0 %3276  ;;  %v2916_v43 = vpop.permute.xlu2 %2915  ;;  %v4656_v34 = vld [vmem:[%s5202_s28 + $0xd0] sm:$0xf]  ;;  %s7173_s28 = scalar_lea.vmem [#allocation3], %s4462_s25 }
 0x2ae   : > { %3355 = vst.msk [vmem:[#allocation2 + $0x48] sm:$0xf] %vm3336_vm15, %v3277_v37  ;;  %v3237_v37 = vrot.slane %v3235_v32, 4 }
 0x2b0   : > { %v3239_v38 = vsel %vm5387_vm6, %v3237_v37, %v3238_v41 }
 0x2b2   : > { %3298 = vrot.lane.b32.xlu1 %v3232_v44, %s5122_s9  ;;  %v3236_v44 = vsel %vm5387_vm6, %v4768_v40, %v3235_v32  ;;  %vm3804_vm6 = vsmask.f32 4368 }
 0x2b3   : > { %3296 = vrot.lane.b32.xlu0 %v3229_v46, %s5122_s9  ;;  %3286 = vrot.lane.b32.xlu2 %v3211_v50, %s5122_s9  ;;  %v3724_v50 = vld [vmem:[%s6610_s29 + $0x20] sm:$0x1]  ;;  %vm6744_vm8 = vmor %vm3660_vm3, %vm3804_vm6 }
 0x2b4   : > { %v2355_v57 = vpop.permute.xlu1 %2354  ;;  %v3725_v53 = vsel %vm6655_vm7, 0, %v3724_v50 }
 0x2b5   : > { %2445 = vst.msk [vmem:[#allocation2 + $0x18] sm:$0xf] %vm2438_vm13, %v2355_v57  ;;  %v3291_v0 = vpop.permute.xlu0 %3290  ;;  %v4961_v1 = vld [vmem:[#allocation2 + $0x48] sm:$0xff]  ;;  %v2930_v6 = vpop.permute.xlu2 %2929 }
 0x2b6   : > { %3362 = vst.msk [vmem:[#allocation2 + $0x64] sm:$0xf] %vm3336_vm15, %v3291_v0  ;;  %3614 = vmatmul.bf16.gmra.mxu2 %v4961_v1 }
 0x2b7   : > { %3006 = vst.msk [vmem:[#allocation2 + $0x18] sm:$0xf] %vm2999_vm14, %v2916_v43  ;;  %v3669_v43 = vsel %vm6633_vm4, 0, %v3668_v39 }
 0x2b8   : > { %3670 = vst [vmem:[%s6610_s29 + $0x18] sm:$0x1] %v3669_v43  ;;  %v3745_v43 = vld [vmem:[%s6610_s29 + $0x74] sm:$0x1] }
 0x2b9   : > { %3726 = vst [vmem:[%s6610_s29 + $0x20] sm:$0x1] %v3725_v53  ;;  %v3746_v63 = vsel %vm6655_vm7, 0, %v3745_v43 }
 0x2ba   : > { %2402 = vrot.lane.b32.xlu1 %v4655_v59, %s5120_s7  ;;  %3747 = vst [vmem:[%s6610_s29 + $0x74] sm:$0x1] %v3746_v63 }
 0x2bb   : > { %2210 = vrot.lane.b32.xlu0 %v2147_v11, %s5119_s6  ;;  %2208 = vrot.lane.b32.xlu2 %v2144_v17, %s5119_s6  ;;  %v3734_v11 = vsel %vm6655_vm7, 0, %v3733_v5  ;;  %s4949_s6 = sshll.u32 %s5165_s16, 3  ;;  %s4371_s16 = sshll.u32 %s7173_s28, 4  ;;  %s4372_s16 = int_to_ptr.vmem [resolvable:$true] %s4371_s16 }
 0x2bc   : > { %v2369_v24 = vpop.permute.xlu1 %2368  ;;  %3735 = vst [vmem:[%s6610_s29 + $0x44] sm:$0x1] %v3734_v11 }
 0x2bd   : > { %2452 = vst.msk [vmem:[#allocation2 + $0x34] sm:$0xf] %vm2438_vm13, %v2369_v24  ;;  %v2367_v27 = vpop.permute.xlu0 %2366  ;;  %v4964_v28 = vld [vmem:[#allocation2 + $0x60] sm:$0xff]  ;;  %v3265_v19 = vpop.permute.xlu2 %3264 }
 0x2be   : > { %2451 = vst.msk [vmem:[#allocation2 + $0x30] sm:$0xf] %vm2438_vm13, %v2367_v27  ;;  %3629 = vmatmul.bf16.vlgmr.msra.gmra.mxu3 %v4964_v28  ;;  %v3689_v28 = vld [vmem:[%s6610_s29 + $0x6c] sm:$0x1] }
 0x2bf   : > { %3013 = vst.msk [vmem:[#allocation2 + $0x34] sm:$0xf] %vm2999_vm14, %v2930_v6  ;;  %v3690_v29 = vsel %vm6633_vm4, 0, %v3689_v28 }
 0x2c0   : > { %3691 = vst [vmem:[%s6610_s29 + $0x6c] sm:$0x1] %v3690_v29 }
 0x2c2   : > { %2965 = vrot.lane.b32.xlu1 %v2902_v30, %s5121_s8 }
 0x2c3   : > { %2963 = vrot.lane.b32.xlu0 %v2892_v31, %s5121_s8  ;;  %2404 = vrot.lane.b32.xlu2 %v4656_v34, %s5120_s7 }
 0x2c4   : > { %v2928_v36 = vpop.permute.xlu1 %2927 }
 0x2c5   : > { %3012 = vst.msk [vmem:[#allocation2 + $0x30] sm:$0xf] %vm2999_vm14, %v2928_v36  ;;  %v2918_v25 = vpop.permute.xlu0 %2917  ;;  %v2385_v42 = vpop.permute.xlu2 %2384 }
 0x2c6   : > { %3007 = vst.msk [vmem:[#allocation2 + $0x1c] sm:$0xf] %vm2999_vm14, %v2918_v25  ;;  %v4873_v25 = vld [vmem:[%s6610_s29 + $0x18] sm:$0xf] }
 0x2c7   : > { %3349 = vst.msk [vmem:[#allocation2 + $0x30] sm:$0xf] %vm3336_vm15, %v3265_v19 }
 0x2c8   : > { %2460 = vst.msk [vmem:[#allocation2 + $0x54] sm:$0xf] %vm2438_vm13, %v2385_v42 }
 0x2cb   : > { %3302 = vrot.lane.b32.xlu0 %v3239_v38, %s5122_s9  ;;  %v3570_v46 = vpop.f32.mrf.mxu0  ;;  %3300 = vrot.lane.b32.xlu2 %v3236_v44, %s5122_s9  ;;  %s4369_s9 = scalar_lea.hbm %s7237_s3, %s4949_s6 }
 0x2cc   : > { %v3255_v45 = vpop.permute.xlu1 %3254  ;;  %v3772_v48 = vpack.c.bf16 %v3570_v46, %v3570_v46  ;;  %v4279_v62 = vmul.f32 %v3570_v46, %v3570_v46  ;;  %s4373_s30 = sshll.u32 %s4369_s9, 4  ;;  %s4374_s30 = int_to_ptr.hbm [resolvable:$true] %s4373_s30 }
 0x2cd   : > { %3344 = vst.msk [vmem:[#allocation2 + $0x1c] sm:$0xf] %vm3336_vm15, %v3255_v45  ;;  %v3253_v47 = vpop.permute.xlu0 %3252  ;;  %v2944_v49 = vpop.permute.xlu2 %2943  ;;  %s5064_s5 = sshra.s32 %s4374_s30, 4  ;;  %s5065_s5 = int_to_ptr.hbm [resolvable:$true] %s5064_s5 }
 0x2ce   : > { %3343 = vst.msk [vmem:[#allocation2 + $0x18] sm:$0xf] %vm3336_vm15, %v3253_v47  ;;  %v3807_v51 = vshrl.u32 %v3772_v48, 16  ;;  %v3810_v56 = vshll.u32 %v3772_v48, 16  ;;  %s5066_s10 = scalar_lea.hbm %s5065_s5, 8  ;;  %p5071_p0 = scmp.lt.s32.totalorder %s5065_s5, %s7237_s3 }
 0x2cf   : > { %p5067_p11 = scmp.ne.s32.totalorder %s5065_s5, %s5066_s10  ;;  %p5072_p1 = scmp.lt.s32.totalorder %s5070_s19, %s5066_s10 }
 0x2d0   : > { %v3809_v55 = vrot.slane %v3807_v51, 7 }
 0x2d1   : > { %p5068_p12 = pnand %p5067_p11, %p5182_p5  ;;  %p5073_p2 = por %p5072_p1, %p5071_p0 }
 0x2d2   : > { %v3812_v61 = vor.u32 %v3810_v56, %v3809_v55  ;;  %v3813_v17 = vrot.slane %v3809_v55, 4 }
 0x2d3   : > { %v3572_v1 = vpop.f32.mrf.mxu0  ;;  %p5069_p13 = pneg %p5068_p12 }
 0x2d4   : > { %v2383_v0 = vpop.permute.xlu1 %2382  ;;  %v4130_v60 = vsel %vm6728_vm2, %v3812_v61, %v4868_v58  ;;  %v3773_v4 = vpack.c.bf16 %v3572_v1, %v3572_v1  ;;  %v4241_v6 = vadd.f32 %v3572_v1, %v3570_v46  ;;  %v4280_v8 = vmul.f32 %v3572_v1, %v3572_v1  ;;  %v4876_v58 = vld [vmem:[%s6610_s29 + $0x20] sm:$0x1] }
 0x2d5   : > { %2459 = vst.msk [vmem:[#allocation2 + $0x50] sm:$0xf] %vm2438_vm13, %v2383_v0  ;;  %v3267_v3 = vpop.permute.xlu0 %3266  ;;  %v4955_v7 = vld [vmem:[#allocation2 + $0x18] sm:$0xff]  ;;  %v2958_v59 = vpop.permute.xlu2 %2957  ;;  %p5074_p3 = pnand %p5073_p2, %p5069_p13 }
 0x2d6   : > { %4869 = vst [vmem:[%s6610_s29 + $0xc] sm:$0xf] %v4130_v60  ;;  %v3815_v9 = vshrl.u32 %v3773_v4, 16  ;;  %v4311_v10 = vadd.f32 %v4280_v8, %v4279_v62  ;;  %3584 = vmatmul.bf16.gmra.mxu0 %v4955_v7  ;;  %v3818_v14 = vshll.u32 %v3773_v4, 16 }
 0x2d7   : > { %3350 = vst.msk [vmem:[#allocation2 + $0x34] sm:$0xf] %vm3336_vm15, %v3267_v3  ;;  %v4888_v3 = vld [vmem:[%s6610_s29 + $0x3c] sm:$0xf] }
 0x2d8   : > { %3020 = vst.msk [vmem:[#allocation2 + $0x50] sm:$0xf] %vm2999_vm14, %v2944_v49  ;;  %v3817_v13 = vrot.slane %v3815_v9, 7 }
 0x2da   : > { %v3820_v18 = vor.u32 %v3818_v14, %v3817_v13  ;;  %v3822_v20 = vrot.slane %v3817_v13, 4  ;;  %v3671_v14 = vld [vmem:[%s6610_s29 + $0x24] sm:$0x1] }
 0x2dc   : > { %v2397_v21 = vpop.permute.xlu1 %2396  ;;  %v3821_v22 = vsel %vm6744_vm8, %v3813_v17, %v3820_v18  ;;  %v4134_v23 = vsel %vm6633_vm4, %v3822_v20, %v4871_v16  ;;  %v3672_v17 = vsel %vm6633_vm4, 0, %v3671_v14 }
 0x2dd   : > { %2466 = vst.msk [vmem:[#allocation2 + $0x6c] sm:$0xf] %vm2438_vm13, %v2397_v21  ;;  %v2395_v24 = vpop.permute.xlu0 %2394  ;;  %v3293_v27 = vpop.permute.xlu2 %3292  ;;  %v4891_v21 = vld [vmem:[%s6610_s29 + $0x44] sm:$0x1] }
 0x2de   : > { %4870 = vst.msk [vmem:[%s6610_s29 + $0x10] sm:$0xf] %vm3650_vm0, %v3821_v22  ;;  %v4958_v26 = vld [vmem:[#allocation2 + $0x30] sm:$0xff] }
 0x2df   : > { %4872 = vst [vmem:[%s6610_s29 + $0x14] sm:$0x1] %v4134_v23  ;;  %3599 = vmatmul.bf16.gmra.mxu1 %v4958_v26 }
 0x2e0   : > { %2465 = vst.msk [vmem:[#allocation2 + $0x68] sm:$0xf] %vm2438_vm13, %v2395_v24 }
 0x2e1   : > { %3027 = vst.msk [vmem:[#allocation2 + $0x6c] sm:$0xf] %vm2999_vm14, %v2958_v59 }
 0x2e2   : > { %3673 = vst [vmem:[%s6610_s29 + $0x24] sm:$0x1] %v3672_v17 }
 0x2e3   : > { %v3575_v19 = vpop.f32.mrf.mxu0 }
 0x2e4   : > { %v2956_v12 = vpop.permute.xlu1 %2955  ;;  %v3774_v31 = vpack.c.bf16 %v3575_v19, %v3575_v19  ;;  %v4242_v32 = vadd.f32 %v4241_v6, %v3575_v19  ;;  %v4281_v33 = vmul.f32 %v3575_v19, %v3575_v19  ;;  %v3727_v19 = vld [vmem:[%s6610_s29 + $0x2c] sm:$0x1] }
 0x2e5   : > { %3026 = vst.msk [vmem:[#allocation2 + $0x68] sm:$0xf] %vm2999_vm14, %v2956_v12  ;;  %v2946_v30 = vpop.permute.xlu0 %2945  ;;  %v2373_v34 = vpop.permute.xlu2 %2372 }
 0x2e6   : > { %3021 = vst.msk [vmem:[#allocation2 + $0x54] sm:$0xf] %vm2999_vm14, %v2946_v30  ;;  %v3824_v35 = vshrl.u32 %v3774_v31, 16  ;;  %v4312_v36 = vadd.f32 %v4311_v10, %v4281_v33  ;;  %v3827_v41 = vshll.u32 %v3774_v31, 16  ;;  %v3680_v30 = vld [vmem:[%s6610_s29 + $0x48] sm:$0x1] }
 0x2e7   : > { %3363 = vst.msk [vmem:[#allocation2 + $0x68] sm:$0xf] %vm3336_vm15, %v3293_v27  ;;  %v3728_v31 = vsel %vm6655_vm7, 0, %v3727_v19  ;;  %v3681_v33 = vsel %vm6633_vm4, 0, %v3680_v30 }
 0x2e8   : > { %2454 = vst.msk [vmem:[#allocation2 + $0x3c] sm:$0xf] %vm2438_vm13, %v2373_v34  ;;  %v3826_v37 = vrot.slane %v3824_v35, 7 }
 0x2e9   : > { %3729 = vst [vmem:[%s6610_s29 + $0x2c] sm:$0x1] %v3728_v31  ;;  %v4878_v17 = vld [vmem:[%s6610_s29 + $0x24] sm:$0xf] }
 0x2ea   : > { %v3829_v40 = vor.u32 %v3827_v41, %v3826_v37  ;;  %v3830_v0 = vrot.slane %v3826_v37, 4  ;;  %3682 = vst [vmem:[%s6610_s29 + $0x48] sm:$0x1] %v3681_v33 }
 0x2eb   : > { %v3577_v39 = vpop.f32.mrf.mxu0  ;;  %v6774_v48 = vpop.f32.mrf.mxu1 }
 0x2ec   : > { %v3283_v42 = vpop.permute.xlu1 %3282  ;;  %v4137_v38 = vsel %vm6728_vm2, %v3829_v40, %v4873_v25  ;;  %v3775_v45 = vpack.c.bf16 %v3577_v39, %v3577_v39  ;;  %v6772_v46 = vadd.f32 %v4242_v32, %v3577_v39  ;;  %v4282_v47 = vmul.f32 %v3577_v39, %v3577_v39  ;;  %v3736_v40 = vld [vmem:[%s6610_s29 + $0x50] sm:$0x1] }
 0x2ed   : > { %3358 = vst.msk [vmem:[#allocation2 + $0x54] sm:$0xf] %vm3336_vm15, %v3283_v42  ;;  %v3281_v44 = vpop.permute.xlu0 %3280  ;;  %v3780_v49 = vpack.c.bf16 %v6774_v48, %v6774_v48  ;;  %v3269_v50 = vpop.permute.xlu2 %3268  ;;  %v3737_v43 = vsel %vm6655_vm7, 0, %v3736_v40 }
 0x2ee   : > { %4874 = vst [vmem:[%s6610_s29 + $0x18] sm:$0xf] %v4137_v38  ;;  %v3832_v51 = vshrl.u32 %v3775_v45, 16  ;;  %v6782_v53 = vadd.f32 %v4312_v36, %v4282_v47  ;;  %v3835_v56 = vshll.u32 %v3775_v45, 16  ;;  %v4908_v38 = vld [vmem:[%s6610_s29 + $0x6c] sm:$0xf] }
 0x2ef   : > { %3357 = vst.msk [vmem:[#allocation2 + $0x50] sm:$0xf] %vm3336_vm15, %v3281_v44  ;;  %v3875_v54 = vshrl.u32 %v3780_v49, 16  ;;  %v3878_v62 = vshll.u32 %v3780_v49, 16 }
 0x2f0   : > { %v3834_v55 = vrot.slane %v3832_v51, 7  ;;  %3738 = vst [vmem:[%s6610_s29 + $0x50] sm:$0x1] %v3737_v43  ;;  %v4881_v33 = vld [vmem:[%s6610_s29 + $0x2c] sm:$0x1] }
 0x2f1   : > { %v3877_v61 = vrot.slane %v3875_v54, 7  ;;  %v4893_v40 = vld [vmem:[%s6610_s29 + $0x48] sm:$0xf] }
 0x2f2   : > { %v3837_v1 = vor.u32 %v3835_v56, %v3834_v55  ;;  %v3839_v60 = vrot.slane %v3834_v55, 4 }
 0x2f3   : > { %v3880_v4 = vor.u32 %v3878_v62, %v3877_v61  ;;  %v6792_v5 = vpop.f32.mrf.mxu1  ;;  %v3881_v22 = vrot.slane %v3877_v61, 4  ;;  %v4911_v61 = vld [vmem:[%s6610_s29 + $0x74] sm:$0x1] }
 0x2f4   : > { %v2371_v6 = vpop.permute.xlu1 %2370  ;;  %v3838_v8 = vsel %vm6744_vm8, %v3830_v0, %v3837_v1  ;;  %v4141_v7 = vsel %vm6633_vm4, %v3839_v60, %v4876_v58  ;;  %v3781_v10 = vpack.c.bf16 %v6792_v5, %v6792_v5 }
 0x2f5   : > { %2453 = vst.msk [vmem:[#allocation2 + $0x38] sm:$0xf] %vm2438_vm13, %v2371_v6  ;;  %v3295_v59 = vpop.permute.xlu0 %3294  ;;  %v4158_v9 = vsel %vm6728_vm2, %v3880_v4, %v4888_v3  ;;  %v2387_v13 = vpop.permute.xlu2 %2386 }
 0x2f6   : > { %4875 = vst.msk [vmem:[%s6610_s29 + $0x1c] sm:$0xf] %vm3650_vm0, %v3838_v8  ;;  %v4962_v11 = vld [vmem:[#allocation2 + $0x50] sm:$0xff]  ;;  %v3883_v16 = vshrl.u32 %v3781_v10, 16  ;;  %v3886_v20 = vshll.u32 %v3781_v10, 16 }
 0x2f7   : > { %4877 = vst [vmem:[%s6610_s29 + $0x20] sm:$0x1] %v4141_v7  ;;  %3619 = vmatmul.bf16.gmra.mxu2 %v4962_v11 }
 0x2f8   : > { %4889 = vst [vmem:[%s6610_s29 + $0x3c] sm:$0xf] %v4158_v9  ;;  %v3885_v18 = vrot.slane %v3883_v16, 7 }
 0x2f9   : > { %3364 = vst.msk [vmem:[#allocation2 + $0x6c] sm:$0xf] %vm3336_vm15, %v3295_v59 }
 0x2fa   : > { %2461 = vst.msk [vmem:[#allocation2 + $0x58] sm:$0xf] %vm2438_vm13, %v2387_v13  ;;  %v3888_v23 = vor.u32 %v3886_v20, %v3885_v18  ;;  %v3890_v24 = vrot.slane %v3885_v18, 4  ;;  %v3692_v18 = vld [vmem:[%s6610_s29 + $0x78] sm:$0x1] }
 0x2fb   : > { %v3693_v20 = vsel %vm6633_vm4, 0, %v3692_v18 }
 0x2fc   : > { %v2934_v26 = vpop.permute.xlu1 %2933  ;;  %v3889_v28 = vsel %vm6744_vm8, %v3881_v22, %v3888_v23  ;;  %v4162_v29 = vsel %vm6633_vm4, %v3890_v24, %v4891_v21  ;;  %3694 = vst [vmem:[%s6610_s29 + $0x78] sm:$0x1] %v3693_v20 }
 0x2fd   : > { %3015 = vst.msk [vmem:[#allocation2 + $0x3c] sm:$0xf] %vm2999_vm14, %v2934_v26  ;;  %v2932_v27 = vpop.permute.xlu0 %2931  ;;  %v2401_v12 = vpop.permute.xlu2 %2400 }
 0x2fe   : > { %3014 = vst.msk [vmem:[#allocation2 + $0x38] sm:$0xf] %vm2999_vm14, %v2932_v27 }
 0x2ff   : > { %4890 = vst.msk [vmem:[%s6610_s29 + $0x40] sm:$0xf] %vm3650_vm0, %v3889_v28 }
 0x300   : > { %4892 = vst [vmem:[%s6610_s29 + $0x44] sm:$0x1] %v4162_v29  ;;  %v4965_v32 = vld [vmem:[#allocation2 + $0x68] sm:$0xff] }
 0x301   : > { %3351 = vst.msk [vmem:[#allocation2 + $0x38] sm:$0xf] %vm3336_vm15, %v3269_v50  ;;  %3634 = vmatmul.bf16.gmra.mxu3 %v4965_v32  ;;  %v6825_v34 = vpop.f32.mrf.mxu2 }
 0x302   : > { %v3788_v35 = vpack.c.bf16 %v6825_v34, %v6825_v34 }
 0x304   : > { %v2207_v36 = vpop.permute.xlu1 %2206  ;;  %v3943_v37 = vshrl.u32 %v3788_v35, 16  ;;  %v3946_v39 = vshll.u32 %v3788_v35, 16 }
 0x305   : > { %2274 = vst.msk [vmem:[#allocation2 + $0x74] sm:$0xf] %vm2244_vm12, %v2207_v36  ;;  %v3271_v41 = vpop.permute.xlu0 %3270  ;;  %v2960_v25 = vpop.permute.xlu2 %2959 }
 0x306   : > { %3352 = vst.msk [vmem:[#allocation2 + $0x3c] sm:$0xf] %vm3336_vm15, %v3271_v41  ;;  %v3945_v42 = vrot.slane %v3943_v37, 7 }
 0x307   : > { %2468 = vst.msk [vmem:[#allocation2 + $0x74] sm:$0xf] %vm2438_vm13, %v2401_v12 }
 0x308   : > { %v3948_v44 = vor.u32 %v3946_v39, %v3945_v42  ;;  %v3949_v62 = vrot.slane %v3945_v42, 4 }
 0x309   : > { %v6839_v45 = vpop.f32.mrf.mxu2 }
 0x30a   : > { %v4186_v47 = vsel %vm6728_vm2, %v3948_v44, %v4908_v38  ;;  %v3789_v49 = vpack.c.bf16 %v6839_v45, %v6839_v45  ;;  %v3748_v38 = vld [vmem:[%s6610_s29 + $0x80] sm:$0x1] }
 0x30b   : > { %4909 = vst [vmem:[%s6610_s29 + $0x6c] sm:$0xf] %v4186_v47 }
 0x30c   : > { %v2399_v50 = vpop.permute.xlu1 %2398  ;;  %v3951_v63 = vshrl.u32 %v3789_v49, 16  ;;  %v3954_v58 = vshll.u32 %v3789_v49, 16 }
 0x30d   : > { %2467 = vst.msk [vmem:[#allocation2 + $0x70] sm:$0xf] %vm2438_vm13, %v2399_v50  ;;  %v2389_v51 = vpop.permute.xlu0 %2388  ;;  %v4959_v54 = vld [vmem:[#allocation2 + $0x38] sm:$0xff]  ;;  %v3287_v55 = vpop.permute.xlu2 %3286 }
 0x30e   : > { %2462 = vst.msk [vmem:[#allocation2 + $0x5c] sm:$0xf] %vm2438_vm13, %v2389_v51  ;;  %v3953_v56 = vrot.slane %v3951_v63, 7  ;;  %3604 = vmatmul.bf16.gmra.mxu1 %v4959_v54  ;;  %v3701_v63 = vld [vmem:[%s6610_s29 + $0x9c] sm:$0x1] }
 0x30f   : > { %3028 = vst.msk [vmem:[#allocation2 + $0x70] sm:$0xf] %vm2999_vm14, %v2960_v25 }
 0x310   : > { %v3956_v0 = vor.u32 %v3954_v58, %v3953_v56  ;;  %v3958_v1 = vrot.slane %v3953_v56, 4  ;;  %v3702_v58 = vsel %vm6633_vm4, 0, %v3701_v63 }
 0x311   : > { %3703 = vst [vmem:[%s6610_s29 + $0x9c] sm:$0x1] %v3702_v58 }
 0x312   : > { %v3957_v60 = vsel %vm6744_vm8, %v3949_v62, %v3956_v0  ;;  %v4190_v3 = vsel %vm6633_vm4, %v3958_v1, %v4911_v61  ;;  %v4896_v1 = vld [vmem:[%s6610_s29 + $0x50] sm:$0x1] }
 0x313   : > { %4910 = vst.msk [vmem:[%s6610_s29 + $0x70] sm:$0xf] %vm3650_vm0, %v3957_v60  ;;  %v3580_v6 = vpop.f32.mrf.mxu0 }
 0x314   : > { %v2950_v4 = vpop.permute.xlu1 %2949  ;;  %4912 = vst [vmem:[%s6610_s29 + $0x74] sm:$0x1] %v4190_v3  ;;  %v3776_v7 = vpack.c.bf16 %v3580_v6, %v3580_v6  ;;  %v4244_v59 = vadd.f32 %v6772_v46, %v3580_v6  ;;  %v4283_v9 = vmul.f32 %v3580_v6, %v3580_v6 }
 0x315   : > { %v2948_v8 = vpop.permute.xlu0 %2947  ;;  %3023 = vst.msk [vmem:[#allocation2 + $0x5c] sm:$0xf] %vm2999_vm14, %v2950_v4  ;;  %v2209_v10 = vpop.permute.xlu2 %2208 }
 0x316   : > { %3022 = vst.msk [vmem:[#allocation2 + $0x58] sm:$0xf] %vm2999_vm14, %v2948_v8  ;;  %v3841_v11 = vshrl.u32 %v3776_v7, 16  ;;  %v4314_v13 = vadd.f32 %v6782_v53, %v4283_v9  ;;  %v3844_v16 = vshll.u32 %v3776_v7, 16  ;;  %v3757_v8 = vld [vmem:[%s6610_s29 + $0xa4] sm:$0x1] }
 0x317   : > { %3360 = vst.msk [vmem:[#allocation2 + $0x5c] sm:$0xf] %vm3336_vm15, %v3287_v55  ;;  %v3749_v55 = vsel %vm6655_vm7, 0, %v3748_v38 }
 0x318   : > { %v3843_v14 = vrot.slane %v3841_v11, 7  ;;  %2275 = vst.msk [vmem:[#allocation2 + $0x78] sm:$0xf] %vm2244_vm12, %v2209_v10  ;;  %v3758_v10 = vsel %vm6655_vm7, 0, %v3757_v8  ;;  %v4928_v63 = vld [vmem:[%s6610_s29 + $0x9c] sm:$0xf] }
 0x319   : > { %3750 = vst [vmem:[%s6610_s29 + $0x80] sm:$0x1] %v3749_v55 }
 0x31a   : > { %v3846_v46 = vor.u32 %v3844_v16, %v3843_v14  ;;  %v3847_v37 = vrot.slane %v3843_v14, 4  ;;  %3759 = vst [vmem:[%s6610_s29 + $0xa4] sm:$0x1] %v3758_v10 }
 0x31b   : > { %v3582_v22 = vpop.f32.mrf.mxu0  ;;  %v6873_v28 = vpop.f32.mrf.mxu1 }
 0x31c   : > { %v3285_v21 = vpop.permute.xlu1 %3284  ;;  %v4144_v53 = vsel %vm6728_vm2, %v3846_v46, %v4878_v17  ;;  %v3777_v24 = vpack.c.bf16 %v3582_v22, %v3582_v22  ;;  %v6871_v26 = vadd.f32 %v4244_v59, %v3582_v22  ;;  %v4284_v27 = vmul.f32 %v3582_v22, %v3582_v22  ;;  %v3674_v17 = vld [vmem:[%s6610_s29 + $0x30] sm:$0x1] }
 0x31d   : > { %3359 = vst.msk [vmem:[#allocation2 + $0x58] sm:$0xf] %vm3336_vm15, %v3285_v21  ;;  %v2962_v23 = vpop.permute.xlu0 %2961  ;;  %v3782_v29 = vpack.c.bf16 %v6873_v28, %v6873_v28  ;;  %v2405_v0 = vpop.permute.xlu2 %2404  ;;  %v3675_v18 = vsel %vm6633_vm4, 0, %v3674_v17 }
 0x31e   : > { %4879 = vst [vmem:[%s6610_s29 + $0x24] sm:$0xf] %v4144_v53  ;;  %v3849_v12 = vshrl.u32 %v3777_v24, 16  ;;  %v6879_v19 = vadd.f32 %v4314_v13, %v4284_v27  ;;  %v3852_v32 = vshll.u32 %v3777_v24, 16  ;;  %v3730_v53 = vld [vmem:[%s6610_s29 + $0x38] sm:$0x1] }
 0x31f   : > { %3029 = vst.msk [vmem:[#allocation2 + $0x74] sm:$0xf] %vm2999_vm14, %v2962_v23  ;;  %v3892_v30 = vshrl.u32 %v3782_v29, 16  ;;  %v3895_v36 = vshll.u32 %v3782_v29, 16  ;;  %v3683_v23 = vld [vmem:[%s6610_s29 + $0x54] sm:$0x1] }
 0x320   : > { %v3851_v31 = vrot.slane %v3849_v12, 7  ;;  %3676 = vst [vmem:[%s6610_s29 + $0x30] sm:$0x1] %v3675_v18  ;;  %v3731_v29 = vsel %vm6655_vm7, 0, %v3730_v53  ;;  %v3684_v12 = vsel %vm6633_vm4, 0, %v3683_v23 }
 0x321   : > { %v3894_v35 = vrot.slane %v3892_v30, 7  ;;  %v4913_v30 = vld [vmem:[%s6610_s29 + $0x78] sm:$0xf]  ;;  %3732 = vst [vmem:[%s6610_s29 + $0x38] sm:$0x1] %v3731_v29 }
 0x322   : > { %v3854_v41 = vor.u32 %v3852_v32, %v3851_v31  ;;  %v3856_v25 = vrot.slane %v3851_v31, 4  ;;  %3685 = vst [vmem:[%s6610_s29 + $0x54] sm:$0x1] %v3684_v12  ;;  %v3695_v23 = vld [vmem:[%s6610_s29 + $0x84] sm:$0x1] }
 0x323   : > { %v3897_v42 = vor.u32 %v3895_v36, %v3894_v35  ;;  %v6889_v50 = vpop.f32.mrf.mxu1  ;;  %v3898_v60 = vrot.slane %v3894_v35, 4 }
 0x324   : > { %v3299_v39 = vpop.permute.xlu1 %3298  ;;  %v4963_v43 = vld [vmem:[#allocation2 + $0x58] sm:$0xff]  ;;  %v3855_v44 = vsel %vm6744_vm8, %v3847_v37, %v3854_v41  ;;  %v4148_v47 = vsel %vm6633_vm4, %v3856_v25, %v4881_v33  ;;  %v3783_v54 = vpack.c.bf16 %v6889_v50, %v6889_v50 }
 0x325   : > { %3366 = vst.msk [vmem:[#allocation2 + $0x74] sm:$0xf] %vm3336_vm15, %v3299_v39  ;;  %v3297_v49 = vpop.permute.xlu0 %3296  ;;  %v4165_v51 = vsel %vm6728_vm2, %v3897_v42, %v4893_v40  ;;  %3624 = vmatmul.bf16.gmra.mxu2 %v4963_v43  ;;  %v3301_v14 = vpop.permute.xlu2 %3300  ;;  %v3739_v39 = vld [vmem:[%s6610_s29 + $0x5c] sm:$0x1] }
 0x326   : > { %4880 = vst.msk [vmem:[%s6610_s29 + $0x28] sm:$0xf] %vm3650_vm0, %v3855_v44  ;;  %v3900_v56 = vshrl.u32 %v3783_v54, 16  ;;  %v3903_v62 = vshll.u32 %v3783_v54, 16 }
 0x327   : > { %4882 = vst [vmem:[%s6610_s29 + $0x2c] sm:$0x1] %v4148_v47  ;;  %v3740_v47 = vsel %vm6655_vm7, 0, %v3739_v39 }
 0x328   : > { %4894 = vst [vmem:[%s6610_s29 + $0x48] sm:$0xf] %v4165_v51  ;;  %v3902_v61 = vrot.slane %v3900_v56, 7 }
 0x329   : > { %3365 = vst.msk [vmem:[#allocation2 + $0x70] sm:$0xf] %vm3336_vm15, %v3297_v49  ;;  %v4916_v49 = vld [vmem:[%s6610_s29 + $0x80] sm:$0x1] }
 0x32a   : > { %v3905_v3 = vor.u32 %v3903_v62, %v3902_v61  ;;  %v3907_v4 = vrot.slane %v3902_v61, 4  ;;  %3741 = vst [vmem:[%s6610_s29 + $0x5c] sm:$0x1] %v3740_v47 }
 0x32c   : > { %v2403_v6 = vpop.permute.xlu1 %2402  ;;  %v3906_v59 = vsel %vm6744_vm8, %v3898_v60, %v3905_v3  ;;  %v4169_v9 = vsel %vm6633_vm4, %v3907_v4, %v4896_v1 }
 0x32d   : > { %v2211_v7 = vpop.permute.xlu0 %2210  ;;  %2469 = vst.msk [vmem:[#allocation2 + $0x78] sm:$0xf] %vm2438_vm13, %v2403_v6  ;;  %v4931_v6 = vld [vmem:[%s6610_s29 + $0xa4] sm:$0x1] }
 0x32e   : > { %2276 = vst.msk [vmem:[#allocation2 + $0x7c] sm:$0xf] %vm2244_vm12, %v2211_v7 }
 0x32f   : > { %4895 = vst.msk [vmem:[%s6610_s29 + $0x4c] sm:$0xf] %vm3650_vm0, %v3906_v59 }
 0x330   : > { %4897 = vst [vmem:[%s6610_s29 + $0x50] sm:$0x1] %v4169_v9  ;;  %v4966_v11 = vld [vmem:[#allocation2 + $0x70] sm:$0xff] }
 0x331   : > { %2470 = vst.msk [vmem:[#allocation2 + $0x7c] sm:$0xf] %vm2438_vm13, %v2405_v0  ;;  %3639 = vmatmul.bf16.gmra.mxu3 %v4966_v11 }
 0x334   : > { %v2966_v13 = vpop.permute.xlu1 %2965 }
 0x335   : > { %v2964_v16 = vpop.permute.xlu0 %2963  ;;  %3031 = vst.msk [vmem:[#allocation2 + $0x7c] sm:$0xf] %vm2999_vm14, %v2966_v13 }
 0x336   : > { %3030 = vst.msk [vmem:[#allocation2 + $0x78] sm:$0xf] %vm2999_vm14, %v2964_v16 }
 0x337   : > { %3367 = vst.msk [vmem:[#allocation2 + $0x78] sm:$0xf] %vm3336_vm15, %v3301_v14 }
 0x339   : > { %v6929_v46 = vpop.f32.mrf.mxu2 }
 0x33a   : > { %v3790_v20 = vpack.c.bf16 %v6929_v46, %v6929_v46 }
 0x33c   : > { %v3960_v21 = vshrl.u32 %v3790_v20, 16  ;;  %v3963_v27 = vshll.u32 %v3790_v20, 16 }
 0x33d   : > { %v3303_v22 = vpop.permute.xlu0 %3302 }
 0x33e   : > { %3368 = vst.msk [vmem:[#allocation2 + $0x7c] sm:$0xf] %vm3336_vm15, %v3303_v22  ;;  %v3962_v24 = vrot.slane %v3960_v21, 7  ;;  %v4883_v22 = vld [vmem:[%s6610_s29 + $0x30] sm:$0xf] }
 0x340   : > { %v3965_v31 = vor.u32 %v3963_v27, %v3962_v24  ;;  %v3966_v51 = vrot.slane %v3962_v24, 4  ;;  %v3696_v27 = vsel %vm6633_vm4, 0, %v3695_v23 }
 0x341   : > { %v6943_v32 = vpop.f32.mrf.mxu2  ;;  %v6945_v33 = vpop.f32.mrf.mxu3  ;;  %3697 = vst [vmem:[%s6610_s29 + $0x84] sm:$0x1] %v3696_v27  ;;  %v3760_v27 = vld [vmem:[%s6610_s29 + $0xb0] sm:$0x1] }
 0x342   : > { %v4193_v35 = vsel %vm6728_vm2, %v3965_v31, %v4913_v30  ;;  %v3791_v36 = vpack.c.bf16 %v6943_v32, %v6943_v32  ;;  %v3796_v37 = vpack.c.bf16 %v6945_v33, %v6945_v33 }
 0x343   : > { %4914 = vst [vmem:[%s6610_s29 + $0x78] sm:$0xf] %v4193_v35  ;;  %v4287_v35 = vmul.f32 %v6774_v48, %v6774_v48 }
 0x344   : > { %v3968_v41 = vshrl.u32 %v3791_v36, 16  ;;  %v4011_v25 = vshrl.u32 %v3796_v37, 16  ;;  %v3971_v42 = vshll.u32 %v3791_v36, 16  ;;  %v4014_v44 = vshll.u32 %v3796_v37, 16 }
 0x345   : > { %v4967_v40 = vld [vmem:[#allocation2 + $0x78] sm:$0xff] }
 0x346   : > { %v3970_v43 = vrot.slane %v3968_v41, 7  ;;  %v4013_v38 = vrot.slane %v4011_v25, 7  ;;  %3644 = vmatmul.bf16.gmra.mxu3 %v4967_v40  ;;  %v4288_v25 = vmul.f32 %v6792_v5, %v6792_v5 }
 0x348   : > { %v3973_v54 = vor.u32 %v3971_v42, %v3970_v43  ;;  %v3975_v55 = vrot.slane %v3970_v43, 4  ;;  %v4016_v56 = vor.u32 %v4014_v44, %v4013_v38  ;;  %v4017_v8 = vrot.slane %v4013_v38, 4 }
 0x349   : > { %v6960_v58 = vpop.f32.mrf.mxu3  ;;  %v4289_v44 = vmul.f32 %v6873_v28, %v6873_v28 }
 0x34a   : > { %v3974_v61 = vsel %vm6744_vm8, %v3966_v51, %v3973_v54  ;;  %v4197_v62 = vsel %vm6633_vm4, %v3975_v55, %v4916_v49  ;;  %v4214_v0 = vsel %vm6728_vm2, %v4016_v56, %v4928_v63  ;;  %v3797_v1 = vpack.c.bf16 %v6960_v58, %v6960_v58  ;;  %v4886_v49 = vld [vmem:[%s6610_s29 + $0x38] sm:$0x1]  ;;  %v4898_v56 = vld [vmem:[%s6610_s29 + $0x54] sm:$0xf] }
 0x34b   : > { %4915 = vst.msk [vmem:[%s6610_s29 + $0x7c] sm:$0xf] %vm3650_vm0, %v3974_v61 }
 0x34c   : > { %4917 = vst [vmem:[%s6610_s29 + $0x80] sm:$0x1] %v4197_v62  ;;  %v4019_v60 = vshrl.u32 %v3797_v1, 16  ;;  %v4022_v4 = vshll.u32 %v3797_v1, 16 }
 0x34d   : > { %4929 = vst [vmem:[%s6610_s29 + $0x9c] sm:$0xf] %v4214_v0  ;;  %v3751_v0 = vld [vmem:[%s6610_s29 + $0x8c] sm:$0x1] }
 0x34e   : > { %v4021_v3 = vrot.slane %v4019_v60, 7 }
 0x350   : > { %v4024_v7 = vor.u32 %v4022_v4, %v4021_v3  ;;  %v4026_v59 = vrot.slane %v4021_v3, 4 }
 0x352   : > { %v4025_v9 = vsel %vm6744_vm8, %v4017_v8, %v4024_v7  ;;  %v4218_v10 = vsel %vm6633_vm4, %v4026_v59, %v4931_v6  ;;  %v3704_v8 = vld [vmem:[%s6610_s29 + $0xa8] sm:$0x1]  ;;  %v3752_v59 = vsel %vm6655_vm7, 0, %v3751_v0 }
 0x353   : > { %4930 = vst.msk [vmem:[%s6610_s29 + $0xa0] sm:$0xf] %vm3650_vm0, %v4025_v9  ;;  %v3585_v11 = vpop.f32.mrf.mxu0 }
 0x354   : > { %4932 = vst [vmem:[%s6610_s29 + $0xa4] sm:$0x1] %v4218_v10  ;;  %v3778_v13 = vpack.c.bf16 %v3585_v11, %v3585_v11  ;;  %v4246_v14 = vadd.f32 %v6871_v26, %v3585_v11  ;;  %v4285_v16 = vmul.f32 %v3585_v11, %v3585_v11 }
 0x355   : > { %3753 = vst [vmem:[%s6610_s29 + $0x8c] sm:$0x1] %v3752_v59 }
 0x356   : > { %v3858_v17 = vshrl.u32 %v3778_v13, 16  ;;  %v4316_v18 = vadd.f32 %v6879_v19, %v4285_v16  ;;  %v3861_v21 = vshll.u32 %v3778_v13, 16 }
 0x358   : > { %v3860_v20 = vrot.slane %v3858_v17, 7 }
 0x35a   : > { %v3863_v53 = vor.u32 %v3861_v21, %v3860_v20  ;;  %v3864_v47 = vrot.slane %v3860_v20, 4  ;;  %v4901_v21 = vld [vmem:[%s6610_s29 + $0x5c] sm:$0x1] }
 0x35b   : > { %v3587_v24 = vpop.f32.mrf.mxu0 }
 0x35c   : > { %v4151_v29 = vsel %vm6728_vm2, %v3863_v53, %v4883_v22  ;;  %v3779_v12 = vpack.c.bf16 %v3587_v24, %v3587_v24  ;;  %v4247_v26 = vadd.f32 %v4246_v14, %v3587_v24  ;;  %v4286_v30 = vmul.f32 %v3587_v24, %v3587_v24  ;;  %v3600_v31 = vpop.f32.mrf.mxu1 }
 0x35d   : > { %4884 = vst [vmem:[%s6610_s29 + $0x30] sm:$0xf] %v4151_v29  ;;  %v3784_v19 = vpack.c.bf16 %v3600_v31, %v3600_v31  ;;  %v4291_v10 = vmul.f32 %v3600_v31, %v3600_v31  ;;  %v3761_v29 = vsel %vm6655_vm7, 0, %v3760_v27 }
 0x35e   : > { %v3866_v36 = vshrl.u32 %v3779_v12, 16  ;;  %v4248_v37 = vadd.f32 %v4247_v26, %v6774_v48  ;;  %v4317_v41 = vadd.f32 %v4316_v18, %v4286_v30  ;;  %v3869_v39 = vshll.u32 %v3779_v12, 16  ;;  %3762 = vst [vmem:[%s6610_s29 + $0xb0] sm:$0x1] %v3761_v29  ;;  %v3686_v30 = vld [vmem:[%s6610_s29 + $0x60] sm:$0x1] }
 0x35f   : > { %v3909_v40 = vshrl.u32 %v3784_v19, 16  ;;  %v3912_v48 = vshll.u32 %v3784_v19, 16  ;;  %v3742_v19 = vld [vmem:[%s6610_s29 + $0x68] sm:$0x1]  ;;  %v3754_v29 = vld [vmem:[%s6610_s29 + $0x98] sm:$0x1] }
 0x360   : > { %v3868_v42 = vrot.slane %v3866_v36, 7  ;;  %v4249_v43 = vadd.f32 %v4248_v37, %v6792_v5  ;;  %v4318_v38 = vadd.f32 %v4317_v41, %v4287_v35  ;;  %v4290_v5 = vmul.f32 %v6889_v50, %v6889_v50 }
 0x361   : > { %v3911_v63 = vrot.slane %v3909_v40, 7  ;;  %v3743_v35 = vsel %vm6655_vm7, 0, %v3742_v19  ;;  %v3755_v19 = vsel %vm6655_vm7, 0, %v3754_v29 }
 0x362   : > { %v3871_v51 = vor.u32 %v3869_v39, %v3868_v42  ;;  %v3873_v54 = vrot.slane %v3868_v42, 4  ;;  %v4319_v55 = vadd.f32 %v4318_v38, %v4288_v25  ;;  %v4250_v61 = vadd.f32 %v4249_v43, %v6873_v28  ;;  %3744 = vst [vmem:[%s6610_s29 + $0x68] sm:$0x1] %v3743_v35  ;;  %v4918_v42 = vld [vmem:[%s6610_s29 + $0x84] sm:$0xf] }
 0x363   : > { %v3914_v62 = vor.u32 %v3912_v48, %v3911_v63  ;;  %v3915_v53 = vrot.slane %v3911_v63, 4  ;;  %3756 = vst [vmem:[%s6610_s29 + $0x98] sm:$0x1] %v3755_v19 }
 0x364   : > { %v3872_v1 = vsel %vm6744_vm8, %v3864_v47, %v3871_v51  ;;  %v4155_v60 = vsel %vm6633_vm4, %v3873_v54, %v4886_v49  ;;  %v4251_v3 = vadd.f32 %v4250_v61, %v6889_v50  ;;  %v4320_v4 = vadd.f32 %v4319_v55, %v4289_v44  ;;  %v3602_v6 = vpop.f32.mrf.mxu1 }
 0x365   : > { %4885 = vst.msk [vmem:[%s6610_s29 + $0x34] sm:$0xf] %vm3650_vm0, %v3872_v1  ;;  %v4172_v28 = vsel %vm6728_vm2, %v3914_v62, %v4898_v56  ;;  %v3785_v7 = vpack.c.bf16 %v3602_v6, %v3602_v6  ;;  %v3705_v50 = vsel %vm6633_vm4, 0, %v3704_v8  ;;  %v4292_v17 = vmul.f32 %v3602_v6, %v3602_v6  ;;  %v4921_v56 = vld [vmem:[%s6610_s29 + $0x8c] sm:$0x1] }
 0x366   : > { %4887 = vst [vmem:[%s6610_s29 + $0x38] sm:$0x1] %v4155_v60  ;;  %v4252_v9 = vadd.f32 %v4251_v3, %v3600_v31  ;;  %v4321_v11 = vadd.f32 %v4320_v4, %v4290_v5  ;;  %v3687_v31 = vsel %vm6633_vm4, 0, %v3686_v30  ;;  %v3698_v5 = vld [vmem:[%s6610_s29 + $0x90] sm:$0x1] }
 0x367   : > { %4899 = vst [vmem:[%s6610_s29 + $0x54] sm:$0xf] %v4172_v28  ;;  %v3917_v13 = vshrl.u32 %v3785_v7, 16  ;;  %v3920_v20 = vshll.u32 %v3785_v7, 16  ;;  %v3699_v60 = vsel %vm6633_vm4, 0, %v3698_v5 }
 0x368   : > { %v4322_v14 = vadd.f32 %v4321_v11, %v4291_v10  ;;  %v7022_v16 = vadd.f32 %v4252_v9, %v3602_v6  ;;  %3706 = vst [vmem:[%s6610_s29 + $0xa8] sm:$0x1] %v3705_v50 }
 0x369   : > { %v3919_v18 = vrot.slane %v3917_v13, 7  ;;  %3688 = vst [vmem:[%s6610_s29 + $0x60] sm:$0x1] %v3687_v31  ;;  %v4906_v5 = vld [vmem:[%s6610_s29 + $0x68] sm:$0x1] }
 0x36a   : > { %v7027_v22 = vadd.f32 %v4322_v14, %v4292_v17  ;;  %3700 = vst [vmem:[%s6610_s29 + $0x90] sm:$0x1] %v3699_v60  ;;  %v4298_v60 = vmul.f32 %v6943_v32, %v6943_v32 }
 0x36b   : > { %v3922_v23 = vor.u32 %v3920_v20, %v3919_v18  ;;  %v3924_v24 = vrot.slane %v3919_v18, 4 }
 0x36d   : > { %v3923_v12 = vsel %vm6744_vm8, %v3915_v53, %v3922_v23  ;;  %v4176_v26 = vsel %vm6633_vm4, %v3924_v24, %v4901_v21  ;;  %v4936_v23 = vld [vmem:[%s6610_s29 + $0xb0] sm:$0x1] }
 0x36e   : > { %4900 = vst.msk [vmem:[%s6610_s29 + $0x58] sm:$0xf] %vm3650_vm0, %v3923_v12 }
 0x36f   : > { %4902 = vst [vmem:[%s6610_s29 + $0x5c] sm:$0x1] %v4176_v26  ;;  %v4933_v3 = vld [vmem:[%s6610_s29 + $0xa8] sm:$0xf] }
 0x370   : > { %v4903_v21 = vld [vmem:[%s6610_s29 + $0x60] sm:$0xf] }
 0x37a   : > { %v7048_v36 = vpop.f32.mrf.mxu2 }
 0x37b   : > { %v3792_v37 = vpack.c.bf16 %v7048_v36, %v7048_v36 }
 0x37d   : > { %v3977_v41 = vshrl.u32 %v3792_v37, 16  ;;  %v3980_v40 = vshll.u32 %v3792_v37, 16 }
 0x37f   : > { %v3979_v25 = vrot.slane %v3977_v41, 7 }
 0x381   : > { %v3982_v39 = vor.u32 %v3980_v40, %v3979_v25  ;;  %v3983_v55 = vrot.slane %v3979_v25, 4  ;;  %v3707_v40 = vld [vmem:[%s6610_s29 + $0xb4] sm:$0x1] }
 0x382   : > { %v7053_v43 = vpop.f32.mrf.mxu2 }
 0x383   : > { %v4200_v38 = vsel %vm6728_vm2, %v3982_v39, %v4918_v42  ;;  %v3793_v44 = vpack.c.bf16 %v7053_v43, %v7053_v43  ;;  %v3708_v42 = vsel %vm6633_vm4, 0, %v3707_v40  ;;  %v4295_v39 = vmul.f32 %v6825_v34, %v6825_v34 }
 0x384   : > { %4919 = vst [vmem:[%s6610_s29 + $0x84] sm:$0xf] %v4200_v38  ;;  %v7060_v47 = vpop.f32.mrf.mxu3  ;;  %v4304_v40 = vmul.f32 %v6960_v58, %v6960_v58 }
 0x385   : > { %v3985_v49 = vshrl.u32 %v3793_v44, 16  ;;  %v3798_v63 = vpack.c.bf16 %v7060_v47, %v7060_v47  ;;  %v3988_v51 = vshll.u32 %v3793_v44, 16  ;;  %3709 = vst [vmem:[%s6610_s29 + $0xb4] sm:$0x1] %v3708_v42 }
 0x387   : > { %v3987_v48 = vrot.slane %v3985_v49, 7  ;;  %v4028_v54 = vshrl.u32 %v3798_v63, 16  ;;  %v4031_v61 = vshll.u32 %v3798_v63, 16  ;;  %v4296_v63 = vmul.f32 %v6839_v45, %v6839_v45 }
 0x389   : > { %v3990_v62 = vor.u32 %v3988_v51, %v3987_v48  ;;  %v3992_v0 = vrot.slane %v3987_v48, 4  ;;  %v4030_v1 = vrot.slane %v4028_v54, 7 }
 0x38b   : > { %v3991_v4 = vsel %vm6744_vm8, %v3983_v55, %v3990_v62  ;;  %v4204_v6 = vsel %vm6633_vm4, %v3992_v0, %v4921_v56  ;;  %v4033_v8 = vor.u32 %v4031_v61, %v4030_v1  ;;  %v3605_v28 = vpop.f32.mrf.mxu1  ;;  %v4034_v53 = vrot.slane %v4030_v1, 4 }
 0x38c   : > { %4920 = vst.msk [vmem:[%s6610_s29 + $0x88] sm:$0xf] %vm3650_vm0, %v3991_v4  ;;  %v7076_v7 = vpop.f32.mrf.mxu3  ;;  %v3786_v59 = vpack.c.bf16 %v3605_v28, %v3605_v28  ;;  %v4293_v13 = vmul.f32 %v3605_v28, %v3605_v28  ;;  %v4254_v27 = vadd.f32 %v7022_v16, %v3605_v28  ;;  %v4297_v56 = vmul.f32 %v6929_v46, %v6929_v46 }
 0x38d   : > { %4922 = vst [vmem:[%s6610_s29 + $0x8c] sm:$0x1] %v4204_v6  ;;  %v4221_v9 = vsel %vm6728_vm2, %v4033_v8, %v4933_v3  ;;  %v3799_v10 = vpack.c.bf16 %v7076_v7, %v7076_v7  ;;  %v3763_v8 = vld [vmem:[%s6610_s29 + $0xbc] sm:$0x1]  ;;  %v4299_v28 = vmul.f32 %v7048_v36, %v7048_v36 }
 0x38e   : > { %4934 = vst [vmem:[%s6610_s29 + $0xa8] sm:$0xf] %v4221_v9  ;;  %v3926_v11 = vshrl.u32 %v3786_v59, 16  ;;  %v3929_v17 = vshll.u32 %v3786_v59, 16  ;;  %v4324_v30 = vadd.f32 %v7027_v22, %v4293_v13 }
 0x38f   : > { %v4036_v50 = vshrl.u32 %v3799_v10, 16  ;;  %v4039_v20 = vshll.u32 %v3799_v10, 16 }
 0x390   : > { %v3928_v14 = vrot.slane %v3926_v11, 7 }
 0x391   : > { %v4038_v18 = vrot.slane %v4036_v50, 7 }
 0x392   : > { %v3931_v24 = vor.u32 %v3929_v17, %v3928_v14  ;;  %v3932_v61 = vrot.slane %v3928_v14, 4 }
 0x393   : > { %v4041_v12 = vor.u32 %v4039_v20, %v4038_v18  ;;  %v4043_v26 = vrot.slane %v4038_v18, 4  ;;  %v3607_v31 = vpop.f32.mrf.mxu1  ;;  %v4300_v18 = vmul.f32 %v7053_v43, %v7053_v43 }
 0x394   : > { %v4179_v35 = vsel %vm6728_vm2, %v3931_v24, %v4903_v21  ;;  %v3787_v37 = vpack.c.bf16 %v3607_v31, %v3607_v31  ;;  %v4255_v41 = vadd.f32 %v4254_v27, %v3607_v31  ;;  %v4294_v25 = vmul.f32 %v3607_v31, %v3607_v31 }
 0x395   : > { %v4042_v16 = vsel %vm6744_vm8, %v4034_v53, %v4041_v12  ;;  %v4225_v22 = vsel %vm6633_vm4, %v4043_v26, %v4936_v23  ;;  %4904 = vst [vmem:[%s6610_s29 + $0x60] sm:$0xf] %v4179_v35  ;;  %v4923_v53 = vld [vmem:[%s6610_s29 + $0x90] sm:$0xf]  ;;  %v4303_v35 = vmul.f32 %v6945_v33, %v6945_v33 }
 0x396   : > { %4935 = vst.msk [vmem:[%s6610_s29 + $0xac] sm:$0xf] %vm3650_vm0, %v4042_v16  ;;  %v3934_v38 = vshrl.u32 %v3787_v37, 16  ;;  %v4256_v44 = vadd.f32 %v4255_v41, %v6825_v34  ;;  %v4325_v49 = vadd.f32 %v4324_v30, %v4294_v25  ;;  %v3937_v51 = vshll.u32 %v3787_v37, 16  ;;  %v3766_v25 = vld [vmem:[%s6610_s29 + $0xc8] sm:$0x1] }
 0x397   : > { %4937 = vst [vmem:[%s6610_s29 + $0xb0] sm:$0x1] %v4225_v22 }
 0x398   : > { %v3936_v48 = vrot.slane %v3934_v38, 7  ;;  %v4257_v54 = vadd.f32 %v4256_v44, %v6839_v45  ;;  %v4326_v55 = vadd.f32 %v4325_v49, %v4295_v39  ;;  %v3767_v39 = vsel %vm6655_vm7, 0, %v3766_v25 }
 0x399   : > { %3768 = vst [vmem:[%s6610_s29 + $0xc8] sm:$0x1] %v3767_v39 }
 0x39a   : > { %v3939_v34 = vor.u32 %v3937_v51, %v3936_v48  ;;  %v3941_v62 = vrot.slane %v3936_v48, 4  ;;  %v4258_v0 = vadd.f32 %v4257_v54, %v6929_v46  ;;  %v4327_v1 = vadd.f32 %v4326_v55, %v4296_v63  ;;  %v4926_v48 = vld [vmem:[%s6610_s29 + $0x98] sm:$0x1] }
 0x39b   : > { %v3764_v46 = vsel %vm6655_vm7, 0, %v3763_v8 }
 0x39c   : > { %v3940_v45 = vsel %vm6744_vm8, %v3932_v61, %v3939_v34  ;;  %v4183_v3 = vsel %vm6633_vm4, %v3941_v62, %v4906_v5  ;;  %v4328_v4 = vadd.f32 %v4327_v1, %v4297_v56  ;;  %v4259_v6 = vadd.f32 %v4258_v0, %v6943_v32  ;;  %3765 = vst [vmem:[%s6610_s29 + $0xbc] sm:$0x1] %v3764_v46  ;;  %v3710_v32 = vld [vmem:[%s6610_s29 + $0xc0] sm:$0x1]  ;;  %v4938_v0 = vld [vmem:[%s6610_s29 + $0xb4] sm:$0xf] }
 0x39d   : > { %4905 = vst.msk [vmem:[%s6610_s29 + $0x64] sm:$0xf] %vm3650_vm0, %v3940_v45  ;;  %v3711_v13 = vsel %vm6633_vm4, 0, %v3710_v32 }
 0x39e   : > { %4907 = vst [vmem:[%s6610_s29 + $0x68] sm:$0x1] %v4183_v3  ;;  %v4260_v59 = vadd.f32 %v4259_v6, %v7048_v36  ;;  %v4329_v9 = vadd.f32 %v4328_v4, %v4298_v60 }
 0x39f   : > { %3712 = vst [vmem:[%s6610_s29 + $0xc0] sm:$0x1] %v3711_v13 }
 0x3a0   : > { %v4330_v10 = vadd.f32 %v4329_v9, %v4299_v28  ;;  %v4261_v36 = vadd.f32 %v4260_v59, %v7053_v43  ;;  %v5123_v9 = vmov 0.0  }
 0x3a1   : > { %4349 = vst [vmem:[%s7173_s28 + $0x2] sm:$0x3f] %v5123_v9 }
 0x3a2   : > { %v4331_v23 = vadd.f32 %v4330_v10, %v4300_v18  ;;  %v4306_v10 = vmul.f32 %v7076_v7, %v7076_v7 }
 0x3a3   : > { %v4941_v8 = vld [vmem:[%s6610_s29 + $0xbc] sm:$0x1] }
 0x3a8   : > { %v3625_v11 = vpop.f32.mrf.mxu2 }
 0x3a9   : > { %v3794_v50 = vpack.c.bf16 %v3625_v11, %v3625_v11  ;;  %v4301_v20 = vmul.f32 %v3625_v11, %v3625_v11  ;;  %v4262_v27 = vadd.f32 %v4261_v36, %v3625_v11 }
 0x3ab   : > { %v3994_v14 = vshrl.u32 %v3794_v50, 16  ;;  %v3997_v17 = vshll.u32 %v3794_v50, 16  ;;  %v4332_v29 = vadd.f32 %v4331_v23, %v4301_v20 }
 0x3ad   : > { %v3996_v21 = vrot.slane %v3994_v14, 7 }
 0x3af   : > { %v3999_v24 = vor.u32 %v3997_v17, %v3996_v21  ;;  %v4000_v16 = vrot.slane %v3996_v21, 4 }
 0x3b0   : > { %v3627_v12 = vpop.f32.mrf.mxu2 }
 0x3b1   : > { %v4207_v26 = vsel %vm6728_vm2, %v3999_v24, %v4923_v53  ;;  %v3795_v30 = vpack.c.bf16 %v3627_v12, %v3627_v12  ;;  %v4263_v31 = vadd.f32 %v4262_v27, %v3627_v12  ;;  %v4302_v19 = vmul.f32 %v3627_v12, %v3627_v12 }
 0x3b2   : > { %4924 = vst [vmem:[%s6610_s29 + $0x90] sm:$0xf] %v4207_v26  ;;  %v4943_v26 = vld [vmem:[%s6610_s29 + $0xc0] sm:$0xf] }
 0x3b3   : > { %v4002_v43 = vshrl.u32 %v3795_v30, 16  ;;  %v4264_v37 = vadd.f32 %v4263_v31, %v6945_v33  ;;  %v4333_v41 = vadd.f32 %v4332_v29, %v4302_v19  ;;  %v4005_v22 = vshll.u32 %v3795_v30, 16 }
 0x3b4   : > { %v3640_v42 = vpop.f32.mrf.mxu3  ;;  %v4305_v33 = vmul.f32 %v7060_v47, %v7060_v47 }
 0x3b5   : > { %v4004_v38 = vrot.slane %v4002_v43, 7  ;;  %v4265_v44 = vadd.f32 %v4264_v37, %v6960_v58  ;;  %v4334_v49 = vadd.f32 %v4333_v41, %v4303_v35  ;;  %v3800_v63 = vpack.c.bf16 %v3640_v42, %v3640_v42 }
 0x3b6   : > { %v4307_v14 = vmul.f32 %v3640_v42, %v3640_v42 }
 0x3b7   : > { %v4007_v51 = vor.u32 %v4005_v22, %v4004_v38  ;;  %v4009_v54 = vrot.slane %v4004_v38, 4  ;;  %v4335_v55 = vadd.f32 %v4334_v49, %v4304_v40  ;;  %v4045_v2 = vshrl.u32 %v3800_v63, 16  ;;  %v4946_v49 = vld [vmem:[%s6610_s29 + $0xc8] sm:$0x1] }
 0x3b8   : > { %v4048_v56 = vshll.u32 %v3800_v63, 16  ;;  %v4266_v58 = vadd.f32 %v4265_v44, %v7060_v47 }
 0x3b9   : > { %v4008_v61 = vsel %vm6744_vm8, %v4000_v16, %v4007_v51  ;;  %v4211_v5 = vsel %vm6633_vm4, %v4009_v54, %v4926_v48  ;;  %v4047_v34 = vrot.slane %v4045_v2, 7  ;;  %v4336_v62 = vadd.f32 %v4335_v55, %v4305_v33 }
 0x3ba   : > { %4925 = vst.msk [vmem:[%s6610_s29 + $0x94] sm:$0xf] %vm3650_vm0, %v4008_v61  ;;  %v4267_v32 = vadd.f32 %v4266_v58, %v7076_v7 }
 0x3bb   : > { %4927 = vst [vmem:[%s6610_s29 + $0x98] sm:$0x1] %v4211_v5  ;;  %v4050_v1 = vor.u32 %v4048_v56, %v4047_v34  ;;  %v4051_v46 = vrot.slane %v4047_v34, 4  ;;  %v4337_v13 = vadd.f32 %v4336_v62, %v4306_v10 }
 0x3bc   : > { %v3642_v60 = vpop.f32.mrf.mxu3  ;;  %v4268_v18 = vadd.f32 %v4267_v32, %v3640_v42 }
 0x3bd   : > { %v4228_v45 = vsel %vm6728_vm2, %v4050_v1, %v4938_v0  ;;  %v3801_v47 = vpack.c.bf16 %v3642_v60, %v3642_v60  ;;  %v4338_v21 = vadd.f32 %v4337_v13, %v4307_v14  ;;  %v4308_v53 = vmul.f32 %v3642_v60, %v3642_v60 }
 0x3be   : > { %4939 = vst [vmem:[%s6610_s29 + $0xb4] sm:$0xf] %v4228_v45  ;;  %v4269_v24 = vadd.f32 %v4268_v18, %v3642_v60 }
 0x3bf   : > { %v4053_v3 = vshrl.u32 %v3801_v47, 16  ;;  %v4056_v6 = vshll.u32 %v3801_v47, 16  ;;  %v4339_v12 = vadd.f32 %v4338_v21, %v4308_v53 }
 0x3c1   : > { %v4055_v4 = vrot.slane %v4053_v3, 7 }
 0x3c3   : > { %v4058_v28 = vor.u32 %v4056_v6, %v4055_v4  ;;  %v4060_v59 = vrot.slane %v4055_v4, 4 }
 0x3c5   : > { %v4059_v11 = vsel %vm6744_vm8, %v4051_v46, %v4058_v28  ;;  %v4232_v50 = vsel %vm6633_vm4, %v4060_v59, %v4941_v8 }
 0x3c6   : > { %4940 = vst.msk [vmem:[%s6610_s29 + $0xb8] sm:$0xf] %vm3650_vm0, %v4059_v11 }
 0x3c7   : > { %4942 = vst [vmem:[%s6610_s29 + $0xbc] sm:$0x1] %v4232_v50 }
 0x3c9   : > { %v3645_v17 = vpop.f32.mrf.mxu3 }
 0x3ca   : > { %v3802_v20 = vpack.c.bf16 %v3645_v17, %v3645_v17  ;;  %v4309_v23 = vmul.f32 %v3645_v17, %v3645_v17  ;;  %v4270_v30 = vadd.f32 %v4269_v24, %v3645_v17 }
 0x3cc   : > { %v4062_v36 = vshrl.u32 %v3802_v20, 16  ;;  %v4065_v29 = vshll.u32 %v3802_v20, 16  ;;  %v4340_v31 = vadd.f32 %v4339_v12, %v4309_v23 }
 0x3ce   : > { %v4064_v27 = vrot.slane %v4062_v36, 7 }
 0x3d0   : > { %v4067_v7 = vor.u32 %v4065_v29, %v4064_v27  ;;  %v4068_v44 = vrot.slane %v4064_v27, 4 }
 0x3d1   : > { %v3647_v19 = vpop.f32.mrf.mxu3 }
 0x3d2   : > { %v4235_v35 = vsel %vm6728_vm2, %v4067_v7, %v4943_v26  ;;  %v3803_v43 = vpack.c.bf16 %v3647_v19, %v3647_v19  ;;  %v4271_v37 = vadd.f32 %v4270_v30, %v3647_v19  ;;  %v4310_v41 = vmul.f32 %v3647_v19, %v3647_v19 }
 0x3d3   : > { %4944 = vst [vmem:[%s6610_s29 + $0xc0] sm:$0xf] %v4235_v35 }
 0x3d4   : > { %v4070_v25 = vshrl.u32 %v3803_v43, 16  ;;  %v4272_v40 = vrot.slane %v4271_v37, 4  ;;  %v4341_v16 = vadd.f32 %v4340_v31, %v4310_v41  ;;  %v4073_v42 = vshll.u32 %v3803_v43, 16 }
 0x3d6   : > { %v4072_v22 = vrot.slane %v4070_v25, 7  ;;  %v4273_v39 = vadd.f32 %v4272_v40, %v4271_v37  ;;  %v4342_v38 = vrot.slane %v4341_v16, 4 }
 0x3d8   : > { %v4075_v63 = vor.u32 %v4073_v42, %v4072_v22  ;;  %v4077_v57 = vrot.slane %v4072_v22, 4  ;;  %v4274_v33 = vrot.slane %v4273_v39, 2  ;;  %v4343_v48 = vadd.f32 %v4342_v38, %v4341_v16 }
 0x3da   : > { %v4076_v51 = vsel %vm6744_vm8, %v4068_v44, %v4075_v63  ;;  %v4239_v54 = vsel %vm6633_vm4, %v4077_v57, %v4946_v49  ;;  %v4275_v55 = vadd.f32 %v4274_v33, %v4273_v39  ;;  %v4344_v2 = vrot.slane %v4343_v48, 2 }
 0x3db   : > { %4945 = vst.msk [vmem:[%s6610_s29 + $0xc4] sm:$0xf] %vm3650_vm0, %v4076_v51 }
 0x3dc   : > { %4947 = vst [vmem:[%s6610_s29 + $0xc8] sm:$0x1] %v4239_v54  ;;  %v4276_v56 = vrot.slane %v4275_v55, 1  ;;  %v4345_v58 = vadd.f32 %v4344_v2, %v4343_v48 }
 0x3de   : > { %v4277_v15 = vadd.f32 %v4276_v56, %v4275_v55  ;;  %v4346_v61 = vrot.slane %v4345_v58, 1 }
 0x3e0   : > { %v4347_v52 = vadd.f32 %v4346_v61, %v4345_v58  ;;  %4278 = vst [vmem:[%s7173_s28] sm:$0x1] %v4277_v15 }
 0x3e2   : > { %4348 = vst [vmem:[%s7173_s28 + $0x1] sm:$0x1] %v4347_v52 }
 0x3e3   : > { %5077 = shalt.err (!%p5074_p3)
}
 0x3e4   : > { %5001 = dma.vmem_to_hbm [thread:$0]  (%p5182_p5), %s4372_s16, 128, %s4374_s30, %s4356_s4  }
 0x3e5 PF: > { %p5007_p4 = scmp.ge.s32.totalorder %s5112_s15, 2  ;;  %s4393_s27 = sand.u32 1, %s5100_s12  }
 0x3e6   : > { %s4394_s29 = scalar_lea.sflag [#allocation4], %s4393_s27 }
 0x3e7   : > { %p5004_p7 = pnand %p5007_p4, %p5186_p6 }
 0x3e9   : > { %p5005_p8 = pneg %p5004_p7 }
 0x3eb   : > { %5095 = dma.done.wait (%p5005_p8), %s4394_s29, 128  }
 0x3ec   : > { %5097 = vsyncadd (%p5005_p8), %s4394_s29, 4294967168  ;;  %p14_p9 = scmp.ge.s32.totalorder %s5169_s18, 4   ;;  %s7252_s12 = smov %s5104_s13 }
 0x3ed   : > { %s7253_s13 = smov %s5108_s14  ;;  %s7254_s14 = smov %s5180_s21 }
 0x3ee   : > { %s7255_s15 = smov %s5169_s18  ;;  %16 = sbr.rel (!%p14_p9) target bundleno = 3 (0x3), region = 79 }
 0x3f3   :  { %4400 = vsyncpa [#allocation4], 1 }
 0x3f4   :  { %4402 = vsyncpa [#allocation4 + $0x1], 1 }

</bundles_post_ra>
